<compile_context>
chip_gen: v6e
topology: v6e:2x2x1
jax: 0.10.0
libtpu: 0.0.40
codegen_flags: <defaults>
</compile_context>

<pallas_src>
import jax
import jax.numpy as jnp
from jax import lax
from jax.experimental import pallas as pl
from jax.experimental.pallas import tpu as pltpu


INPUT_DIM = 322
HIDDEN = [100, 100, 100]          # hidden_dim_container (num_hidden_layers = 2)
OUTPUT_DIM = 144
DROPOUT_RATE = 0.4
INV_KEEP = 1.0 / (1.0 - DROPOUT_RATE)
BN_EPS = 1e-5


def _pad128(d):
    return ((d + 127) // 128) * 128


IN_PAD = _pad128(INPUT_DIM)       # 384
OUT_PAD = _pad128(OUTPUT_DIM)     # 256

# The 6 Linear layers of the Sequential (true dims):
#   322->100, 100->100, 100->100, 100->144, 144->144, 144->144
LINEAR_DIMS = [
    (INPUT_DIM, HIDDEN[0]),
    (HIDDEN[0], HIDDEN[1]),
    (HIDDEN[1], HIDDEN[2]),
    (HIDDEN[2], OUTPUT_DIM),
    (OUTPUT_DIM, OUTPUT_DIM),
    (OUTPUT_DIM, OUTPUT_DIM),
]
PADDED_DIMS = [(_pad128(fi), _pad128(fo)) for (fi, fo) in LINEAR_DIMS]
N_LAYERS = len(LINEAR_DIMS)
DROPOUT_AFTER = (3, 4)            # Linear layers followed by Dropout (0-indexed)


def _batchnorm(x, eps=BN_EPS):
    # Training-mode BatchNorm1d(affine=False): batch mean, biased batch var,
    # E[x^2] - E[x]^2 form.  Statistics are computed per 128-lane chunk so the
    # x*x intermediate on 256-wide layers only keeps 16 f32 vregs live at a
    # time (vreg-pressure relief, same math up to fp summation order).
    inv_n = 1.0 / x.shape[0]
    width = x.shape[1]
    means, mean_sqs = [], []
    for c in range(0, width, 128):
        xc = x[:, c:c + 128]
        means.append(jnp.sum(xc, axis=0, keepdims=True) * inv_n)
        mean_sqs.append(jnp.sum(xc * xc, axis=0, keepdims=True) * inv_n)
    mean = means[0] if len(means) == 1 else jnp.concatenate(means, axis=-1)
    mean_sq = mean_sqs[0] if len(mean_sqs) == 1 else jnp.concatenate(mean_sqs, axis=-1)
    var = jnp.maximum(mean_sq - mean * mean, 0.0)
    return (x - mean) * lax.rsqrt(var + eps)


def _silu(x):
    # lax.logistic routes the sigmoid to the EUP (separate VLIW slot).
    return x * jax.nn.sigmoid(x)


def ann_kernel(x_ref, m0_ref, m1_ref,
               w0_ref, w1_ref, w2_ref, w3_ref, w4_ref, w5_ref, b5_ref,
               o_ref):
    w_refs = (w0_ref, w1_ref, w2_ref, w3_ref, w4_ref, w5_ref)
    mask_refs = {3: m0_ref, 4: m1_ref}

    x = x_ref[...]                                  # (B, 384) bf16, zero padded
    for li in range(N_LAYERS):
        w = w_refs[li][...]                         # bf16, lane-aligned, zero padded
        y = jnp.dot(x, w, preferred_element_type=jnp.float32)
        if li < N_LAYERS - 1:
            # Bias omitted: exactly cancelled by the following affine-free BN.
            y = _silu(_batchnorm(y))                # f32 elementwise (v5e-safe)
            if li in mask_refs:
                # int8 keep-flags -> f32, exact inverted-dropout scale in f32.
                keep = mask_refs[li][...].astype(jnp.float32)
                y = y * (keep * INV_KEEP)
            x = y.astype(jnp.bfloat16)              # single cast feeding next MXU dot
        else:
            o_ref[...] = y + b5_ref[...]            # only bias that survives BN


def init_params(key):
    """Shapes / init matching the torch module (weights kaiming-uniform-like,
    biases = 0.5).  Weights stored pre-transposed (in, out), zero-padded to
    128-lane multiples, cast to bf16.  Biases of layers 0-4 are dropped (no-op
    under affine-free BatchNorm); only the final bias is kept (f32, padded)."""
    ws = []
    for li, (fan_in, fan_out) in enumerate(LINEAR_DIMS):
        key, wk = jax.random.split(key)
        bound = float(fan_in) ** -0.5
        w = jax.random.uniform(wk, (fan_in, fan_out), dtype=jnp.float32,
                               minval=-bound, maxval=bound)
        pi, po = PADDED_DIMS[li]
        w = jnp.pad(w, ((0, pi - fan_in), (0, po - fan_out)))
        ws.append(w.astype(jnp.bfloat16))
    b5 = jnp.zeros((1, OUT_PAD), jnp.float32).at[:, :OUTPUT_DIM].set(0.5)
    return tuple(ws), b5


@jax.jit
def ann_forward(x, params, dropout_key):
    ws, b5 = params
    batch = x.shape[0]

    # Zero-pad input features to the lane-aligned width and cast to bf16 once
    # (the MXU truncates to bf16 anyway; this halves the x DMA).
    x_pad = jnp.pad(x, ((0, 0), (0, IN_PAD - INPUT_DIM))).astype(jnp.bfloat16)

    # One fused random draw for both dropout layers; passed as int8 keep-flags
    # (4x fewer mask bytes than f32); scale happens in-kernel in f32 (exact).
    keep = jax.random.bernoulli(dropout_key, 1.0 - DROPOUT_RATE,
                                (batch, 2 * OUT_PAD)).astype(jnp.int8)
    m0 = keep[:, :OUT_PAD]
    m1 = keep[:, OUT_PAD:]

    # Advisory cost hint so XLA can schedule around this tiny custom call.
    mm_elems = sum(pi * po for pi, po in PADDED_DIMS)
    flops = 2 * batch * mm_elems
    transcendentals = batch * sum(po for _, po in PADDED_DIMS[:-1])  # sigmoids
    bytes_accessed = (batch * IN_PAD * 2            # x (bf16)
                      + 2 * batch * OUT_PAD * 1     # masks (int8)
                      + mm_elems * 2                # weights (bf16)
                      + OUT_PAD * 4                 # bias (f32)
                      + batch * OUT_PAD * 4)        # output (f32)

    n_inputs = 3 + len(ws) + 1   # x, m0, m1, w0..w5, b5
    out_pad = pl.pallas_call(
        ann_kernel,
        out_shape=jax.ShapeDtypeStruct((batch, OUT_PAD), jnp.float32),
        in_specs=[pl.BlockSpec(memory_space=pltpu.MemorySpace.VMEM)] * n_inputs,
        out_specs=pl.BlockSpec(memory_space=pltpu.MemorySpace.VMEM),
        cost_estimate=pl.CostEstimate(flops=flops,
                                      transcendentals=transcendentals,
                                      bytes_accessed=bytes_accessed),
    )(x_pad, m0, m1, *ws, b5)

    return out_pad[:, :OUTPUT_DIM]


if __name__ == "__main__":
    key = jax.random.PRNGKey(0)
    key, xk, pk, dk = jax.random.split(key, 4)

    # Batch 128 fills the MXU row dimension, is sublane-aligned, and keeps the
    # whole activation footprint tiny (<200 KiB); BatchNorm needs a real batch.
    batch = 128
    x = jax.random.normal(xk, (batch, INPUT_DIM), dtype=jnp.float32)
    params = init_params(pk)

    out = ann_forward(x, params, dk)
    out = jax.block_until_ready(out)

    assert out.shape == (batch, OUTPUT_DIM), out.shape
    assert out.dtype == jnp.float32
    assert bool(jnp.all(jnp.isfinite(out)))
    print("KERNEL_OK")
</pallas_src>

<mosaic_0001>
module attributes {stable_mosaic.version = 11 : i64} {
  func.func @ann_kernel(%arg0: memref<128x384xbf16, #tpu.memory_space<vmem>>, %arg1: memref<128x256xi8, #tpu.memory_space<vmem>>, %arg2: memref<128x256xi8, #tpu.memory_space<vmem>>, %arg3: memref<384x128xbf16, #tpu.memory_space<vmem>>, %arg4: memref<128x128xbf16, #tpu.memory_space<vmem>>, %arg5: memref<128x128xbf16, #tpu.memory_space<vmem>>, %arg6: memref<128x256xbf16, #tpu.memory_space<vmem>>, %arg7: memref<256x256xbf16, #tpu.memory_space<vmem>>, %arg8: memref<256x256xbf16, #tpu.memory_space<vmem>>, %arg9: memref<1x256xf32, #tpu.memory_space<vmem>>, %arg10: memref<128x256xf32, #tpu.memory_space<vmem>>) attributes {dimension_semantics = [], scalar_prefetch = 0 : i64, scratch_operands = 0 : i64, tpu.core_type = #tpu.core_type<tc>} {
    %c0 = arith.constant 0 : index
    %c0_0 = arith.constant 0 : index
    %0 = vector.load %arg0[%c0, %c0_0] : memref<128x384xbf16, #tpu.memory_space<vmem>>, vector<128x384xbf16>
    %c0_1 = arith.constant 0 : index
    %c0_2 = arith.constant 0 : index
    %1 = vector.load %arg3[%c0_1, %c0_2] : memref<384x128xbf16, #tpu.memory_space<vmem>>, vector<384x128xbf16>
    %cst = arith.constant dense<0.000000e+00> : vector<128x128xf32>
    %2 = tpu.matmul %0, %1, %cst {dimension_numbers = #tpu.dot_dimension_numbers<[1], [0], [0], [1], [0, 0, 1, 1], [], []>} : vector<128x384xbf16>, vector<384x128xbf16>, vector<128x128xf32> -> vector<128x128xf32>
    %cst_3 = arith.constant dense<0.000000e+00> : vector<128xf32>
    %3 = vector.multi_reduction <add>, %2, %cst_3 [0] : vector<128x128xf32> to vector<128xf32>
    %4 = vector.shape_cast %3 : vector<128xf32> to vector<1x128xf32>
    %cst_4 = arith.constant 7.812500e-03 : f32
    %5 = vector.broadcast %cst_4 : f32 to vector<1x128xf32>
    %6 = arith.mulf %4, %5 : vector<1x128xf32>
    %7 = arith.mulf %2, %2 : vector<128x128xf32>
    %cst_5 = arith.constant dense<0.000000e+00> : vector<128xf32>
    %8 = vector.multi_reduction <add>, %7, %cst_5 [0] : vector<128x128xf32> to vector<128xf32>
    %9 = vector.shape_cast %8 : vector<128xf32> to vector<1x128xf32>
    %cst_6 = arith.constant 7.812500e-03 : f32
    %10 = vector.broadcast %cst_6 : f32 to vector<1x128xf32>
    %11 = arith.mulf %9, %10 : vector<1x128xf32>
    %12 = arith.mulf %6, %6 : vector<1x128xf32>
    %13 = arith.subf %11, %12 : vector<1x128xf32>
    %cst_7 = arith.constant 0.000000e+00 : f32
    %14 = vector.broadcast %cst_7 : f32 to vector<1x128xf32>
    %15 = arith.maximumf %13, %14 : vector<1x128xf32>
    %16 = vector.broadcast %6 : vector<1x128xf32> to vector<128x128xf32>
    %17 = arith.subf %2, %16 : vector<128x128xf32>
    %cst_8 = arith.constant 9.99999974E-6 : f32
    %18 = vector.broadcast %cst_8 : f32 to vector<1x128xf32>
    %19 = arith.addf %15, %18 : vector<1x128xf32>
    %20 = math.rsqrt %19 : vector<1x128xf32>
    %21 = vector.broadcast %20 : vector<1x128xf32> to vector<128x128xf32>
    %22 = arith.mulf %17, %21 : vector<128x128xf32>
    %23 = arith.negf %22 : vector<128x128xf32>
    %24 = math.exp %23 : vector<128x128xf32>
    %cst_9 = arith.constant 1.000000e+00 : f32
    %25 = vector.broadcast %cst_9 : f32 to vector<128x128xf32>
    %26 = arith.addf %25, %24 : vector<128x128xf32>
    %27 = arith.divf %25, %26 : vector<128x128xf32>
    %28 = arith.mulf %22, %27 : vector<128x128xf32>
    %29 = arith.truncf %28 : vector<128x128xf32> to vector<128x128xbf16>
    %c0_10 = arith.constant 0 : index
    %c0_11 = arith.constant 0 : index
    %30 = vector.load %arg4[%c0_10, %c0_11] : memref<128x128xbf16, #tpu.memory_space<vmem>>, vector<128x128xbf16>
    %cst_12 = arith.constant dense<0.000000e+00> : vector<128x128xf32>
    %31 = tpu.matmul %29, %30, %cst_12 {dimension_numbers = #tpu.dot_dimension_numbers<[1], [0], [0], [1], [0, 0, 1, 1], [], []>} : vector<128x128xbf16>, vector<128x128xbf16>, vector<128x128xf32> -> vector<128x128xf32>
    %cst_13 = arith.constant dense<0.000000e+00> : vector<128xf32>
    %32 = vector.multi_reduction <add>, %31, %cst_13 [0] : vector<128x128xf32> to vector<128xf32>
    %33 = vector.shape_cast %32 : vector<128xf32> to vector<1x128xf32>
    %cst_14 = arith.constant 7.812500e-03 : f32
    %34 = vector.broadcast %cst_14 : f32 to vector<1x128xf32>
    %35 = arith.mulf %33, %34 : vector<1x128xf32>
    %36 = arith.mulf %31, %31 : vector<128x128xf32>
    %cst_15 = arith.constant dense<0.000000e+00> : vector<128xf32>
    %37 = vector.multi_reduction <add>, %36, %cst_15 [0] : vector<128x128xf32> to vector<128xf32>
    %38 = vector.shape_cast %37 : vector<128xf32> to vector<1x128xf32>
    %cst_16 = arith.constant 7.812500e-03 : f32
    %39 = vector.broadcast %cst_16 : f32 to vector<1x128xf32>
    %40 = arith.mulf %38, %39 : vector<1x128xf32>
    %41 = arith.mulf %35, %35 : vector<1x128xf32>
    %42 = arith.subf %40, %41 : vector<1x128xf32>
    %cst_17 = arith.constant 0.000000e+00 : f32
    %43 = vector.broadcast %cst_17 : f32 to vector<1x128xf32>
    %44 = arith.maximumf %42, %43 : vector<1x128xf32>
    %45 = vector.broadcast %35 : vector<1x128xf32> to vector<128x128xf32>
    %46 = arith.subf %31, %45 : vector<128x128xf32>
    %cst_18 = arith.constant 9.99999974E-6 : f32
    %47 = vector.broadcast %cst_18 : f32 to vector<1x128xf32>
    %48 = arith.addf %44, %47 : vector<1x128xf32>
    %49 = math.rsqrt %48 : vector<1x128xf32>
    %50 = vector.broadcast %49 : vector<1x128xf32> to vector<128x128xf32>
    %51 = arith.mulf %46, %50 : vector<128x128xf32>
    %52 = arith.negf %51 : vector<128x128xf32>
    %53 = math.exp %52 : vector<128x128xf32>
    %cst_19 = arith.constant 1.000000e+00 : f32
    %54 = vector.broadcast %cst_19 : f32 to vector<128x128xf32>
    %55 = arith.addf %54, %53 : vector<128x128xf32>
    %56 = arith.divf %54, %55 : vector<128x128xf32>
    %57 = arith.mulf %51, %56 : vector<128x128xf32>
    %58 = arith.truncf %57 : vector<128x128xf32> to vector<128x128xbf16>
    %c0_20 = arith.constant 0 : index
    %c0_21 = arith.constant 0 : index
    %59 = vector.load %arg5[%c0_20, %c0_21] : memref<128x128xbf16, #tpu.memory_space<vmem>>, vector<128x128xbf16>
    %cst_22 = arith.constant dense<0.000000e+00> : vector<128x128xf32>
    %60 = tpu.matmul %58, %59, %cst_22 {dimension_numbers = #tpu.dot_dimension_numbers<[1], [0], [0], [1], [0, 0, 1, 1], [], []>} : vector<128x128xbf16>, vector<128x128xbf16>, vector<128x128xf32> -> vector<128x128xf32>
    %cst_23 = arith.constant dense<0.000000e+00> : vector<128xf32>
    %61 = vector.multi_reduction <add>, %60, %cst_23 [0] : vector<128x128xf32> to vector<128xf32>
    %62 = vector.shape_cast %61 : vector<128xf32> to vector<1x128xf32>
    %cst_24 = arith.constant 7.812500e-03 : f32
    %63 = vector.broadcast %cst_24 : f32 to vector<1x128xf32>
    %64 = arith.mulf %62, %63 : vector<1x128xf32>
    %65 = arith.mulf %60, %60 : vector<128x128xf32>
    %cst_25 = arith.constant dense<0.000000e+00> : vector<128xf32>
    %66 = vector.multi_reduction <add>, %65, %cst_25 [0] : vector<128x128xf32> to vector<128xf32>
    %67 = vector.shape_cast %66 : vector<128xf32> to vector<1x128xf32>
    %cst_26 = arith.constant 7.812500e-03 : f32
    %68 = vector.broadcast %cst_26 : f32 to vector<1x128xf32>
    %69 = arith.mulf %67, %68 : vector<1x128xf32>
    %70 = arith.mulf %64, %64 : vector<1x128xf32>
    %71 = arith.subf %69, %70 : vector<1x128xf32>
    %cst_27 = arith.constant 0.000000e+00 : f32
    %72 = vector.broadcast %cst_27 : f32 to vector<1x128xf32>
    %73 = arith.maximumf %71, %72 : vector<1x128xf32>
    %74 = vector.broadcast %64 : vector<1x128xf32> to vector<128x128xf32>
    %75 = arith.subf %60, %74 : vector<128x128xf32>
    %cst_28 = arith.constant 9.99999974E-6 : f32
    %76 = vector.broadcast %cst_28 : f32 to vector<1x128xf32>
    %77 = arith.addf %73, %76 : vector<1x128xf32>
    %78 = math.rsqrt %77 : vector<1x128xf32>
    %79 = vector.broadcast %78 : vector<1x128xf32> to vector<128x128xf32>
    %80 = arith.mulf %75, %79 : vector<128x128xf32>
    %81 = arith.negf %80 : vector<128x128xf32>
    %82 = math.exp %81 : vector<128x128xf32>
    %cst_29 = arith.constant 1.000000e+00 : f32
    %83 = vector.broadcast %cst_29 : f32 to vector<128x128xf32>
    %84 = arith.addf %83, %82 : vector<128x128xf32>
    %85 = arith.divf %83, %84 : vector<128x128xf32>
    %86 = arith.mulf %80, %85 : vector<128x128xf32>
    %87 = arith.truncf %86 : vector<128x128xf32> to vector<128x128xbf16>
    %c0_30 = arith.constant 0 : index
    %c0_31 = arith.constant 0 : index
    %88 = vector.load %arg6[%c0_30, %c0_31] : memref<128x256xbf16, #tpu.memory_space<vmem>>, vector<128x256xbf16>
    %cst_32 = arith.constant dense<0.000000e+00> : vector<128x256xf32>
    %89 = tpu.matmul %87, %88, %cst_32 {dimension_numbers = #tpu.dot_dimension_numbers<[1], [0], [0], [1], [0, 0, 1, 1], [], []>} : vector<128x128xbf16>, vector<128x256xbf16>, vector<128x256xf32> -> vector<128x256xf32>
    %90 = vector.extract_strided_slice %89 {offsets = [0, 0], sizes = [128, 128], strides = [1, 1]} : vector<128x256xf32> to vector<128x128xf32>
    %cst_33 = arith.constant dense<0.000000e+00> : vector<128xf32>
    %91 = vector.multi_reduction <add>, %90, %cst_33 [0] : vector<128x128xf32> to vector<128xf32>
    %92 = vector.shape_cast %91 : vector<128xf32> to vector<1x128xf32>
    %cst_34 = arith.constant 7.812500e-03 : f32
    %93 = vector.broadcast %cst_34 : f32 to vector<1x128xf32>
    %94 = arith.mulf %92, %93 : vector<1x128xf32>
    %95 = arith.mulf %90, %90 : vector<128x128xf32>
    %cst_35 = arith.constant dense<0.000000e+00> : vector<128xf32>
    %96 = vector.multi_reduction <add>, %95, %cst_35 [0] : vector<128x128xf32> to vector<128xf32>
    %97 = vector.shape_cast %96 : vector<128xf32> to vector<1x128xf32>
    %cst_36 = arith.constant 7.812500e-03 : f32
    %98 = vector.broadcast %cst_36 : f32 to vector<1x128xf32>
    %99 = arith.mulf %97, %98 : vector<1x128xf32>
    %100 = vector.extract_strided_slice %89 {offsets = [0, 128], sizes = [128, 128], strides = [1, 1]} : vector<128x256xf32> to vector<128x128xf32>
    %cst_37 = arith.constant dense<0.000000e+00> : vector<128xf32>
    %101 = vector.multi_reduction <add>, %100, %cst_37 [0] : vector<128x128xf32> to vector<128xf32>
    %102 = vector.shape_cast %101 : vector<128xf32> to vector<1x128xf32>
    %cst_38 = arith.constant 7.812500e-03 : f32
    %103 = vector.broadcast %cst_38 : f32 to vector<1x128xf32>
    %104 = arith.mulf %102, %103 : vector<1x128xf32>
    %105 = arith.mulf %100, %100 : vector<128x128xf32>
    %cst_39 = arith.constant dense<0.000000e+00> : vector<128xf32>
    %106 = vector.multi_reduction <add>, %105, %cst_39 [0] : vector<128x128xf32> to vector<128xf32>
    %107 = vector.shape_cast %106 : vector<128xf32> to vector<1x128xf32>
    %cst_40 = arith.constant 7.812500e-03 : f32
    %108 = vector.broadcast %cst_40 : f32 to vector<1x128xf32>
    %109 = arith.mulf %107, %108 : vector<1x128xf32>
    %110 = tpu.concatenate %94, %104 in 1 : vector<1x128xf32>, vector<1x128xf32> -> vector<1x256xf32>
    %111 = tpu.concatenate %99, %109 in 1 : vector<1x128xf32>, vector<1x128xf32> -> vector<1x256xf32>
    %112 = arith.mulf %110, %110 : vector<1x256xf32>
    %113 = arith.subf %111, %112 : vector<1x256xf32>
    %cst_41 = arith.constant 0.000000e+00 : f32
    %114 = vector.broadcast %cst_41 : f32 to vector<1x256xf32>
    %115 = arith.maximumf %113, %114 : vector<1x256xf32>
    %116 = vector.broadcast %110 : vector<1x256xf32> to vector<128x256xf32>
    %117 = arith.subf %89, %116 : vector<128x256xf32>
    %cst_42 = arith.constant 9.99999974E-6 : f32
    %118 = vector.broadcast %cst_42 : f32 to vector<1x256xf32>
    %119 = arith.addf %115, %118 : vector<1x256xf32>
    %120 = math.rsqrt %119 : vector<1x256xf32>
    %121 = vector.broadcast %120 : vector<1x256xf32> to vector<128x256xf32>
    %122 = arith.mulf %117, %121 : vector<128x256xf32>
    %123 = arith.negf %122 : vector<128x256xf32>
    %124 = math.exp %123 : vector<128x256xf32>
    %cst_43 = arith.constant 1.000000e+00 : f32
    %125 = vector.broadcast %cst_43 : f32 to vector<128x256xf32>
    %126 = arith.addf %125, %124 : vector<128x256xf32>
    %127 = arith.divf %125, %126 : vector<128x256xf32>
    %128 = arith.mulf %122, %127 : vector<128x256xf32>
    %c0_44 = arith.constant 0 : index
    %c0_45 = arith.constant 0 : index
    %129 = vector.load %arg1[%c0_44, %c0_45] : memref<128x256xi8, #tpu.memory_space<vmem>>, vector<128x256xi8>
    %130 = arith.sitofp %129 : vector<128x256xi8> to vector<128x256xf32>
    %cst_46 = arith.constant 1.66666663 : f32
    %131 = vector.broadcast %cst_46 : f32 to vector<128x256xf32>
    %132 = arith.mulf %130, %131 : vector<128x256xf32>
    %133 = arith.mulf %128, %132 : vector<128x256xf32>
    %134 = arith.truncf %133 : vector<128x256xf32> to vector<128x256xbf16>
    %c0_47 = arith.constant 0 : index
    %c0_48 = arith.constant 0 : index
    %135 = vector.load %arg7[%c0_47, %c0_48] : memref<256x256xbf16, #tpu.memory_space<vmem>>, vector<256x256xbf16>
    %cst_49 = arith.constant dense<0.000000e+00> : vector<128x256xf32>
    %136 = tpu.matmul %134, %135, %cst_49 {dimension_numbers = #tpu.dot_dimension_numbers<[1], [0], [0], [1], [0, 0, 1, 1], [], []>} : vector<128x256xbf16>, vector<256x256xbf16>, vector<128x256xf32> -> vector<128x256xf32>
    %137 = vector.extract_strided_slice %136 {offsets = [0, 0], sizes = [128, 128], strides = [1, 1]} : vector<128x256xf32> to vector<128x128xf32>
    %cst_50 = arith.constant dense<0.000000e+00> : vector<128xf32>
    %138 = vector.multi_reduction <add>, %137, %cst_50 [0] : vector<128x128xf32> to vector<128xf32>
    %139 = vector.shape_cast %138 : vector<128xf32> to vector<1x128xf32>
    %cst_51 = arith.constant 7.812500e-03 : f32
    %140 = vector.broadcast %cst_51 : f32 to vector<1x128xf32>
    %141 = arith.mulf %139, %140 : vector<1x128xf32>
    %142 = arith.mulf %137, %137 : vector<128x128xf32>
    %cst_52 = arith.constant dense<0.000000e+00> : vector<128xf32>
    %143 = vector.multi_reduction <add>, %142, %cst_52 [0] : vector<128x128xf32> to vector<128xf32>
    %144 = vector.shape_cast %143 : vector<128xf32> to vector<1x128xf32>
    %cst_53 = arith.constant 7.812500e-03 : f32
    %145 = vector.broadcast %cst_53 : f32 to vector<1x128xf32>
    %146 = arith.mulf %144, %145 : vector<1x128xf32>
    %147 = vector.extract_strided_slice %136 {offsets = [0, 128], sizes = [128, 128], strides = [1, 1]} : vector<128x256xf32> to vector<128x128xf32>
    %cst_54 = arith.constant dense<0.000000e+00> : vector<128xf32>
    %148 = vector.multi_reduction <add>, %147, %cst_54 [0] : vector<128x128xf32> to vector<128xf32>
    %149 = vector.shape_cast %148 : vector<128xf32> to vector<1x128xf32>
    %cst_55 = arith.constant 7.812500e-03 : f32
    %150 = vector.broadcast %cst_55 : f32 to vector<1x128xf32>
    %151 = arith.mulf %149, %150 : vector<1x128xf32>
    %152 = arith.mulf %147, %147 : vector<128x128xf32>
    %cst_56 = arith.constant dense<0.000000e+00> : vector<128xf32>
    %153 = vector.multi_reduction <add>, %152, %cst_56 [0] : vector<128x128xf32> to vector<128xf32>
    %154 = vector.shape_cast %153 : vector<128xf32> to vector<1x128xf32>
    %cst_57 = arith.constant 7.812500e-03 : f32
    %155 = vector.broadcast %cst_57 : f32 to vector<1x128xf32>
    %156 = arith.mulf %154, %155 : vector<1x128xf32>
    %157 = tpu.concatenate %141, %151 in 1 : vector<1x128xf32>, vector<1x128xf32> -> vector<1x256xf32>
    %158 = tpu.concatenate %146, %156 in 1 : vector<1x128xf32>, vector<1x128xf32> -> vector<1x256xf32>
    %159 = arith.mulf %157, %157 : vector<1x256xf32>
    %160 = arith.subf %158, %159 : vector<1x256xf32>
    %cst_58 = arith.constant 0.000000e+00 : f32
    %161 = vector.broadcast %cst_58 : f32 to vector<1x256xf32>
    %162 = arith.maximumf %160, %161 : vector<1x256xf32>
    %163 = vector.broadcast %157 : vector<1x256xf32> to vector<128x256xf32>
    %164 = arith.subf %136, %163 : vector<128x256xf32>
    %cst_59 = arith.constant 9.99999974E-6 : f32
    %165 = vector.broadcast %cst_59 : f32 to vector<1x256xf32>
    %166 = arith.addf %162, %165 : vector<1x256xf32>
    %167 = math.rsqrt %166 : vector<1x256xf32>
    %168 = vector.broadcast %167 : vector<1x256xf32> to vector<128x256xf32>
    %169 = arith.mulf %164, %168 : vector<128x256xf32>
    %170 = arith.negf %169 : vector<128x256xf32>
    %171 = math.exp %170 : vector<128x256xf32>
    %cst_60 = arith.constant 1.000000e+00 : f32
    %172 = vector.broadcast %cst_60 : f32 to vector<128x256xf32>
    %173 = arith.addf %172, %171 : vector<128x256xf32>
    %174 = arith.divf %172, %173 : vector<128x256xf32>
    %175 = arith.mulf %169, %174 : vector<128x256xf32>
    %c0_61 = arith.constant 0 : index
    %c0_62 = arith.constant 0 : index
    %176 = vector.load %arg2[%c0_61, %c0_62] : memref<128x256xi8, #tpu.memory_space<vmem>>, vector<128x256xi8>
    %177 = arith.sitofp %176 : vector<128x256xi8> to vector<128x256xf32>
    %cst_63 = arith.constant 1.66666663 : f32
    %178 = vector.broadcast %cst_63 : f32 to vector<128x256xf32>
    %179 = arith.mulf %177, %178 : vector<128x256xf32>
    %180 = arith.mulf %175, %179 : vector<128x256xf32>
    %181 = arith.truncf %180 : vector<128x256xf32> to vector<128x256xbf16>
    %c0_64 = arith.constant 0 : index
    %c0_65 = arith.constant 0 : index
    %182 = vector.load %arg8[%c0_64, %c0_65] : memref<256x256xbf16, #tpu.memory_space<vmem>>, vector<256x256xbf16>
    %cst_66 = arith.constant dense<0.000000e+00> : vector<128x256xf32>
    %183 = tpu.matmul %181, %182, %cst_66 {dimension_numbers = #tpu.dot_dimension_numbers<[1], [0], [0], [1], [0, 0, 1, 1], [], []>} : vector<128x256xbf16>, vector<256x256xbf16>, vector<128x256xf32> -> vector<128x256xf32>
    %c0_67 = arith.constant 0 : index
    %c0_68 = arith.constant 0 : index
    %184 = vector.load %arg9[%c0_67, %c0_68] : memref<1x256xf32, #tpu.memory_space<vmem>>, vector<1x256xf32>
    %185 = vector.broadcast %184 : vector<1x256xf32> to vector<128x256xf32>
    %186 = arith.addf %183, %185 : vector<128x256xf32>
    %c0_69 = arith.constant 0 : index
    %c0_70 = arith.constant 0 : index
    %187 = vector.load %arg10[%c0_69, %c0_70] : memref<128x256xf32, #tpu.memory_space<vmem>>, vector<128x256xf32>
    tpu.vector_store %arg10[%c0_69, %c0_70], %186 {strides = array<i32>} : memref<128x256xf32, #tpu.memory_space<vmem>>, vector<128x256xf32>,
    return
  }
}

</mosaic_0001>

<bundles_post_ra>
// kernel: ann_forward.1
= control target key start
LH: loop header
LB: loop body
LE: loop exit
PB: predicated region body
PF: predicated region fallthrough
CT: control target
= control target key end

     0   :  { %s6903_s3 = inlined_call_operand.vmem [shape: bf16[384,128], index: 3, kind: input, shape index: {}]   ;;  %s6904_s0 = inlined_call_operand.vmem [shape: bf16[128,384], index: 0, kind: input, shape index: {}]   ;;  %s6905_s4 = inlined_call_operand.vmem [shape: bf16[128,128], index: 4, kind: input, shape index: {}]   ;;  %s6906_s5 = inlined_call_operand.vmem [shape: bf16[128,128], index: 5, kind: input, shape index: {}]   ;;  %s6907_s6 = inlined_call_operand.vmem [shape: bf16[128,256], index: 6, kind: input, shape index: {}]   ;;  %s6908_s7 = inlined_call_operand.vmem [shape: bf16[256,256], index: 7, kind: input, shape index: {}]   ;;  %s6909_s1 = inlined_call_operand.vmem [shape: s8[128,256], index: 1, kind: input, shape index: {}]   ;;  %s6910_s8 = inlined_call_operand.vmem [shape: bf16[256,256], index: 8, kind: input, shape index: {}]   ;;  %s6911_s2 = inlined_call_operand.vmem [shape: s8[128,256], index: 2, kind: input, shape index: {}]   ;;  %s6912_s9 = inlined_call_operand.vmem [shape: f32[1,256], index: 9, kind: input, shape index: {}]   ;;  %s6913_s10 = inlined_call_operand.vmem [shape: f32[128,256], index: 10, kind: output, shape index: {}]  }
   0x1   :  { %v4059_v0 = vld [vmem:[%s6903_s3 + $0x78] sm:$0xff]   ;;  %v4062_v3 = vld [vmem:[%s6903_s3 + $0x70] sm:$0xff]   ;;  %v4065_v6 = vld [vmem:[%s6903_s3 + $0x68] sm:$0xff]  }
   0x2   :  { %v4060_v1 = vld [vmem:[%s6903_s3 + $0x38] sm:$0xff]   ;;  %3850 = vmatprep.subr.bf16.mxu0 %v4059_v0  ;;  %v4063_v4 = vld [vmem:[%s6903_s3 + $0x30] sm:$0xff]   ;;  %v4066_v7 = vld [vmem:[%s6903_s3 + $0x28] sm:$0xff]  }
   0x3   :  { %v4061_v2 = vld [vmem:[%s6903_s3 + $0xb8] sm:$0xff]   ;;  %3851 = vmatpush3.bf16.msra.mxu0 %v4060_v1  ;;  %v4064_v5 = vld [vmem:[%s6903_s3 + $0xb0] sm:$0xff]   ;;  %v4067_v8 = vld [vmem:[%s6903_s3 + $0xa8] sm:$0xff]  }
   0x4   :  { %3962 = vmatprep.subr.bf16.mxu1 %v4061_v2  ;;  %3852 = vmatprep.subr.bf16.mxu0 %v4062_v3  ;;  %v4068_v9 = vld [vmem:[%s6903_s3 + $0x60] sm:$0xff]   ;;  %v4071_v12 = vld [vmem:[%s6903_s3 + $0x58] sm:$0xff]   ;;  %v4074_v15 = vld [vmem:[%s6903_s3 + $0x50] sm:$0xff]  }
   0x5   :  { %3963 = vmatpush3.bf16.msra.mxu1 %v4061_v2  ;;  %v4069_v10 = vld [vmem:[%s6903_s3 + $0x20] sm:$0xff]   ;;  %v4073_v13 = vld [vmem:[%s6903_s3 + $0x98] sm:$0xff]   ;;  %v4076_v16 = vld [vmem:[%s6903_s3 + $0x90] sm:$0xff]  }
   0x6   :  { %3964 = vmatprep.subr.bf16.mxu1 %v4064_v5  ;;  %v4070_v11 = vld [vmem:[%s6903_s3 + $0xa0] sm:$0xff]   ;;  %v4072_v14 = vld [vmem:[%s6903_s3 + $0x18] sm:$0xff]   ;;  %v4075_v17 = vld [vmem:[%s6903_s3 + $0x10] sm:$0xff]  }
   0x7   :  { %3853 = vmatpush3.bf16.msra.mxu0 %v4063_v4  ;;  %v4077_v18 = vld [vmem:[%s6903_s3 + $0x48] sm:$0xff]   ;;  %v4080_v21 = vld [vmem:[%s6903_s3 + $0x40] sm:$0xff]   ;;  %v4095_v32 = vld [vmem:[%s6904_s0 + $0x50] ss:$12 sps:$4 sm:$0xff]  }
   0x8   :  { %3854 = vmatprep.subr.bf16.mxu0 %v4065_v6  ;;  %v4078_v19 = vld [vmem:[%s6903_s3 + $0x8] sm:$0xff]   ;;  %v4082_v22 = vld [vmem:[%s6903_s3 + $0x80] sm:$0xff]   ;;  %v4093_v34 = vld [vmem:[%s6904_s0 + $0x30] ss:$12 sps:$4 sm:$0xff]  }
   0x9   :  { %3965 = vmatpush3.bf16.msra.mxu1 %v4064_v5  ;;  %v4079_v20 = vld [vmem:[%s6903_s3 + $0x88] sm:$0xff]   ;;  %v4085_v23 = vld [vmem:[%s6904_s0 + $0x4] ss:$12 sps:$4 sm:$0xff]   ;;  %v4091_v31 = vld [vmem:[%s6904_s0 + $0x34] ss:$12 sps:$4 sm:$0xff]  }
   0xa   :  { %3966 = vmatprep.subr.bf16.mxu1 %v4067_v8  ;;  %v4086_v24 = vld [vmem:[%s6904_s0 + $0x8] ss:$12 sps:$4 sm:$0xff]   ;;  %v4081_v25 = vld [vmem:[%s6903_s3] sm:$0xff]   ;;  %420 = vmatprep.mubr.bf16.mxu0 %v4085_v23  ;;  %v4096_v35 = vld [vmem:[%s6904_s0 + $0x4c] ss:$12 sps:$4 sm:$0xff]  }
   0xb   :  { %3855 = vmatpush3.bf16.msra.mxu0 %v4066_v7  ;;  %3978 = vmatprep.mubr.bf16.mxu1 %v4086_v24  ;;  %v4083_v26 = vld [vmem:[%s6904_s0] ss:$12 sps:$4 sm:$0xff]   ;;  %v4088_v27 = vld [vmem:[%s6904_s0 + $0x1c] ss:$12 sps:$4 sm:$0xff]   ;;  %v4094_v29 = vld [vmem:[%s6904_s0 + $0x38] ss:$12 sps:$4 sm:$0xff]  }
   0xc   :  { %3856 = vmatprep.subr.bf16.mxu0 %v4068_v9  ;;  %v4087_v28 = vld [vmem:[%s6904_s0 + $0x20] ss:$12 sps:$4 sm:$0xff]   ;;  %v4090_v30 = vld [vmem:[%s6904_s0 + $0x18] ss:$12 sps:$4 sm:$0xff]   ;;  %v4102_v33 = vld [vmem:[%s6904_s0 + $0x68] ss:$12 sps:$4 sm:$0xff]  }
   0xd   :  { %3967 = vmatpush3.bf16.msra.mxu1 %v4067_v8  ;;  %v4103_v36 = vld [vmem:[%s6904_s0 + $0x80] ss:$12 sps:$4 sm:$0xff]   ;;  %v4109_v37 = vld [vmem:[%s6904_s0 + $0x98] ss:$12 sps:$4 sm:$0xff]   ;;  %v4098_v38 = vld [vmem:[%s6904_s0 + $0x48] ss:$12 sps:$4 sm:$0xff]  }
   0xe   :  { %3968 = vmatprep.subr.bf16.mxu1 %v4070_v11  ;;  %v4099_v39 = vld [vmem:[%s6904_s0 + $0x64] ss:$12 sps:$4 sm:$0xff]   ;;  %v4101_v41 = vld [vmem:[%s6904_s0 + $0x60] ss:$12 sps:$4 sm:$0xff]   ;;  %v4104_v42 = vld [vmem:[%s6904_s0 + $0x7c] ss:$12 sps:$4 sm:$0xff]  }
   0xf   :  { %3857 = vmatpush3.bf16.msra.mxu0 %v4069_v10  ;;  %v4111_v40 = vld [vmem:[%s6904_s0 + $0xb0] ss:$12 sps:$4 sm:$0xff]   ;;  %v4106_v43 = vld [vmem:[%s6904_s0 + $0x78] ss:$12 sps:$4 sm:$0xff]   ;;  %v4107_v44 = vld [vmem:[%s6904_s0 + $0x94] ss:$12 sps:$4 sm:$0xff]  }
  0x10   :  { %3858 = vmatprep.subr.bf16.mxu0 %v4071_v12  ;;  %v4110_v45 = vld [vmem:[%s6904_s0 + $0x90] ss:$12 sps:$4 sm:$0xff]   ;;  %v4112_v46 = vld [vmem:[%s6904_s0 + $0xac] ss:$12 sps:$4 sm:$0xff]   ;;  %v4114_v47 = vld [vmem:[%s6904_s0 + $0xa8] ss:$12 sps:$4 sm:$0xff]  }
  0x11   :  { %3969 = vmatpush3.bf16.msra.mxu1 %v4070_v11  ;;  %v4115_v48 = vld [vmem:[%s6905_s4 + $0x38] sm:$0xff]   ;;  %v4116_v49 = vld [vmem:[%s6905_s4 + $0x30] sm:$0xff]   ;;  %v4117_v50 = vld [vmem:[%s6905_s4 + $0x28] sm:$0xff]  }
  0x12   :  { %3970 = vmatprep.subr.bf16.mxu1 %v4073_v13  ;;  %v4118_v51 = vld [vmem:[%s6905_s4 + $0x20] sm:$0xff]   ;;  %v4119_v52 = vld [vmem:[%s6905_s4 + $0x18] sm:$0xff]   ;;  %v4120_v53 = vld [vmem:[%s6905_s4 + $0x10] sm:$0xff]  }
  0x13   :  { %3859 = vmatpush3.bf16.msra.mxu0 %v4072_v14  ;;  %v4121_v54 = vld [vmem:[%s6905_s4 + $0x8] sm:$0xff]   ;;  %v4122_v55 = vld [vmem:[%s6905_s4] sm:$0xff]  }
  0x14   :  { %3860 = vmatprep.subr.bf16.mxu0 %v4074_v15 }
  0x15   :  { %3971 = vmatpush3.bf16.msra.mxu1 %v4073_v13 }
  0x16   :  { %3972 = vmatprep.subr.bf16.mxu1 %v4076_v16 }
  0x17   :  { %3861 = vmatpush3.bf16.msra.mxu0 %v4075_v17 }
  0x18   :  { %3862 = vmatprep.subr.bf16.mxu0 %v4077_v18 }
  0x19   :  { %3973 = vmatpush3.bf16.msra.mxu1 %v4076_v16 }
  0x1a   :  { %3974 = vmatprep.subr.bf16.mxu1 %v4079_v20 }
  0x1b   :  { %3863 = vmatpush3.bf16.msra.mxu0 %v4078_v19 }
  0x1c   :  { %3864 = vmatprep.subr.bf16.mxu0 %v4080_v21 }
  0x1d   :  { %3975 = vmatpush3.bf16.msra.mxu1 %v4079_v20 }
  0x1e   :  { %3976 = vmatprep.subr.bf16.mxu1 %v4082_v22 }
  0x1f   :  { %3865 = vmatpush3.bf16.msra.mxu0 %v4081_v25 }
  0x21   :  { %3977 = vmatpush3.bf16.msra.mxu1 %v4082_v22 }
  0x22   :  { %421 = vmatmul.mubr.bf16.vlgmr.msra.gmra.mxu0 %v4083_v26  ;;  %3994 = vmatprep.subr.bf16.mxu1 %v4115_v48 }
  0x23   :  { %428 = vmatprep.mubr.bf16.mxu0 %v4088_v27 }
  0x24   :  { %3979 = vmatmul.mubr.bf16.vlgmr.msra.gmra.mxu1 %v4087_v28 }
  0x25   :  { %3982 = vmatprep.mubr.bf16.mxu1 %v4094_v29  ;;  %3995 = vmatpush3.bf16.msra.mxu1 %v4115_v48 }
  0x26   :  { %3996 = vmatprep.subr.bf16.mxu1 %v4116_v49 }
  0x29   :  { %3997 = vmatpush3.bf16.msra.mxu1 %v4116_v49 }
  0x2a   :  { %429 = vmatmul.mubr.bf16.gmra.mxu0 %v4090_v30  ;;  %3998 = vmatprep.subr.bf16.mxu1 %v4117_v50 }
  0x2b   :  { %436 = vmatprep.mubr.bf16.mxu0 %v4091_v31 }
  0x2c   :  { %3983 = vmatmul.mubr.bf16.gmra.mxu1 %v4095_v32 }
  0x2d   :  { %3986 = vmatprep.mubr.bf16.mxu1 %v4102_v33  ;;  %3999 = vmatpush3.bf16.msra.mxu1 %v4117_v50 }
  0x2e   :  { %4000 = vmatprep.subr.bf16.mxu1 %v4118_v51 }
  0x31   :  { %4001 = vmatpush3.bf16.msra.mxu1 %v4118_v51 }
  0x32   :  { %437 = vmatmul.mubr.bf16.gmra.mxu0 %v4093_v34  ;;  %4002 = vmatprep.subr.bf16.mxu1 %v4119_v52 }
  0x33   :  { %444 = vmatprep.mubr.bf16.mxu0 %v4096_v35 }
  0x34   :  { %3987 = vmatmul.mubr.bf16.gmra.mxu1 %v4103_v36 }
  0x35   :  { %3990 = vmatprep.mubr.bf16.mxu1 %v4109_v37  ;;  %4003 = vmatpush3.bf16.msra.mxu1 %v4119_v52 }
  0x36   :  { %4004 = vmatprep.subr.bf16.mxu1 %v4120_v53 }
  0x39   :  { %4005 = vmatpush3.bf16.msra.mxu1 %v4120_v53 }
  0x3a   :  { %445 = vmatmul.mubr.bf16.gmra.mxu0 %v4098_v38  ;;  %4006 = vmatprep.subr.bf16.mxu1 %v4121_v54 }
  0x3b   :  { %452 = vmatprep.mubr.bf16.mxu0 %v4099_v39 }
  0x3c   :  { %3991 = vmatmul.mubr.bf16.gmra.mxu1 %v4111_v40 }
  0x3d   :  { %4007 = vmatpush3.bf16.msra.mxu1 %v4121_v54 }
  0x3e   :  { %4008 = vmatprep.subr.bf16.mxu1 %v4122_v55 }
  0x41   :  { %4009 = vmatpush3.bf16.msra.mxu1 %v4122_v55 }
  0x42   :  { %453 = vmatmul.mubr.bf16.gmra.mxu0 %v4101_v41 }
  0x43   :  { %460 = vmatprep.mubr.bf16.mxu0 %v4104_v42 }
  0x4a   :  { %461 = vmatmul.mubr.bf16.gmra.mxu0 %v4106_v43 }
  0x4b   :  { %468 = vmatprep.mubr.bf16.mxu0 %v4107_v44 }
  0x52   :  { %469 = vmatmul.mubr.bf16.gmra.mxu0 %v4110_v45 }
  0x53   :  { %476 = vmatprep.mubr.bf16.mxu0 %v4112_v46 }
  0x5a   :  { %477 = vmatmul.mubr.bf16.gmra.mxu0 %v4114_v47 }
  0xe2   :  { %v3866_v56 = vpop.f32.mrf.mxu0 }
  0xe4   :  { %v3867_v57 = vpop.f32.mrf.mxu0  ;;  %v3980_v58 = vpop.f32.mrf.mxu1 }
  0xe5   :  { %v3868_v16 = vadd.f32 %v3867_v57, %v3866_v56 }
  0xe6   :  { %v3869_v59 = vpop.f32.mrf.mxu0  ;;  %v519_v60 = vpop.f32.mrf.mxu1 }
  0xe7   :  { %v4939_v23 = vadd.f32 %v3868_v16, %v519_v60 }
  0xe8   :  { %v3870_v61 = vpop.f32.mrf.mxu0  ;;  %v3981_v63 = vpop.f32.mrf.mxu1 }
  0xe9   :  { %v3871_v13 = vadd.f32 %v3870_v61, %v3869_v59  ;;  %v604_v32 = vmul.f32 %v4939_v23, %v4939_v23 }
  0xea   :  { %v3872_v62 = vpop.f32.mrf.mxu0  ;;  %v522_v2 = vpop.f32.mrf.mxu1 }
  0xeb   :  { %v4937_v20 = vadd.f32 %v3871_v13, %v522_v2 }
  0xec   :  { %v3873_v0 = vpop.f32.mrf.mxu0  ;;  %v3984_v5 = vpop.f32.mrf.mxu1 }
  0xed   :  { %v3874_v17 = vadd.f32 %v3873_v0, %v3872_v62  ;;  %v605_v28 = vmul.f32 %v4937_v20, %v4937_v20  ;;  %v582_v38 = vadd.f32 %v4937_v20, %v4939_v23 }
  0xee   :  { %v3875_v1 = vpop.f32.mrf.mxu0  ;;  %v535_v8 = vpop.f32.mrf.mxu1 }
  0xef   :  { %v4941_v24 = vadd.f32 %v3980_v58, %v3874_v17  ;;  %v620_v39 = vadd.f32 %v605_v28, %v604_v32 }
  0xf0   :  { %v3876_v3 = vpop.f32.mrf.mxu0  ;;  %v3985_v10 = vpop.f32.mrf.mxu1 }
  0xf1   :  { %v3877_v21 = vadd.f32 %v3876_v3, %v3875_v1  ;;  %v606_v33 = vmul.f32 %v4941_v24, %v4941_v24  ;;  %v583_v44 = vadd.f32 %v582_v38, %v4941_v24 }
  0xf2   :  { %v3878_v4 = vpop.f32.mrf.mxu0  ;;  %v538_v14 = vpop.f32.mrf.mxu1 }
  0xf3   :  { %v4945_v29 = vadd.f32 %v3981_v63, %v3877_v21  ;;  %v621_v45 = vadd.f32 %v620_v39, %v606_v33 }
  0xf4   :  { %v3879_v6 = vpop.f32.mrf.mxu0  ;;  %v3988_v19 = vpop.f32.mrf.mxu1 }
  0xf5   :  { %v3880_v25 = vadd.f32 %v3879_v6, %v3878_v4  ;;  %v607_v40 = vmul.f32 %v4945_v29, %v4945_v29  ;;  %v584_v51 = vadd.f32 %v583_v44, %v4945_v29 }
  0xf6   :  { %v3881_v7 = vpop.f32.mrf.mxu0  ;;  %v551_v27 = vpop.f32.mrf.mxu1 }
  0xf7   :  { %v4951_v34 = vadd.f32 %v3880_v25, %v535_v8  ;;  %v622_v52 = vadd.f32 %v621_v45, %v607_v40 }
  0xf8   :  { %v3882_v9 = vpop.f32.mrf.mxu0  ;;  %v3989_v37 = vpop.f32.mrf.mxu1 }
  0xf9   :  { %v3883_v30 = vadd.f32 %v3882_v9, %v3881_v7  ;;  %v608_v46 = vmul.f32 %v4951_v34, %v4951_v34  ;;  %v585_v57 = vadd.f32 %v584_v51, %v4951_v34 }
  0xfa   :  { %v3884_v11 = vpop.f32.mrf.mxu0  ;;  %v554_v49 = vpop.f32.mrf.mxu1 }
  0xfb   :  { %v4957_v41 = vadd.f32 %v3883_v30, %v538_v14  ;;  %v623_v59 = vadd.f32 %v622_v52, %v608_v46 }
  0xfc   :  { %v3885_v12 = vpop.f32.mrf.mxu0  ;;  %v3992_v56 = vpop.f32.mrf.mxu1 }
  0xfd   :  { %v3886_v35 = vadd.f32 %v3885_v12, %v3884_v11  ;;  %v609_v53 = vmul.f32 %v4957_v41, %v4957_v41  ;;  %v586_v63 = vadd.f32 %v585_v57, %v4957_v41 }
  0xfe   :  { %v3887_v15 = vpop.f32.mrf.mxu0  ;;  %v567_v4 = vpop.f32.mrf.mxu1 }
  0xff   :  { %v4962_v47 = vadd.f32 %v3984_v5, %v3886_v35  ;;  %v624_v1 = vadd.f32 %v623_v59, %v609_v53 }
 0x100   :  { %v3888_v18 = vpop.f32.mrf.mxu0  ;;  %v3993_v16 = vpop.f32.mrf.mxu1 }
 0x101   :  { %v3889_v42 = vadd.f32 %v3888_v18, %v3887_v15  ;;  %v610_v60 = vmul.f32 %v4962_v47, %v4962_v47  ;;  %v587_v5 = vadd.f32 %v586_v63, %v4962_v47 }
 0x102   :  { %v3890_v22 = vpop.f32.mrf.mxu0  ;;  %v570_v30 = vpop.f32.mrf.mxu1 }
 0x103   :  { %v4967_v54 = vadd.f32 %v3985_v10, %v3889_v42  ;;  %v625_v8 = vadd.f32 %v624_v1, %v610_v60 }
 0x104   :  { %v3891_v26 = vpop.f32.mrf.mxu0 }
 0x105   :  { %v3892_v48 = vadd.f32 %v3891_v26, %v3890_v22  ;;  %v611_v2 = vmul.f32 %v4967_v54, %v4967_v54  ;;  %v588_v11 = vadd.f32 %v587_v5, %v4967_v54 }
 0x106   :  { %v3893_v31 = vpop.f32.mrf.mxu0 }
 0x107   :  { %v4972_v61 = vadd.f32 %v3892_v48, %v551_v27  ;;  %v626_v14 = vadd.f32 %v625_v8, %v611_v2 }
 0x108   :  { %v3894_v36 = vpop.f32.mrf.mxu0 }
 0x109   :  { %v3895_v58 = vadd.f32 %v3894_v36, %v3893_v31  ;;  %v612_v9 = vmul.f32 %v4972_v61, %v4972_v61  ;;  %v589_v17 = vadd.f32 %v588_v11, %v4972_v61 }
 0x10a   :  { %v3896_v43 = vpop.f32.mrf.mxu0 }
 0x10b   :  { %v4978_v6 = vadd.f32 %v3895_v58, %v554_v49  ;;  %v627_v22 = vadd.f32 %v626_v14, %v612_v9 }
 0x10c   :  { %v3897_v50 = vpop.f32.mrf.mxu0 }
 0x10d   :  { %v3898_v0 = vadd.f32 %v3897_v50, %v3896_v43  ;;  %v613_v18 = vmul.f32 %v4978_v6, %v4978_v6  ;;  %v590_v26 = vadd.f32 %v589_v17, %v4978_v6 }
 0x10e   :  { %v3899_v55 = vpop.f32.mrf.mxu0 }
 0x10f   :  { %v4983_v12 = vadd.f32 %v3988_v19, %v3898_v0  ;;  %v628_v32 = vadd.f32 %v627_v22, %v613_v18 }
 0x110   :  { %v3900_v62 = vpop.f32.mrf.mxu0 }
 0x111   :  { %v3901_v7 = vadd.f32 %v3900_v62, %v3899_v55  ;;  %v614_v27 = vmul.f32 %v4983_v12, %v4983_v12  ;;  %v591_v33 = vadd.f32 %v590_v26, %v4983_v12 }
 0x112   :  { %v3902_v3 = vpop.f32.mrf.mxu0 }
 0x113   :  { %v4988_v21 = vadd.f32 %v3989_v37, %v3901_v7  ;;  %v629_v38 = vadd.f32 %v628_v32, %v614_v27 }
 0x114   :  { %v3903_v10 = vpop.f32.mrf.mxu0 }
 0x115   :  { %v3904_v13 = vadd.f32 %v3903_v10, %v3902_v3  ;;  %v615_v35 = vmul.f32 %v4988_v21, %v4988_v21  ;;  %v592_v39 = vadd.f32 %v591_v33, %v4988_v21 }
 0x116   :  { %v3905_v15 = vpop.f32.mrf.mxu0 }
 0x117   :  { %v4993_v19 = vadd.f32 %v3904_v13, %v567_v4  ;;  %v630_v45 = vadd.f32 %v629_v38, %v615_v35 }
 0x118   :  { %v3906_v25 = vpop.f32.mrf.mxu0 }
 0x119   :  { %v3907_v28 = vadd.f32 %v3906_v25, %v3905_v15  ;;  %v616_v40 = vmul.f32 %v4993_v19, %v4993_v19  ;;  %v593_v44 = vadd.f32 %v592_v39, %v4993_v19 }
 0x11a   :  { %v3908_v31 = vpop.f32.mrf.mxu0 }
 0x11b   :  { %v4998_v36 = vadd.f32 %v3907_v28, %v570_v30  ;;  %v631_v50 = vadd.f32 %v630_v45, %v616_v40 }
 0x11c   :  { %v3909_v37 = vpop.f32.mrf.mxu0 }
 0x11d   :  { %v3910_v42 = vadd.f32 %v3909_v37, %v3908_v31  ;;  %v617_v46 = vmul.f32 %v4998_v36, %v4998_v36  ;;  %v594_v51 = vadd.f32 %v593_v44, %v4998_v36 }
 0x11e   :  { %v3911_v43 = vpop.f32.mrf.mxu0 }
 0x11f   :  { %v5006_v48 = vadd.f32 %v3992_v56, %v3910_v42  ;;  %v632_v55 = vadd.f32 %v631_v50, %v617_v46 }
 0x120   :  { %v3912_v49 = vpop.f32.mrf.mxu0 }
 0x121   :  { %v618_v52 = vmul.f32 %v5006_v48, %v5006_v48  ;;  %v3913_v53 = vadd.f32 %v3912_v49, %v3911_v43  ;;  %v595_v57 = vadd.f32 %v594_v51, %v5006_v48 }
 0x123   :  { %v5012_v58 = vadd.f32 %v3993_v16, %v3913_v53  ;;  %v633_v59 = vadd.f32 %v632_v55, %v618_v52 }
 0x125   :  { %v596_v60 = vadd.f32 %v595_v57, %v5012_v58  ;;  %v619_v56 = vmul.f32 %v5012_v58, %v5012_v58 }
 0x127   :  { %v597_v62 = vrot.slane %v596_v60, 4  ;;  %v634_v63 = vadd.f32 %v633_v59, %v619_v56 }
 0x129   :  { %v598_v0 = vadd.f32 %v597_v62, %v596_v60  ;;  %v635_v1 = vrot.slane %v634_v63, 4 }
 0x12b   :  { %v599_v2 = vrot.slane %v598_v0, 2  ;;  %v636_v3 = vadd.f32 %v635_v1, %v634_v63 }
 0x12d   :  { %v600_v4 = vadd.f32 %v599_v2, %v598_v0  ;;  %v637_v5 = vrot.slane %v636_v3, 2 }
 0x12f   :  { %v601_v7 = vrot.slane %v600_v4, 1  ;;  %v638_v8 = vadd.f32 %v637_v5, %v636_v3 }
 0x131   :  { %v602_v9 = vadd.f32 %v601_v7, %v600_v4  ;;  %v639_v10 = vrot.slane %v638_v8, 1 }
 0x133   :  { %v603_v11 = vmul.f32 0.0078125, %v602_v9  ;;  %v640_v13 = vadd.f32 %v639_v10, %v638_v8 }
 0x135   :  { %v641_v14 = vmul.f32 0.0078125, %v640_v13  ;;  %v642_v15 = vmul.f32 %v603_v11, %v603_v11  ;;  %v645_v22 = vsub.f32 %v4939_v23, %v603_v11  ;;  %v646_v25 = vsub.f32 %v4937_v20, %v603_v11 }
 0x136   :  { %v647_v26 = vsub.f32 %v4941_v24, %v603_v11  ;;  %v648_v27 = vsub.f32 %v4945_v29, %v603_v11  ;;  %v649_v30 = vsub.f32 %v4951_v34, %v603_v11  ;;  %v650_v31 = vsub.f32 %v4957_v41, %v603_v11 }
 0x137   :  { %v643_v16 = vsub.f32 %v641_v14, %v642_v15  ;;  %v651_v32 = vsub.f32 %v4962_v47, %v603_v11  ;;  %v652_v29 = vsub.f32 %v4967_v54, %v603_v11  ;;  %v653_v34 = vsub.f32 %v4972_v61, %v603_v11 }
 0x138   :  { %v654_v43 = vsub.f32 %v4978_v6, %v603_v11  ;;  %v655_v61 = vsub.f32 %v4983_v12, %v603_v11  ;;  %v656_v49 = vsub.f32 %v4988_v21, %v603_v11  ;;  %v657_v6 = vsub.f32 %v4993_v19, %v603_v11 }
 0x139   :  { %v644_v17 = vmax.f32 %v643_v16, 0.0  ;;  %v658_v12 = vsub.f32 %v4998_v36, %v603_v11  ;;  %v659_v21 = vsub.f32 %v5006_v48, %v603_v11  ;;  %v660_v59 = vsub.f32 %v5012_v58, %v603_v11 }
 0x13b   :  { %v661_v18 = vadd.f32 1e-05, %v644_v17 }
 0x13d   :  { %4251 = vrsqrt.f32 %v661_v18 }
 0x14a   :  { %v4252_v28 = vpop.eup %4251 }
 0x14b   :  { %v5024_v33 = vmul.f32 %v4252_v28, %v645_v22  ;;  %v5026_v35 = vmul.f32 %v4252_v28, %v646_v25  ;;  %v5028_v37 = vmul.f32 %v4252_v28, %v647_v26  ;;  %v5030_v23 = vmul.f32 %v4252_v28, %v648_v27 }
 0x14c   :  { %v5032_v20 = vmul.f32 %v4252_v28, %v649_v30  ;;  %v5034_v24 = vmul.f32 %v4252_v28, %v650_v31  ;;  %v5041_v39 = vmul.f32 %v4252_v28, %v651_v32  ;;  %v5044_v42 = vmul.f32 %v4252_v28, %v652_v29 }
 0x14d   :  { %v3642_v41 = vmul.f32 -1.442695, %v5024_v33  ;;  %v3643_v47 = vmul.f32 -1.442695, %v5026_v35  ;;  %v3644_v38 = vmul.f32 -1.442695, %v5028_v37  ;;  %v5048_v54 = vmul.f32 %v4252_v28, %v653_v34 }
 0x14e   :  { %v3645_v40 = vmul.f32 -1.442695, %v5030_v23  ;;  %v3646_v44 = vmul.f32 -1.442695, %v5032_v20  ;;  %v3647_v45 = vmul.f32 -1.442695, %v5034_v24  ;;  %v5052_v46 = vmul.f32 %v4252_v28, %v654_v43 }
 0x14f   :  { %4253 = vpow2.f32 %v3642_v41  ;;  %v3648_v50 = vmul.f32 -1.442695, %v5041_v39  ;;  %v5056_v51 = vmul.f32 %v4252_v28, %v655_v61  ;;  %v3649_v52 = vmul.f32 -1.442695, %v5044_v42 }
 0x150   :  { %4255 = vpow2.f32 %v3643_v47  ;;  %v5060_v53 = vmul.f32 %v4252_v28, %v656_v49  ;;  %v3650_v55 = vmul.f32 -1.442695, %v5048_v54  ;;  %v5064_v57 = vmul.f32 %v4252_v28, %v657_v6 }
 0x151   :  { %4257 = vpow2.f32 %v3644_v38  ;;  %v3651_v60 = vmul.f32 -1.442695, %v5052_v46  ;;  %v5069_v19 = vmul.f32 %v4252_v28, %v658_v12  ;;  %v3652_v56 = vmul.f32 -1.442695, %v5056_v51 }
 0x152   :  { %4259 = vpow2.f32 %v3645_v40  ;;  %v5072_v62 = vmul.f32 %v4252_v28, %v659_v21  ;;  %v3653_v36 = vmul.f32 -1.442695, %v5060_v53  ;;  %v5075_v63 = vmul.f32 %v4252_v28, %v660_v59 }
 0x153   :  { %4261 = vpow2.f32 %v3646_v44  ;;  %v3654_v48 = vmul.f32 -1.442695, %v5064_v57  ;;  %v3655_v58 = vmul.f32 -1.442695, %v5069_v19 }
 0x154   :  { %4263 = vpow2.f32 %v3647_v45  ;;  %v3656_v0 = vmul.f32 -1.442695, %v5072_v62  ;;  %v3657_v1 = vmul.f32 -1.442695, %v5075_v63 }
 0x155   :  { %4265 = vpow2.f32 %v3648_v50 }
 0x156   :  { %4267 = vpow2.f32 %v3649_v52 }
 0x157   :  { %4269 = vpow2.f32 %v3650_v55 }
 0x158   :  { %4271 = vpow2.f32 %v3651_v60 }
 0x159   :  { %4273 = vpow2.f32 %v3652_v56 }
 0x15a   :  { %4275 = vpow2.f32 %v3653_v36 }
 0x15b   :  { %4277 = vpow2.f32 %v3654_v48 }
 0x15c   :  { %v4254_v2 = vpop.eup %4253  ;;  %4279 = vpow2.f32 %v3655_v58 }
 0x15d   :  { %v4256_v3 = vpop.eup %4255  ;;  %v727_v4 = vadd.f32 1.0, %v4254_v2  ;;  %4281 = vpow2.f32 %v3656_v0 }
 0x15e   :  { %v4258_v5 = vpop.eup %4257  ;;  %v728_v7 = vadd.f32 1.0, %v4256_v3  ;;  %4283 = vpow2.f32 %v3657_v1 }
 0x15f   :  { %v4260_v8 = vpop.eup %4259  ;;  %4285 = vrcp.f32 %v727_v4  ;;  %v729_v9 = vadd.f32 1.0, %v4258_v5 }
 0x160   :  { %v4262_v10 = vpop.eup %4261  ;;  %4287 = vrcp.f32 %v728_v7  ;;  %v730_v11 = vadd.f32 1.0, %v4260_v8 }
 0x161   :  { %v4264_v13 = vpop.eup %4263  ;;  %4289 = vrcp.f32 %v729_v9  ;;  %v731_v14 = vadd.f32 1.0, %v4262_v10 }
 0x162   :  { %v4266_v15 = vpop.eup %4265  ;;  %4291 = vrcp.f32 %v730_v11  ;;  %v732_v16 = vadd.f32 1.0, %v4264_v13 }
 0x163   :  { %v4268_v17 = vpop.eup %4267  ;;  %4293 = vrcp.f32 %v731_v14  ;;  %v733_v18 = vadd.f32 1.0, %v4266_v15 }
 0x164   :  { %v4270_v22 = vpop.eup %4269  ;;  %4295 = vrcp.f32 %v732_v16  ;;  %v734_v25 = vadd.f32 1.0, %v4268_v17 }
 0x165   :  { %v4272_v26 = vpop.eup %4271  ;;  %4297 = vrcp.f32 %v733_v18  ;;  %v735_v27 = vadd.f32 1.0, %v4270_v22  ;;  %v4129_v18 = vld [vmem:[%s6906_s5 + $0x8] sm:$0xff]   ;;  %v4130_v22 = vld [vmem:[%s6906_s5] sm:$0xff]  }
 0x166   :  { %v4274_v28 = vpop.eup %4273  ;;  %4299 = vrcp.f32 %v734_v25  ;;  %v736_v30 = vadd.f32 1.0, %v4272_v26 }
 0x167   :  { %v4276_v31 = vpop.eup %4275  ;;  %4301 = vrcp.f32 %v735_v27  ;;  %v737_v29 = vadd.f32 1.0, %v4274_v28 }
 0x168   :  { %v4278_v32 = vpop.eup %4277  ;;  %4303 = vrcp.f32 %v736_v30  ;;  %v738_v41 = vadd.f32 1.0, %v4276_v31 }
 0x169   :  { %v4280_v34 = vpop.eup %4279  ;;  %v739_v38 = vadd.f32 1.0, %v4278_v32  ;;  %4305 = vrcp.f32 %v737_v29 }
 0x16a   :  { %v4282_v47 = vpop.eup %4281  ;;  %v740_v43 = vadd.f32 1.0, %v4280_v34  ;;  %4307 = vrcp.f32 %v738_v41 }
 0x16b   :  { %v4284_v40 = vpop.eup %4283  ;;  %4309 = vrcp.f32 %v739_v38  ;;  %v741_v56 = vadd.f32 1.0, %v4282_v47 }
 0x16c   :  { %v4286_v44 = vpop.eup %4285  ;;  %4311 = vrcp.f32 %v740_v43  ;;  %v742_v58 = vadd.f32 1.0, %v4284_v40 }
 0x16d   :  { %v4288_v61 = vpop.eup %4287  ;;  %v775_v45 = vmul.f32 %v4286_v44, %v5024_v33  ;;  %4313 = vrcp.f32 %v741_v56 }
 0x16e   :  { %v4290_v49 = vpop.eup %4289  ;;  %v776_v50 = vmul.f32 %v4288_v61, %v5026_v35  ;;  %4315 = vrcp.f32 %v742_v58 }
 0x16f   :  { %v4292_v6 = vpop.eup %4291  ;;  %v777_v52 = vmul.f32 %v4290_v49, %v5028_v37 }
 0x170   :  { %v4294_v12 = vpop.eup %4293  ;;  %v791_v55 = vpack.c.bf16 %v776_v50, %v775_v45  ;;  %v778_v21 = vmul.f32 %v4292_v6, %v5030_v23 }
 0x171   :  { %v4296_v59 = vpop.eup %4295  ;;  %v779_v60 = vmul.f32 %v4294_v12, %v5032_v20 }
 0x172   :  { %v4298_v36 = vpop.eup %4297  ;;  %4010 = vmatprep.mubr.bf16.mxu1 %v791_v55  ;;  %v792_v33 = vpack.c.bf16 %v778_v21, %v777_v52  ;;  %v780_v48 = vmul.f32 %v4296_v59, %v5034_v24 }
 0x173   :  { %v4300_v35 = vpop.eup %4299  ;;  %v781_v2 = vmul.f32 %v4298_v36, %v5041_v39 }
 0x174   :  { %v4302_v0 = vpop.eup %4301  ;;  %4011 = vmatmul.mubr.bf16.vlgmr.msra.gmra.mxu1 %v792_v33  ;;  %v793_v1 = vpack.c.bf16 %v780_v48, %v779_v60  ;;  %v782_v23 = vmul.f32 %v4300_v35, %v5044_v42 }
 0x175   :  { %v4304_v37 = vpop.eup %4303  ;;  %v783_v20 = vmul.f32 %v4302_v0, %v5048_v54 }
 0x176   :  { %4014 = vmatprep.mubr.bf16.mxu1 %v793_v1  ;;  %v784_v3 = vmul.f32 %v4304_v37, %v5052_v46  ;;  %v4306_v4 = vpop.eup %4305  ;;  %v794_v24 = vpack.c.bf16 %v782_v23, %v781_v2 }
 0x177   :  { %v4308_v5 = vpop.eup %4307  ;;  %v785_v10 = vmul.f32 %v4306_v4, %v5056_v51  ;;  %v4123_v51 = vld [vmem:[%s6906_s5 + $0x38] sm:$0xff]  }
 0x178   :  { %v4310_v7 = vpop.eup %4309  ;;  %v795_v8 = vpack.c.bf16 %v784_v3, %v783_v20  ;;  %v786_v11 = vmul.f32 %v4308_v5, %v5060_v53  ;;  %4026 = vmatprep.subr.bf16.mxu0 %v4123_v51  ;;  %v4124_v53 = vld [vmem:[%s6906_s5 + $0x30] sm:$0xff]  }
 0x179   :  { %v4312_v9 = vpop.eup %4311  ;;  %v787_v39 = vmul.f32 %v4310_v7, %v5064_v57  ;;  %4027 = vmatpush3.bf16.msra.mxu0 %v4123_v51  ;;  %v4125_v57 = vld [vmem:[%s6906_s5 + $0x28] sm:$0xff]  }
 0x17a   :  { %v788_v42 = vmul.f32 %v4312_v9, %v5069_v19  ;;  %v4314_v13 = vpop.eup %4313  ;;  %v796_v54 = vpack.c.bf16 %v786_v11, %v785_v10  ;;  %4028 = vmatprep.subr.bf16.mxu0 %v4124_v53  ;;  %v4126_v19 = vld [vmem:[%s6906_s5 + $0x20] sm:$0xff]  }
 0x17b   :  { %v4316_v14 = vpop.eup %4315  ;;  %v789_v15 = vmul.f32 %v4314_v13, %v5072_v62  ;;  %v4127_v62 = vld [vmem:[%s6906_s5 + $0x18] sm:$0xff]  }
 0x17c   :  { %4015 = vmatmul.mubr.bf16.gmra.mxu1 %v794_v24  ;;  %v797_v46 = vpack.c.bf16 %v788_v42, %v787_v39  ;;  %v790_v16 = vmul.f32 %v4316_v14, %v5075_v63  ;;  %v4128_v63 = vld [vmem:[%s6906_s5 + $0x10] sm:$0xff]  }
 0x17d   :  { %4018 = vmatprep.mubr.bf16.mxu1 %v795_v8  ;;  %4029 = vmatpush3.bf16.msra.mxu0 %v4124_v53 }
 0x17e   :  { %v798_v17 = vpack.c.bf16 %v790_v16, %v789_v15  ;;  %4030 = vmatprep.subr.bf16.mxu0 %v4125_v57 }
 0x181   :  { %4031 = vmatpush3.bf16.msra.mxu0 %v4125_v57 }
 0x182   :  { %4032 = vmatprep.subr.bf16.mxu0 %v4126_v19 }
 0x184   :  { %4019 = vmatmul.mubr.bf16.gmra.mxu1 %v796_v54 }
 0x185   :  { %4022 = vmatprep.mubr.bf16.mxu1 %v797_v46  ;;  %4033 = vmatpush3.bf16.msra.mxu0 %v4126_v19 }
 0x186   :  { %4034 = vmatprep.subr.bf16.mxu0 %v4127_v62 }
 0x189   :  { %4035 = vmatpush3.bf16.msra.mxu0 %v4127_v62 }
 0x18a   :  { %4036 = vmatprep.subr.bf16.mxu0 %v4128_v63 }
 0x18c   :  { %4023 = vmatmul.mubr.bf16.gmra.mxu1 %v798_v17 }
 0x18d   :  { %4037 = vmatpush3.bf16.msra.mxu0 %v4128_v63 }
 0x18e   :  { %4038 = vmatprep.subr.bf16.mxu0 %v4129_v18 }
 0x191   :  { %4039 = vmatpush3.bf16.msra.mxu0 %v4129_v18 }
 0x192   :  { %4040 = vmatprep.subr.bf16.mxu0 %v4130_v22 }
 0x195   :  { %4041 = vmatpush3.bf16.msra.mxu0 %v4130_v22 }
 0x234   :  { %v5121_v25 = vpop.f32.mrf.mxu1 }
 0x235   :  { %v984_v34 = vmul.f32 %v5121_v25, %v5121_v25 }
 0x236   :  { %v5123_v26 = vpop.f32.mrf.mxu1 }
 0x237   :  { %v982_v30 = vmul.f32 %v5123_v26, %v5123_v26 }
 0x238   :  { %v5125_v27 = vpop.f32.mrf.mxu1 }
 0x239   :  { %v985_v40 = vmul.f32 %v5125_v27, %v5125_v27 }
 0x23a   :  { %v5127_v28 = vpop.f32.mrf.mxu1 }
 0x23b   :  { %v960_v31 = vadd.f32 %v5127_v28, %v5123_v26  ;;  %v983_v32 = vmul.f32 %v5127_v28, %v5127_v28 }
 0x23c   :  { %v5135_v29 = vpop.f32.mrf.mxu1 }
 0x23d   :  { %v961_v41 = vadd.f32 %v5121_v25, %v960_v31  ;;  %v998_v47 = vadd.f32 %v983_v32, %v982_v30  ;;  %v988_v59 = vmul.f32 %v5135_v29, %v5135_v29 }
 0x23e   :  { %v5140_v38 = vpop.f32.mrf.mxu1 }
 0x23f   :  { %v999_v43 = vadd.f32 %v998_v47, %v984_v34  ;;  %v962_v44 = vadd.f32 %v5125_v27, %v961_v41  ;;  %v986_v49 = vmul.f32 %v5140_v38, %v5140_v38 }
 0x240   :  { %v5145_v61 = vpop.f32.mrf.mxu1 }
 0x241   :  { %v963_v45 = vadd.f32 %v962_v44, %v5140_v38  ;;  %v1000_v50 = vadd.f32 %v999_v43, %v985_v40  ;;  %v989_v33 = vmul.f32 %v5145_v61, %v5145_v61 }
 0x242   :  { %v5150_v6 = vpop.f32.mrf.mxu1 }
 0x243   :  { %v1001_v52 = vadd.f32 %v1000_v50, %v986_v49  ;;  %v964_v12 = vadd.f32 %v963_v45, %v5150_v6  ;;  %v987_v55 = vmul.f32 %v5150_v6, %v5150_v6 }
 0x244   :  { %v5155_v21 = vpop.f32.mrf.mxu1 }
 0x245   :  { %v965_v60 = vadd.f32 %v5135_v29, %v964_v12  ;;  %v1002_v56 = vadd.f32 %v1001_v52, %v987_v55  ;;  %v992_v5 = vmul.f32 %v5155_v21, %v5155_v21 }
 0x246   :  { %v5160_v36 = vpop.f32.mrf.mxu1 }
 0x247   :  { %v1003_v48 = vadd.f32 %v1002_v56, %v988_v59  ;;  %v966_v58 = vadd.f32 %v5145_v61, %v965_v60  ;;  %v990_v1 = vmul.f32 %v5160_v36, %v5160_v36 }
 0x248   :  { %v5165_v35 = vpop.f32.mrf.mxu1 }
 0x249   :  { %v967_v0 = vadd.f32 %v966_v58, %v5160_v36  ;;  %v1004_v37 = vadd.f32 %v1003_v48, %v989_v33  ;;  %v993_v9 = vmul.f32 %v5165_v35, %v5165_v35 }
 0x24a   :  { %v5170_v2 = vpop.f32.mrf.mxu1 }
 0x24b   :  { %v1005_v23 = vadd.f32 %v1004_v37, %v990_v1  ;;  %v968_v20 = vadd.f32 %v967_v0, %v5170_v2  ;;  %v991_v3 = vmul.f32 %v5170_v2, %v5170_v2 }
 0x24c   :  { %v5175_v4 = vpop.f32.mrf.mxu1 }
 0x24d   :  { %v969_v24 = vadd.f32 %v5155_v21, %v968_v20  ;;  %v1006_v7 = vadd.f32 %v1005_v23, %v991_v3  ;;  %v996_v17 = vmul.f32 %v5175_v4, %v5175_v4 }
 0x24e   :  { %v5180_v8 = vpop.f32.mrf.mxu1 }
 0x24f   :  { %v1007_v10 = vadd.f32 %v1006_v7, %v992_v5  ;;  %v970_v11 = vadd.f32 %v5165_v35, %v969_v24  ;;  %v994_v13 = vmul.f32 %v5180_v8, %v5180_v8 }
 0x250   :  { %v5185_v39 = vpop.f32.mrf.mxu1 }
 0x251   :  { %v971_v42 = vadd.f32 %v970_v11, %v5180_v8  ;;  %v1008_v54 = vadd.f32 %v1007_v10, %v993_v9  ;;  %v997_v57 = vmul.f32 %v5185_v39, %v5185_v39 }
 0x252   :  { %v948_v14 = vpop.f32.mrf.mxu1 }
 0x253   :  { %v1009_v46 = vadd.f32 %v1008_v54, %v994_v13  ;;  %v972_v15 = vadd.f32 %v971_v42, %v948_v14  ;;  %v995_v16 = vmul.f32 %v948_v14, %v948_v14 }
 0x255   :  { %v973_v51 = vadd.f32 %v5175_v4, %v972_v15  ;;  %v1010_v53 = vadd.f32 %v1009_v46, %v995_v16 }
 0x257   :  { %v974_v19 = vadd.f32 %v5185_v39, %v973_v51  ;;  %v1011_v62 = vadd.f32 %v1010_v53, %v996_v17 }
 0x259   :  { %v975_v63 = vrot.slane %v974_v19, 4  ;;  %v1012_v18 = vadd.f32 %v1011_v62, %v997_v57 }
 0x25b   :  { %v976_v22 = vadd.f32 %v975_v63, %v974_v19  ;;  %v1013_v30 = vrot.slane %v1012_v18, 4 }
 0x25d   :  { %v977_v31 = vrot.slane %v976_v22, 2  ;;  %v1014_v32 = vadd.f32 %v1013_v30, %v1012_v18 }
 0x25f   :  { %v978_v34 = vadd.f32 %v977_v31, %v976_v22  ;;  %v1015_v41 = vrot.slane %v1014_v32, 2 }
 0x261   :  { %v979_v47 = vrot.slane %v978_v34, 1  ;;  %v1016_v40 = vadd.f32 %v1015_v41, %v1014_v32 }
 0x263   :  { %v980_v43 = vadd.f32 %v979_v47, %v978_v34  ;;  %v1017_v44 = vrot.slane %v1016_v40, 1 }
 0x265   :  { %v981_v45 = vmul.f32 0.0078125, %v980_v43  ;;  %v1018_v49 = vadd.f32 %v1017_v44, %v1016_v40 }
 0x267   :  { %v1019_v50 = vmul.f32 0.0078125, %v1018_v49  ;;  %v1020_v52 = vmul.f32 %v981_v45, %v981_v45  ;;  %v1036_v60 = vsub.f32 %v948_v14, %v981_v45  ;;  %v1023_v56 = vsub.f32 %v5123_v26, %v981_v45 }
 0x268   :  { %v1024_v33 = vsub.f32 %v5127_v28, %v981_v45  ;;  %v1025_v48 = vsub.f32 %v5121_v25, %v981_v45  ;;  %v1026_v0 = vsub.f32 %v5125_v27, %v981_v45  ;;  %v1027_v1 = vsub.f32 %v5140_v38, %v981_v45 }
 0x269   :  { %v1021_v12 = vsub.f32 %v1019_v50, %v1020_v52  ;;  %v1028_v37 = vsub.f32 %v5150_v6, %v981_v45  ;;  %v1029_v25 = vsub.f32 %v5135_v29, %v981_v45  ;;  %v1030_v27 = vsub.f32 %v5145_v61, %v981_v45 }
 0x26a   :  { %v1031_v11 = vsub.f32 %v5160_v36, %v981_v45  ;;  %v1032_v61 = vsub.f32 %v5170_v2, %v981_v45  ;;  %v1033_v14 = vsub.f32 %v5155_v21, %v981_v45  ;;  %v1034_v36 = vsub.f32 %v5165_v35, %v981_v45 }
 0x26b   :  { %v1022_v55 = vmax.f32 %v1021_v12, 0.0  ;;  %v1035_v2 = vsub.f32 %v5180_v8, %v981_v45  ;;  %v1037_v21 = vsub.f32 %v5175_v4, %v981_v45  ;;  %v1038_v35 = vsub.f32 %v5185_v39, %v981_v45 }
 0x26d   :  { %v1039_v59 = vadd.f32 1e-05, %v1022_v55 }
 0x26f   :  { %4317 = vrsqrt.f32 %v1039_v59 }
 0x27c   :  { %v4318_v58 = vpop.eup %4317 }
 0x27d   :  { %v5202_v23 = vmul.f32 %v4318_v58, %v1036_v60  ;;  %v5204_v20 = vmul.f32 %v4318_v58, %v1023_v56  ;;  %v5206_v3 = vmul.f32 %v4318_v58, %v1024_v33  ;;  %v5208_v5 = vmul.f32 %v4318_v58, %v1025_v48 }
 0x27e   :  { %v5210_v26 = vmul.f32 %v4318_v58, %v1026_v0  ;;  %v5212_v28 = vmul.f32 %v4318_v58, %v1027_v1  ;;  %v5219_v7 = vmul.f32 %v4318_v58, %v1028_v37  ;;  %v5222_v10 = vmul.f32 %v4318_v58, %v1029_v25 }
 0x27f   :  { %v3679_v38 = vmul.f32 -1.442695, %v5202_v23  ;;  %v3666_v6 = vmul.f32 -1.442695, %v5204_v20  ;;  %v3667_v24 = vmul.f32 -1.442695, %v5206_v3  ;;  %v5226_v29 = vmul.f32 %v4318_v58, %v1030_v27 }
 0x280   :  { %v3668_v9 = vmul.f32 -1.442695, %v5208_v5  ;;  %v3669_v42 = vmul.f32 -1.442695, %v5210_v26  ;;  %v3670_v13 = vmul.f32 -1.442695, %v5212_v28  ;;  %v5230_v54 = vmul.f32 %v4318_v58, %v1031_v11 }
 0x281   :  { %4319 = vpow2.f32 %v3679_v38  ;;  %v3671_v46 = vmul.f32 -1.442695, %v5219_v7  ;;  %v5234_v15 = vmul.f32 %v4318_v58, %v1032_v61  ;;  %v3672_v16 = vmul.f32 -1.442695, %v5222_v10 }
 0x282   :  { %4321 = vpow2.f32 %v3666_v6  ;;  %v5238_v17 = vmul.f32 %v4318_v58, %v1033_v14  ;;  %v3673_v51 = vmul.f32 -1.442695, %v5226_v29  ;;  %v5242_v53 = vmul.f32 %v4318_v58, %v1034_v36 }
 0x283   :  { %4323 = vpow2.f32 %v3667_v24  ;;  %v3674_v57 = vmul.f32 -1.442695, %v5230_v54  ;;  %v5246_v19 = vmul.f32 %v4318_v58, %v1035_v2  ;;  %v3675_v62 = vmul.f32 -1.442695, %v5234_v15 }
 0x284   :  { %4325 = vpow2.f32 %v3668_v9  ;;  %v5250_v63 = vmul.f32 %v4318_v58, %v1037_v21  ;;  %v3676_v8 = vmul.f32 -1.442695, %v5238_v17  ;;  %v5253_v18 = vmul.f32 %v4318_v58, %v1038_v35 }
 0x285   :  { %4327 = vpow2.f32 %v3669_v42  ;;  %v3677_v4 = vmul.f32 -1.442695, %v5242_v53  ;;  %v3678_v22 = vmul.f32 -1.442695, %v5246_v19 }
 0x286   :  { %4329 = vpow2.f32 %v3670_v13  ;;  %v3680_v30 = vmul.f32 -1.442695, %v5250_v63  ;;  %v3681_v39 = vmul.f32 -1.442695, %v5253_v18 }
 0x287   :  { %4331 = vpow2.f32 %v3671_v46 }
 0x288   :  { %4333 = vpow2.f32 %v3672_v16 }
 0x289   :  { %4335 = vpow2.f32 %v3673_v51 }
 0x28a   :  { %4337 = vpow2.f32 %v3674_v57 }
 0x28b   :  { %4339 = vpow2.f32 %v3675_v62 }
 0x28c   :  { %4341 = vpow2.f32 %v3676_v8 }
 0x28d   :  { %4343 = vpow2.f32 %v3677_v4 }
 0x28e   :  { %v4320_v31 = vpop.eup %4319  ;;  %4345 = vpow2.f32 %v3678_v22 }
 0x28f   :  { %v4322_v32 = vpop.eup %4321  ;;  %4347 = vpow2.f32 %v3680_v30  ;;  %v1118_v9 = vadd.f32 1.0, %v4320_v31 }
 0x290   :  { %v4324_v34 = vpop.eup %4323  ;;  %v1105_v41 = vadd.f32 1.0, %v4322_v32  ;;  %4349 = vpow2.f32 %v3681_v39 }
 0x291   :  { %v4326_v47 = vpop.eup %4325  ;;  %v1106_v40 = vadd.f32 1.0, %v4324_v34 }
 0x292   :  { %v4328_v43 = vpop.eup %4327  ;;  %4351 = vrcp.f32 %v1105_v41  ;;  %v1107_v44 = vadd.f32 1.0, %v4326_v47 }
 0x293   :  { %v4330_v45 = vpop.eup %4329  ;;  %4353 = vrcp.f32 %v1106_v40  ;;  %v1108_v49 = vadd.f32 1.0, %v4328_v43 }
 0x294   :  { %v4332_v50 = vpop.eup %4331  ;;  %4355 = vrcp.f32 %v1107_v44  ;;  %v1109_v52 = vadd.f32 1.0, %v4330_v45 }
 0x295   :  { %v4334_v12 = vpop.eup %4333  ;;  %4357 = vrcp.f32 %v1108_v49  ;;  %v1110_v55 = vadd.f32 1.0, %v4332_v50 }
 0x296   :  { %v4336_v59 = vpop.eup %4335  ;;  %4359 = vrcp.f32 %v1109_v52  ;;  %v1111_v60 = vadd.f32 1.0, %v4334_v12 }
 0x297   :  { %v4338_v56 = vpop.eup %4337  ;;  %4361 = vrcp.f32 %v1110_v55  ;;  %v1112_v33 = vadd.f32 1.0, %v4336_v59  ;;  %v4137_v55 = vld [vmem:[%s6907_s6 + $0x50] ss:$8 sps:$4 sm:$0xff]   ;;  %v4713_v59 = vmov 0  }
 0x298   :  { %v4340_v48 = vpop.eup %4339  ;;  %4363 = vrcp.f32 %v1111_v60  ;;  %v1113_v58 = vadd.f32 1.0, %v4338_v56  ;;  %1683 = vmatprep.mubr.bf16.mxu1 %v4713_v59  ;;  %v4142_v60 = vld [vmem:[%s6907_s6 + $0x44] ss:$8 sps:$4 sm:$0xff]   ;;  %v4140_v56 = vld [vmem:[%s6907_s6 + $0x40] ss:$8 sps:$4 sm:$0xff]  }
 0x299   :  { %v4342_v0 = vpop.eup %4341  ;;  %4365 = vrcp.f32 %v1112_v33  ;;  %v1114_v1 = vadd.f32 1.0, %v4340_v48  ;;  %v4145_v33 = vld [vmem:[%s6907_s6 + $0x34] ss:$8 sps:$4 sm:$0xff]   ;;  %v4143_v48 = vld [vmem:[%s6907_s6 + $0x30] ss:$8 sps:$4 sm:$0xff]  }
 0x29a   :  { %v4344_v37 = vpop.eup %4343  ;;  %4367 = vrcp.f32 %v1113_v58  ;;  %v1115_v25 = vadd.f32 1.0, %v4342_v0  ;;  %v4148_v58 = vld [vmem:[%s6907_s6 + $0x24] ss:$8 sps:$4 sm:$0xff]   ;;  %v4146_v0 = vld [vmem:[%s6907_s6 + $0x20] ss:$8 sps:$4 sm:$0xff]  }
 0x29b   :  { %v4346_v27 = vpop.eup %4345  ;;  %4369 = vrcp.f32 %v1114_v1  ;;  %v1116_v38 = vadd.f32 1.0, %v4344_v37  ;;  %v4151_v1 = vld [vmem:[%s6907_s6 + $0x14] ss:$8 sps:$4 sm:$0xff]   ;;  %v4149_v37 = vld [vmem:[%s6907_s6 + $0x10] ss:$8 sps:$4 sm:$0xff]  }
 0x29c   :  { %v4348_v6 = vpop.eup %4347  ;;  %4371 = vrcp.f32 %v1115_v25  ;;  %v1117_v42 = vadd.f32 1.0, %v4346_v27  ;;  %v4154_v25 = vld [vmem:[%s6907_s6 + $0x4] ss:$8 sps:$4 sm:$0xff]   ;;  %v4152_v27 = vld [vmem:[%s6907_s6] ss:$8 sps:$4 sm:$0xff]  }
 0x29d   :  { %v4350_v24 = vpop.eup %4349  ;;  %4373 = vrcp.f32 %v1116_v38  ;;  %v1119_v11 = vadd.f32 1.0, %v4348_v6 }
 0x29e   :  { %v1120_v61 = vadd.f32 1.0, %v4350_v24 }
 0x29f   :  { %v4352_v13 = vpop.eup %4351  ;;  %4375 = vrcp.f32 %v1119_v11 }
 0x2a0   :  { %v4354_v14 = vpop.eup %4353  ;;  %v1153_v46 = vmul.f32 %v4352_v13, %v5204_v20  ;;  %4377 = vrcp.f32 %v1120_v61 }
 0x2a1   :  { %v4356_v36 = vpop.eup %4355  ;;  %4379 = vrcp.f32 %v1118_v9  ;;  %v1154_v16 = vmul.f32 %v4354_v14, %v5206_v3 }
 0x2a2   :  { %v4358_v2 = vpop.eup %4357  ;;  %v1155_v51 = vmul.f32 %v4356_v36, %v5208_v5  ;;  %4381 = vrcp.f32 %v1117_v42 }
 0x2a3   :  { %v4360_v21 = vpop.eup %4359  ;;  %v1169_v57 = vpack.c.bf16 %v1154_v16, %v1153_v46  ;;  %v1156_v35 = vmul.f32 %v4358_v2, %v5210_v26 }
 0x2a4   :  { %v4362_v62 = vpop.eup %4361  ;;  %v1157_v8 = vmul.f32 %v4360_v21, %v5212_v28 }
 0x2a5   :  { %v4364_v4 = vpop.eup %4363  ;;  %4042 = vmatprep.mubr.bf16.mxu0 %v1169_v57  ;;  %v1170_v22 = vpack.c.bf16 %v1156_v35, %v1155_v51  ;;  %v1158_v20 = vmul.f32 %v4362_v62, %v5219_v7 }
 0x2a6   :  { %v4366_v30 = vpop.eup %4365  ;;  %v1159_v39 = vmul.f32 %v4364_v4, %v5222_v10 }
 0x2a7   :  { %v4368_v3 = vpop.eup %4367  ;;  %4043 = vmatmul.mubr.bf16.vlgmr.msra.gmra.mxu0 %v1170_v22  ;;  %v1171_v31 = vpack.c.bf16 %v1158_v20, %v1157_v8  ;;  %v1160_v5 = vmul.f32 %v4366_v30, %v5226_v29 }
 0x2a8   :  { %v4370_v32 = vpop.eup %4369  ;;  %v1161_v28 = vmul.f32 %v4368_v3, %v5230_v54 }
 0x2a9   :  { %v4372_v34 = vpop.eup %4371  ;;  %4046 = vmatprep.mubr.bf16.mxu0 %v1171_v31  ;;  %v1172_v26 = vpack.c.bf16 %v1160_v5, %v1159_v39  ;;  %v1162_v47 = vmul.f32 %v4370_v32, %v5234_v15 }
 0x2aa   :  { %v4374_v41 = vpop.eup %4373  ;;  %v1163_v40 = vmul.f32 %v4372_v34, %v5238_v17 }
 0x2ab   :  { %v1164_v7 = vmul.f32 %v4374_v41, %v5242_v53  ;;  %v1173_v29 = vpack.c.bf16 %v1162_v47, %v1161_v28  ;;  %v4133_v53 = vld [vmem:[%s6907_s6 + $0x74] ss:$8 sps:$4 sm:$0xff]  }
 0x2ac   :  { %v4376_v43 = vpop.eup %4375  ;;  %1651 = vmatprep.subr.bf16.mxu1 %v4133_v53 }
 0x2ad   :  { %v4378_v10 = vpop.eup %4377  ;;  %v1174_v44 = vpack.c.bf16 %v1164_v7, %v1163_v40  ;;  %v1167_v45 = vmul.f32 %v4376_v43, %v5250_v63  ;;  %v4131_v63 = vld [vmem:[%s6907_s6 + $0x70] ss:$8 sps:$4 sm:$0xff]  }
 0x2ae   :  { %v4380_v49 = vpop.eup %4379  ;;  %v1168_v50 = vmul.f32 %v4378_v10, %v5253_v18  ;;  %1652 = vmatpush1.bf16.msra.mxu1 %v4131_v63  ;;  %v4139_v18 = vld [vmem:[%s6907_s6 + $0x54] ss:$8 sps:$4 sm:$0xff]  }
 0x2af   :  { %v4382_v52 = vpop.eup %4381  ;;  %4047 = vmatmul.mubr.bf16.gmra.mxu0 %v1172_v26  ;;  %v1166_v15 = vmul.f32 %v4380_v49, %v5202_v23  ;;  %v4136_v23 = vld [vmem:[%s6907_s6 + $0x64] ss:$8 sps:$4 sm:$0xff]  }
 0x2b0   :  { %4050 = vmatprep.mubr.bf16.mxu0 %v1173_v29  ;;  %v1176_v12 = vpack.c.bf16 %v1168_v50, %v1167_v45  ;;  %v1165_v54 = vmul.f32 %v4382_v52, %v5246_v19  ;;  %v4134_v19 = vld [vmem:[%s6907_s6 + $0x60] ss:$8 sps:$4 sm:$0xff]   ;;  %1653 = vmatprep.subr.bf16.mxu1 %v4136_v23 }
 0x2b2   :  { %v1175_v17 = vpack.c.bf16 %v1166_v15, %v1165_v54  ;;  %1654 = vmatpush1.bf16.msra.mxu1 %v4134_v19 }
 0x2b3   :  { %1655 = vmatprep.subr.bf16.mxu1 %v4139_v18 }
 0x2b6   :  { %1656 = vmatpush1.bf16.msra.mxu1 %v4137_v55 }
 0x2b7   :  { %4051 = vmatmul.mubr.bf16.gmra.mxu0 %v1174_v44  ;;  %1657 = vmatprep.subr.bf16.mxu1 %v4142_v60 }
 0x2b8   :  { %4054 = vmatprep.mubr.bf16.mxu0 %v1175_v17 }
 0x2ba   :  { %1658 = vmatpush1.bf16.msra.mxu1 %v4140_v56 }
 0x2bb   :  { %1659 = vmatprep.subr.bf16.mxu1 %v4145_v33 }
 0x2be   :  { %1660 = vmatpush1.bf16.msra.mxu1 %v4143_v48 }
 0x2bf   :  { %4055 = vmatmul.mubr.bf16.gmra.mxu0 %v1176_v12  ;;  %1661 = vmatprep.subr.bf16.mxu1 %v4148_v58 }
 0x2c2   :  { %1662 = vmatpush1.bf16.msra.mxu1 %v4146_v0 }
 0x2c3   :  { %1663 = vmatprep.subr.bf16.mxu1 %v4151_v1 }
 0x2c6   :  { %1664 = vmatpush1.bf16.msra.mxu1 %v4149_v37 }
 0x2c7   :  { %1665 = vmatprep.subr.bf16.mxu1 %v4154_v25 }
 0x2ca   :  { %1666 = vmatpush1.bf16.msra.mxu1 %v4152_v27 }
 0x367   :  { %v5324_v38 = vpop.f32.mrf.mxu0 }
 0x368   :  { %v1362_v14 = vmul.f32 %v5324_v38, %v5324_v38 }
 0x369   :  { %v5326_v6 = vpop.f32.mrf.mxu0 }
 0x36a   :  { %v1360_v11 = vmul.f32 %v5326_v6, %v5326_v6 }
 0x36b   :  { %v5328_v24 = vpop.f32.mrf.mxu0 }
 0x36c   :  { %v1363_v2 = vmul.f32 %v5328_v24, %v5328_v24 }
 0x36d   :  { %v5330_v9 = vpop.f32.mrf.mxu0 }
 0x36e   :  { %v1338_v42 = vadd.f32 %v5330_v9, %v5326_v6  ;;  %v1361_v61 = vmul.f32 %v5330_v9, %v5330_v9 }
 0x36f   :  { %v5338_v13 = vpop.f32.mrf.mxu0 }
 0x370   :  { %v1339_v46 = vadd.f32 %v5324_v38, %v1338_v42  ;;  %v1376_v36 = vadd.f32 %v1361_v61, %v1360_v11  ;;  %v1366_v3 = vmul.f32 %v5338_v13, %v5338_v13 }
 0x371   :  { %v5343_v16 = vpop.f32.mrf.mxu0 }
 0x372   :  { %v1377_v51 = vadd.f32 %v1376_v36, %v1362_v14  ;;  %v1340_v21 = vadd.f32 %v5328_v24, %v1339_v46  ;;  %v1364_v62 = vmul.f32 %v5343_v16, %v5343_v16 }
 0x373   :  { %v5348_v57 = vpop.f32.mrf.mxu0 }
 0x374   :  { %v1341_v35 = vadd.f32 %v1340_v21, %v5343_v16  ;;  %v1378_v8 = vadd.f32 %v1377_v51, %v1363_v2  ;;  %v1367_v34 = vmul.f32 %v5348_v57, %v5348_v57 }
 0x375   :  { %v5353_v4 = vpop.f32.mrf.mxu0 }
 0x376   :  { %v1379_v22 = vadd.f32 %v1378_v8, %v1364_v62  ;;  %v1342_v20 = vadd.f32 %v1341_v35, %v5353_v4  ;;  %v1365_v30 = vmul.f32 %v5353_v4, %v5353_v4 }
 0x377   :  { %v5358_v39 = vpop.f32.mrf.mxu0 }
 0x378   :  { %v1343_v31 = vadd.f32 %v5338_v13, %v1342_v20  ;;  %v1380_v5 = vadd.f32 %v1379_v22, %v1365_v30  ;;  %v1370_v29 = vmul.f32 %v5358_v39, %v5358_v39 }
 0x379   :  { %v5363_v32 = vpop.f32.mrf.mxu0 }
 0x37a   :  { %v1381_v26 = vadd.f32 %v1380_v5, %v1366_v3  ;;  %v1344_v41 = vadd.f32 %v5348_v57, %v1343_v31  ;;  %v1368_v40 = vmul.f32 %v5363_v32, %v5363_v32 }
 0x37b   :  { %v5368_v28 = vpop.f32.mrf.mxu0 }
 0x37c   :  { %v1345_v47 = vadd.f32 %v1344_v41, %v5363_v32  ;;  %v1382_v7 = vadd.f32 %v1381_v26, %v1367_v34  ;;  %v1371_v54 = vmul.f32 %v5368_v28, %v5368_v28 }
 0x37d   :  { %v5373_v43 = vpop.f32.mrf.mxu0 }
 0x37e   :  { %v1383_v10 = vadd.f32 %v1382_v7, %v1368_v40  ;;  %v1346_v44 = vadd.f32 %v1345_v47, %v5373_v43  ;;  %v1369_v45 = vmul.f32 %v5373_v43, %v5373_v43 }
 0x37f   :  { %v5378_v49 = vpop.f32.mrf.mxu0 }
 0x380   :  { %v1347_v50 = vadd.f32 %v5358_v39, %v1346_v44  ;;  %v1384_v52 = vadd.f32 %v1383_v10, %v1369_v45  ;;  %v1374_v33 = vmul.f32 %v5378_v49, %v5378_v49 }
 0x381   :  { %v5383_v12 = vpop.f32.mrf.mxu0 }
 0x382   :  { %v1385_v15 = vadd.f32 %v1384_v52, %v1370_v29  ;;  %v1348_v17 = vadd.f32 %v5368_v28, %v1347_v50  ;;  %v1372_v19 = vmul.f32 %v5383_v12, %v5383_v12 }
 0x383   :  { %v5388_v53 = vpop.f32.mrf.mxu0 }
 0x384   :  { %v1349_v63 = vadd.f32 %v1348_v17, %v5383_v12  ;;  %v1386_v23 = vadd.f32 %v1385_v15, %v1371_v54  ;;  %v1375_v0 = vmul.f32 %v5388_v53, %v5388_v53 }
 0x385   :  { %v1326_v18 = vpop.f32.mrf.mxu0 }
 0x386   :  { %v1387_v55 = vadd.f32 %v1386_v23, %v1372_v19  ;;  %v1350_v60 = vadd.f32 %v1349_v63, %v1326_v18  ;;  %v1373_v56 = vmul.f32 %v1326_v18, %v1326_v18 }
 0x388   :  { %v1351_v48 = vadd.f32 %v5378_v49, %v1350_v60  ;;  %v1388_v58 = vadd.f32 %v1387_v55, %v1373_v56 }
 0x38a   :  { %v1352_v1 = vadd.f32 %v5388_v53, %v1351_v48  ;;  %v1389_v37 = vadd.f32 %v1388_v58, %v1374_v33 }
 0x38c   :  { %v1353_v25 = vrot.slane %v1352_v1, 4  ;;  %v1390_v27 = vadd.f32 %v1389_v37, %v1375_v0 }
 0x38e   :  { %v1354_v11 = vadd.f32 %v1353_v25, %v1352_v1  ;;  %v1391_v42 = vrot.slane %v1390_v27, 4 }
 0x390   :  { %v1355_v61 = vrot.slane %v1354_v11, 2  ;;  %v1392_v14 = vadd.f32 %v1391_v42, %v1390_v27 }
 0x392   :  { %v1356_v46 = vadd.f32 %v1355_v61, %v1354_v11  ;;  %v1393_v36 = vrot.slane %v1392_v14, 2 }
 0x394   :  { %v1357_v2 = vrot.slane %v1356_v46, 1  ;;  %v1394_v51 = vadd.f32 %v1393_v36, %v1392_v14 }
 0x396   :  { %v1358_v21 = vadd.f32 %v1357_v2, %v1356_v46  ;;  %v1395_v35 = vrot.slane %v1394_v51, 1 }
 0x398   :  { %v1359_v62 = vmul.f32 0.0078125, %v1358_v21  ;;  %v1396_v8 = vadd.f32 %v1395_v35, %v1394_v51 }
 0x39a   :  { %v1397_v22 = vmul.f32 0.0078125, %v1396_v8  ;;  %v1398_v20 = vmul.f32 %v1359_v62, %v1359_v62  ;;  %v1413_v31 = vsub.f32 %v5383_v12, %v1359_v62  ;;  %v1415_v5 = vsub.f32 %v5378_v49, %v1359_v62 }
 0x39b   :  { %v1416_v34 = vsub.f32 %v5388_v53, %v1359_v62  ;;  %v1414_v41 = vsub.f32 %v1326_v18, %v1359_v62  ;;  %v1401_v47 = vsub.f32 %v5326_v6, %v1359_v62  ;;  %v1402_v40 = vsub.f32 %v5330_v9, %v1359_v62 }
 0x39c   :  { %v1399_v30 = vsub.f32 %v1397_v22, %v1398_v20  ;;  %v1403_v7 = vsub.f32 %v5324_v38, %v1359_v62  ;;  %v1404_v44 = vsub.f32 %v5328_v24, %v1359_v62  ;;  %v1405_v45 = vsub.f32 %v5343_v16, %v1359_v62 }
 0x39d   :  { %v1406_v29 = vsub.f32 %v5353_v4, %v1359_v62  ;;  %v1407_v38 = vsub.f32 %v5338_v13, %v1359_v62  ;;  %v1408_v24 = vsub.f32 %v5348_v57, %v1359_v62  ;;  %v1409_v63 = vsub.f32 %v5363_v32, %v1359_v62 }
 0x39e   :  { %v1400_v3 = vmax.f32 %v1399_v30, 0.0  ;;  %v1410_v19 = vsub.f32 %v5373_v43, %v1359_v62  ;;  %v1411_v23 = vsub.f32 %v5358_v39, %v1359_v62  ;;  %v1412_v60 = vsub.f32 %v5368_v28, %v1359_v62 }
 0x3a0   :  { %v1417_v26 = vadd.f32 1e-05, %v1400_v3 }
 0x3a2   :  { %4383 = vrsqrt.f32 %v1417_v26 }
 0x3af   :  { %v4384_v10 = vpop.eup %4383 }
 0x3b0   :  { %v5408_v50 = vmul.f32 %v4384_v10, %v1414_v41  ;;  %v5410_v49 = vmul.f32 %v4384_v10, %v1401_v47  ;;  %v5412_v52 = vmul.f32 %v4384_v10, %v1402_v40  ;;  %v5414_v12 = vmul.f32 %v4384_v10, %v1403_v7 }
 0x3b1   :  { %v5416_v6 = vmul.f32 %v4384_v10, %v1404_v44  ;;  %v5418_v9 = vmul.f32 %v4384_v10, %v1405_v45  ;;  %v5425_v15 = vmul.f32 %v4384_v10, %v1406_v29  ;;  %v5428_v53 = vmul.f32 %v4384_v10, %v1407_v38 }
 0x3b2   :  { %v3703_v16 = vmul.f32 -1.442695, %v5408_v50  ;;  %v3690_v4 = vmul.f32 -1.442695, %v5410_v49  ;;  %v3691_v54 = vmul.f32 -1.442695, %v5412_v52  ;;  %v5433_v57 = vmul.f32 %v4384_v10, %v1408_v24 }
 0x3b3   :  { %v3692_v17 = vmul.f32 -1.442695, %v5414_v12  ;;  %v3693_v13 = vmul.f32 -1.442695, %v5416_v6  ;;  %v3694_v18 = vmul.f32 -1.442695, %v5418_v9  ;;  %v5437_v55 = vmul.f32 %v4384_v10, %v1409_v63 }
 0x3b4   :  { %4385 = vpow2.f32 %v3703_v16  ;;  %v3695_v56 = vmul.f32 -1.442695, %v5425_v15  ;;  %v5441_v32 = vmul.f32 %v4384_v10, %v1410_v19  ;;  %v5443_v43 = vmul.f32 %v4384_v10, %v1415_v5 }
 0x3b5   :  { %4387 = vpow2.f32 %v3690_v4  ;;  %v3696_v33 = vmul.f32 -1.442695, %v5428_v53  ;;  %v5446_v48 = vmul.f32 %v4384_v10, %v1411_v23  ;;  %v5448_v39 = vmul.f32 %v4384_v10, %v1416_v34 }
 0x3b6   :  { %4389 = vpow2.f32 %v3691_v54  ;;  %v3697_v58 = vmul.f32 -1.442695, %v5433_v57  ;;  %v5451_v0 = vmul.f32 %v4384_v10, %v1412_v60  ;;  %v3698_v28 = vmul.f32 -1.442695, %v5437_v55 }
 0x3b7   :  { %4391 = vpow2.f32 %v3692_v17  ;;  %v5454_v1 = vmul.f32 %v4384_v10, %v1413_v31  ;;  %v3699_v37 = vmul.f32 -1.442695, %v5441_v32  ;;  %v3700_v25 = vmul.f32 -1.442695, %v5446_v48 }
 0x3b8   :  { %4393 = vpow2.f32 %v3693_v13  ;;  %v3701_v27 = vmul.f32 -1.442695, %v5451_v0  ;;  %v3704_v42 = vmul.f32 -1.442695, %v5443_v43  ;;  %v3705_v61 = vmul.f32 -1.442695, %v5448_v39 }
 0x3b9   :  { %4395 = vpow2.f32 %v3694_v18  ;;  %v3702_v11 = vmul.f32 -1.442695, %v5454_v1 }
 0x3ba   :  { %4397 = vpow2.f32 %v3695_v56 }
 0x3bb   :  { %4399 = vpow2.f32 %v3696_v33 }
 0x3bc   :  { %4401 = vpow2.f32 %v3697_v58 }
 0x3bd   :  { %4403 = vpow2.f32 %v3698_v28 }
 0x3be   :  { %4405 = vpow2.f32 %v3699_v37 }
 0x3bf   :  { %4407 = vpow2.f32 %v3700_v25 }
 0x3c0   :  { %4409 = vpow2.f32 %v3701_v27 }
 0x3c1   :  { %v4386_v14 = vpop.eup %4385  ;;  %4411 = vpow2.f32 %v3702_v11 }
 0x3c2   :  { %v4388_v46 = vpop.eup %4387  ;;  %v1496_v36 = vadd.f32 1.0, %v4386_v14  ;;  %4413 = vpow2.f32 %v3704_v42 }
 0x3c3   :  { %v4390_v2 = vpop.eup %4389  ;;  %v1483_v51 = vadd.f32 1.0, %v4388_v46  ;;  %4415 = vpow2.f32 %v3705_v61 }
 0x3c4   :  { %v4392_v21 = vpop.eup %4391  ;;  %4417 = vrcp.f32 %v1496_v36  ;;  %v1484_v35 = vadd.f32 1.0, %v4390_v2 }
 0x3c5   :  { %v4394_v62 = vpop.eup %4393  ;;  %4419 = vrcp.f32 %v1483_v51  ;;  %v1485_v8 = vadd.f32 1.0, %v4392_v21 }
 0x3c6   :  { %v4396_v22 = vpop.eup %4395  ;;  %4421 = vrcp.f32 %v1484_v35  ;;  %v1486_v20 = vadd.f32 1.0, %v4394_v62 }
 0x3c7   :  { %v4398_v30 = vpop.eup %4397  ;;  %4423 = vrcp.f32 %v1485_v8  ;;  %v1487_v3 = vadd.f32 1.0, %v4396_v22 }
 0x3c8   :  { %v4400_v31 = vpop.eup %4399  ;;  %4425 = vrcp.f32 %v1486_v20  ;;  %v1488_v5 = vadd.f32 1.0, %v4398_v30 }
 0x3c9   :  { %v4402_v34 = vpop.eup %4401  ;;  %4427 = vrcp.f32 %v1487_v3  ;;  %v1489_v26 = vadd.f32 1.0, %v4400_v31 }
 0x3ca   :  { %v4404_v41 = vpop.eup %4403  ;;  %4429 = vrcp.f32 %v1488_v5  ;;  %v1490_v47 = vadd.f32 1.0, %v4402_v34  ;;  %v4166_v5 = vld [vmem:[%s6908_s7 + $0x44] ss:$8 sps:$4 sm:$0xff]   ;;  %v4164_v34 = vld [vmem:[%s6908_s7 + $0x40] ss:$8 sps:$4 sm:$0xff]  }
 0x3cb   :  { %v4406_v40 = vpop.eup %4405  ;;  %4431 = vrcp.f32 %v1489_v26  ;;  %v1491_v7 = vadd.f32 1.0, %v4404_v41  ;;  %v4169_v26 = vld [vmem:[%s6908_s7 + $0x34] ss:$8 sps:$4 sm:$0xff]   ;;  %v4167_v41 = vld [vmem:[%s6908_s7 + $0x30] ss:$8 sps:$4 sm:$0xff]  }
 0x3cc   :  { %v4408_v10 = vpop.eup %4407  ;;  %4433 = vrcp.f32 %v1490_v47  ;;  %v1492_v44 = vadd.f32 1.0, %v4406_v40  ;;  %v4172_v47 = vld [vmem:[%s6908_s7 + $0x24] ss:$8 sps:$4 sm:$0xff]   ;;  %v4170_v40 = vld [vmem:[%s6908_s7 + $0x20] ss:$8 sps:$4 sm:$0xff]  }
 0x3cd   :  { %v4410_v45 = vpop.eup %4409  ;;  %4435 = vrcp.f32 %v1491_v7  ;;  %v1493_v29 = vadd.f32 1.0, %v4408_v10  ;;  %v4175_v7 = vld [vmem:[%s6908_s7 + $0x14] ss:$8 sps:$4 sm:$0xff]   ;;  %v4173_v10 = vld [vmem:[%s6908_s7 + $0x10] ss:$8 sps:$4 sm:$0xff]  }
 0x3ce   :  { %v4412_v38 = vpop.eup %4411  ;;  %4437 = vrcp.f32 %v1492_v44  ;;  %v1494_v24 = vadd.f32 1.0, %v4410_v45  ;;  %v4178_v44 = vld [vmem:[%s6908_s7 + $0x4] ss:$8 sps:$4 sm:$0xff]   ;;  %v4176_v45 = vld [vmem:[%s6908_s7] ss:$8 sps:$4 sm:$0xff]  }
 0x3cf   :  { %v4414_v16 = vpop.eup %4413  ;;  %4439 = vrcp.f32 %v1493_v29  ;;  %v1495_v4 = vadd.f32 1.0, %v4412_v38  ;;  %v4181_v29 = vld [vmem:[%s6908_s7 + $0xf4] ss:$8 sps:$4 sm:$0xff]   ;;  %v4179_v38 = vld [vmem:[%s6908_s7 + $0xf0] ss:$8 sps:$4 sm:$0xff]  }
 0x3d0   :  { %v4416_v54 = vpop.eup %4415  ;;  %4441 = vrcp.f32 %v1494_v24  ;;  %v1497_v17 = vadd.f32 1.0, %v4414_v16  ;;  %v4184_v24 = vld [vmem:[%s6908_s7 + $0xe4] ss:$8 sps:$4 sm:$0xff]  }
 0x3d1   :  { %v4418_v63 = vpop.eup %4417  ;;  %4443 = vrcp.f32 %v1495_v4  ;;  %v1498_v19 = vadd.f32 1.0, %v4416_v54  ;;  %v4182_v4 = vld [vmem:[%s6908_s7 + $0xe0] ss:$8 sps:$4 sm:$0xff]  }
 0x3d2   :  { %v4420_v13 = vpop.eup %4419  ;;  %4445 = vrcp.f32 %v1497_v17  ;;  %v4187_v17 = vld [vmem:[%s6908_s7 + $0xd4] ss:$8 sps:$4 sm:$0xff]  }
 0x3d3   :  { %v4422_v23 = vpop.eup %4421  ;;  %v1531_v18 = vmul.f32 %v4420_v13, %v5410_v49  ;;  %4447 = vrcp.f32 %v1498_v19  ;;  %v4185_v19 = vld [vmem:[%s6908_s7 + $0xd0] ss:$8 sps:$4 sm:$0xff]  }
 0x3d4   :  { %v4424_v60 = vpop.eup %4423  ;;  %v1532_v56 = vmul.f32 %v4422_v23, %v5412_v52  ;;  %v4190_v23 = vld [vmem:[%s6908_s7 + $0xc4] ss:$8 sps:$4 sm:$0xff]  }
 0x3d5   :  { %v4426_v33 = vpop.eup %4425  ;;  %v1533_v58 = vmul.f32 %v4424_v60, %v5414_v12  ;;  %v4188_v60 = vld [vmem:[%s6908_s7 + $0xc0] ss:$8 sps:$4 sm:$0xff]  }
 0x3d6   :  { %v4428_v28 = vpop.eup %4427  ;;  %v1547_v37 = vpack.c.bf16 %v1532_v56, %v1531_v18  ;;  %v1534_v25 = vmul.f32 %v4426_v33, %v5416_v6  ;;  %v4191_v33 = vld [vmem:[%s6908_s7 + $0xb0] ss:$8 sps:$4 sm:$0xff]  }
 0x3d7   :  { %v4430_v27 = vpop.eup %4429  ;;  %v1535_v11 = vmul.f32 %v4428_v28, %v5418_v9  ;;  %v4196_v28 = vld [vmem:[%s6908_s7 + $0xa4] ss:$8 sps:$4 sm:$0xff]  }
 0x3d8   :  { %v4432_v42 = vpop.eup %4431  ;;  %1684 = vmatmul.mubr.bf16.vlgmr.msra.gmra.mxu1 %v1547_v37  ;;  %v1548_v61 = vpack.c.bf16 %v1534_v25, %v1533_v58  ;;  %v1536_v14 = vmul.f32 %v4430_v27, %v5425_v15  ;;  %v1544_v15 = vmul.f32 %v4418_v63, %v5408_v50  ;;  %v4157_v50 = vld [vmem:[%s6908_s7 + $0x74] ss:$8 sps:$4 sm:$0xff]   ;;  %v4194_v27 = vld [vmem:[%s6908_s7 + $0xa0] ss:$8 sps:$4 sm:$0xff]  }
 0x3d9   :  { %v4434_v49 = vpop.eup %4433  ;;  %1693 = vmatprep.mubr.bf16.mxu1 %v4713_v59  ;;  %v1537_v52 = vmul.f32 %v4432_v42, %v5428_v53  ;;  %2542 = vmatprep.subr.bf16.mxu0 %v4157_v50  ;;  %v4193_v58 = vld [vmem:[%s6908_s7 + $0xb4] ss:$8 sps:$4 sm:$0xff]  }
 0x3da   :  { %v4436_v46 = vpop.eup %4435  ;;  %v1549_v36 = vpack.c.bf16 %v1536_v14, %v1535_v11  ;;  %v1538_v12 = vmul.f32 %v4434_v49, %v5433_v57  ;;  %v4199_v11 = vld [vmem:[%s6908_s7 + $0x94] ss:$8 sps:$4 sm:$0xff]   ;;  %v4197_v14 = vld [vmem:[%s6908_s7 + $0x90] ss:$8 sps:$4 sm:$0xff]   ;;  %v4202_v49 = vld [vmem:[%s6908_s7 + $0x84] ss:$8 sps:$4 sm:$0xff]  }
 0x3db   :  { %v4438_v2 = vpop.eup %4437  ;;  %v1539_v6 = vmul.f32 %v4436_v46, %v5437_v55 }
 0x3dc   :  { %v4440_v51 = vpop.eup %4439  ;;  %v1550_v21 = vpack.c.bf16 %v1538_v12, %v1537_v52  ;;  %v1540_v9 = vmul.f32 %v4438_v2, %v5441_v32 }
 0x3dd   :  { %v4442_v35 = vpop.eup %4441  ;;  %v1541_v62 = vmul.f32 %v4440_v51, %v5446_v48 }
 0x3de   :  { %v4444_v8 = vpop.eup %4443  ;;  %v1551_v22 = vpack.c.bf16 %v1540_v9, %v1539_v6  ;;  %v1542_v53 = vmul.f32 %v4442_v35, %v5451_v0  ;;  %v4158_v0 = vld [vmem:[%s6908_s7 + $0x60] ss:$8 sps:$4 sm:$0xff]  }
 0x3df   :  { %v4446_v20 = vpop.eup %4445  ;;  %v1543_v30 = vmul.f32 %v4444_v8, %v5454_v1  ;;  %v4161_v1 = vld [vmem:[%s6908_s7 + $0x50] ss:$8 sps:$4 sm:$0xff]  }
 0x3e0   :  { %v4448_v57 = vpop.eup %4447  ;;  %1694 = vmatmul.mubr.bf16.gmra.mxu1 %v1548_v61  ;;  %v1552_v3 = vpack.c.bf16 %v1542_v53, %v1541_v62  ;;  %v1545_v55 = vmul.f32 %v4446_v20, %v5443_v43  ;;  %v4155_v43 = vld [vmem:[%s6908_s7 + $0x70] ss:$8 sps:$4 sm:$0xff]  }
 0x3e1   :  { %1703 = vmatprep.mubr.bf16.mxu1 %v4713_v59  ;;  %v1553_v32 = vpack.c.bf16 %v1544_v15, %v1543_v30  ;;  %v1546_v31 = vmul.f32 %v4448_v57, %v5448_v39  ;;  %2543 = vmatpush1.bf16.msra.mxu0 %v4155_v43  ;;  %v4160_v39 = vld [vmem:[%s6908_s7 + $0x64] ss:$8 sps:$4 sm:$0xff]  }
 0x3e2   :  { %2544 = vmatprep.subr.bf16.mxu0 %v4160_v39 }
 0x3e3   :  { %v1554_v48 = vpack.c.bf16 %v1546_v31, %v1545_v55 }
 0x3e5   :  { %2545 = vmatpush1.bf16.msra.mxu0 %v4158_v0 }
 0x3e8   :  { %1704 = vmatmul.mubr.bf16.gmra.mxu1 %v1549_v36  ;;  %v4200_v36 = vld [vmem:[%s6908_s7 + $0x80] ss:$8 sps:$4 sm:$0xff]  }
 0x3e9   :  { %1713 = vmatprep.mubr.bf16.mxu1 %v4713_v59 }
 0x3f0   :  { %1714 = vmatmul.mubr.bf16.gmra.mxu1 %v1550_v21 }
 0x3f1   :  { %1723 = vmatprep.mubr.bf16.mxu1 %v4713_v59 }
 0x3f8   :  { %1724 = vmatmul.mubr.bf16.gmra.mxu1 %v1551_v22 }
 0x3f9   :  { %1733 = vmatprep.mubr.bf16.mxu1 %v4713_v59 }
 0x400   :  { %1734 = vmatmul.mubr.bf16.gmra.mxu1 %v1552_v3 }
 0x401   :  { %1743 = vmatprep.mubr.bf16.mxu1 %v4713_v59 }
 0x408   :  { %1744 = vmatmul.mubr.bf16.gmra.mxu1 %v1553_v32 }
 0x409   :  { %1753 = vmatprep.mubr.bf16.mxu1 %v4713_v59  ;;  %v4163_v59 = vld [vmem:[%s6908_s7 + $0x54] ss:$8 sps:$4 sm:$0xff]  }
 0x40a   :  { %2546 = vmatprep.subr.bf16.mxu0 %v4163_v59 }
 0x40b   :  { %2547 = vmatpush1.bf16.msra.mxu0 %v4161_v1 }
 0x40c   :  { %2548 = vmatprep.subr.bf16.mxu0 %v4166_v5 }
 0x40f   :  { %2549 = vmatpush1.bf16.msra.mxu0 %v4164_v34 }
 0x410   :  { %1754 = vmatmul.mubr.bf16.gmra.mxu1 %v1554_v48  ;;  %2550 = vmatprep.subr.bf16.mxu0 %v4169_v26 }
 0x413   :  { %2551 = vmatpush1.bf16.msra.mxu0 %v4167_v41 }
 0x414   :  { %2552 = vmatprep.subr.bf16.mxu0 %v4172_v47 }
 0x417   :  { %2553 = vmatpush1.bf16.msra.mxu0 %v4170_v40 }
 0x418   :  { %2554 = vmatprep.subr.bf16.mxu0 %v4175_v7 }
 0x41b   :  { %2555 = vmatpush1.bf16.msra.mxu0 %v4173_v10 }
 0x41c   :  { %2556 = vmatprep.subr.bf16.mxu0 %v4178_v44 }
 0x41f   :  { %2557 = vmatpush1.bf16.msra.mxu0 %v4176_v45 }
 0x420   :  { %2558 = vmatprep.subr.bf16.mxu0 %v4181_v29 }
 0x423   :  { %2559 = vmatpush2.bf16.msra.mxu0 %v4179_v38 }
 0x424   :  { %2560 = vmatprep.subr.bf16.mxu0 %v4184_v24 }
 0x427   :  { %2561 = vmatpush2.bf16.msra.mxu0 %v4182_v4 }
 0x428   :  { %2562 = vmatprep.subr.bf16.mxu0 %v4187_v17 }
 0x42b   :  { %2563 = vmatpush2.bf16.msra.mxu0 %v4185_v19 }
 0x42c   :  { %2564 = vmatprep.subr.bf16.mxu0 %v4190_v23 }
 0x42f   :  { %2565 = vmatpush2.bf16.msra.mxu0 %v4188_v60 }
 0x430   :  { %2566 = vmatprep.subr.bf16.mxu0 %v4193_v58 }
 0x433   :  { %2567 = vmatpush2.bf16.msra.mxu0 %v4191_v33 }
 0x434   :  { %2568 = vmatprep.subr.bf16.mxu0 %v4196_v28 }
 0x437   :  { %2569 = vmatpush2.bf16.msra.mxu0 %v4194_v27 }
 0x438   :  { %2570 = vmatprep.subr.bf16.mxu0 %v4199_v11 }
 0x43b   :  { %2571 = vmatpush2.bf16.msra.mxu0 %v4197_v14 }
 0x43c   :  { %2572 = vmatprep.subr.bf16.mxu0 %v4202_v49 }
 0x43f   :  { %2573 = vmatpush2.bf16.msra.mxu0 %v4200_v36 }
 0x498   :  { %v5542_v16 = vpop.f32.mrf.mxu1 }
 0x499   :  { %v1786_v62 = vmul.f32 %v5542_v16, %v5542_v16 }
 0x49a   :  { %v5547_v54 = vpop.f32.mrf.mxu1 }
 0x49b   :  { %v1846_v22 = vmul.f32 %v5547_v54, %v5547_v54 }
 0x49c   :  { %v5552_v63 = vpop.f32.mrf.mxu1 }
 0x49d   :  { %v1787_v21 = vmul.f32 %v5552_v63, %v5552_v63  ;;  %v1764_v15 = vadd.f32 %v5552_v63, %v5542_v16 }
 0x49e   :  { %v5557_v13 = vpop.f32.mrf.mxu1 }
 0x49f   :  { %v1847_v9 = vmul.f32 %v5557_v13, %v5557_v13  ;;  %v1802_v30 = vadd.f32 %v1787_v21, %v1786_v62  ;;  %v1824_v57 = vadd.f32 %v5557_v13, %v5547_v54 }
 0x4a0   :  { %v5562_v18 = vpop.f32.mrf.mxu1 }
 0x4a1   :  { %v1788_v8 = vmul.f32 %v5562_v18, %v5562_v18  ;;  %v1765_v3 = vadd.f32 %v1764_v15, %v5562_v18  ;;  %v1862_v32 = vadd.f32 %v1847_v9, %v1846_v22 }
 0x4a2   :  { %v5567_v56 = vpop.f32.mrf.mxu1 }
 0x4a3   :  { %v1848_v53 = vmul.f32 %v5567_v56, %v5567_v56  ;;  %v1803_v50 = vadd.f32 %v1802_v30, %v1788_v8  ;;  %v1825_v43 = vadd.f32 %v1824_v57, %v5567_v56 }
 0x4a4   :  { %v5578_v37 = vpop.f32.mrf.mxu1 }
 0x4a5   :  { %v1789_v55 = vmul.f32 %v5578_v37, %v5578_v37  ;;  %v1766_v39 = vadd.f32 %v1765_v3, %v5578_v37  ;;  %v1863_v59 = vadd.f32 %v1862_v32, %v1848_v53 }
 0x4a6   :  { %v5580_v25 = vpop.f32.mrf.mxu1 }
 0x4a7   :  { %v1849_v31 = vmul.f32 %v5580_v25, %v5580_v25  ;;  %v1804_v34 = vadd.f32 %v1803_v50, %v1789_v55  ;;  %v1826_v26 = vadd.f32 %v1825_v43, %v5580_v25 }
 0x4a8   :  { %v5588_v42 = vpop.f32.mrf.mxu1 }
 0x4a9   :  { %v1790_v0 = vmul.f32 %v5588_v42, %v5588_v42  ;;  %v1767_v41 = vadd.f32 %v1766_v39, %v5588_v42  ;;  %v1864_v40 = vadd.f32 %v1863_v59, %v1849_v31 }
 0x4aa   :  { %v5590_v61 = vpop.f32.mrf.mxu1 }
 0x4ab   :  { %v1850_v1 = vmul.f32 %v5590_v61, %v5590_v61  ;;  %v1805_v44 = vadd.f32 %v1804_v34, %v1790_v0  ;;  %v1827_v45 = vadd.f32 %v1826_v26, %v5590_v61 }
 0x4ac   :  { %v5598_v52 = vpop.f32.mrf.mxu1 }
 0x4ad   :  { %v1791_v47 = vmul.f32 %v5598_v52, %v5598_v52  ;;  %v1768_v29 = vadd.f32 %v1767_v41, %v5598_v52  ;;  %v1865_v24 = vadd.f32 %v1864_v40, %v1850_v1 }
 0x4ae   :  { %v5600_v46 = vpop.f32.mrf.mxu1 }
 0x4af   :  { %v1851_v7 = vmul.f32 %v5600_v46, %v5600_v46  ;;  %v1806_v19 = vadd.f32 %v1805_v44, %v1791_v47  ;;  %v1828_v23 = vadd.f32 %v1827_v45, %v5600_v46 }
 0x4b0   :  { %v5605_v12 = vpop.f32.mrf.mxu1 }
 0x4b1   :  { %v1792_v38 = vmul.f32 %v5605_v12, %v5605_v12  ;;  %v1769_v60 = vadd.f32 %v1768_v29, %v5605_v12  ;;  %v1866_v58 = vadd.f32 %v1865_v24, %v1851_v7 }
 0x4b2   :  { %v5607_v2 = vpop.f32.mrf.mxu1 }
 0x4b3   :  { %v1852_v4 = vmul.f32 %v5607_v2, %v5607_v2  ;;  %v1807_v11 = vadd.f32 %v1806_v19, %v1792_v38  ;;  %v1829_v14 = vadd.f32 %v1828_v23, %v5607_v2 }
 0x4b4   :  { %v5609_v6 = vpop.f32.mrf.mxu1 }
 0x4b5   :  { %v1793_v33 = vmul.f32 %v5609_v6, %v5609_v6  ;;  %v1770_v49 = vadd.f32 %v1769_v60, %v5609_v6  ;;  %v1867_v21 = vadd.f32 %v1866_v58, %v1852_v4 }
 0x4b6   :  { %v5611_v51 = vpop.f32.mrf.mxu1 }
 0x4b7   :  { %v1853_v28 = vmul.f32 %v5611_v51, %v5611_v51  ;;  %v1808_v15 = vadd.f32 %v1807_v11, %v1793_v33  ;;  %v1830_v8 = vadd.f32 %v1829_v14, %v5611_v51 }
 0x4b8   :  { %v5617_v35 = vpop.f32.mrf.mxu1 }
 0x4b9   :  { %v1794_v36 = vmul.f32 %v5617_v35, %v5617_v35  ;;  %v1771_v22 = vadd.f32 %v1770_v49, %v5617_v35  ;;  %v1868_v30 = vadd.f32 %v1867_v21, %v1853_v28 }
 0x4ba   :  { %v5629_v20 = vpop.f32.mrf.mxu1 }
 0x4bb   :  { %v1854_v9 = vmul.f32 %v5629_v20, %v5629_v20  ;;  %v1809_v55 = vadd.f32 %v1808_v15, %v1794_v36  ;;  %v1831_v32 = vadd.f32 %v1830_v8, %v5629_v20 }
 0x4bc   :  { %v5638_v48 = vpop.f32.mrf.mxu1 }
 0x4bd   :  { %v1795_v53 = vmul.f32 %v5638_v48, %v5638_v48  ;;  %v1772_v31 = vadd.f32 %v1771_v22, %v5638_v48  ;;  %v1869_v43 = vadd.f32 %v1868_v30, %v1854_v9 }
 0x4be   :  { %v5646_v5 = vpop.f32.mrf.mxu1 }
 0x4bf   :  { %v1855_v57 = vmul.f32 %v5646_v5, %v5646_v5  ;;  %v1810_v59 = vadd.f32 %v1809_v55, %v1795_v53  ;;  %v1832_v1 = vadd.f32 %v1831_v32, %v5646_v5 }
 0x4c0   :  { %v5654_v10 = vpop.f32.mrf.mxu1 }
 0x4c1   :  { %v1796_v50 = vmul.f32 %v5654_v10, %v5654_v10  ;;  %v1773_v34 = vadd.f32 %v1772_v31, %v5654_v10  ;;  %v1870_v41 = vadd.f32 %v1869_v43, %v1855_v57 }
 0x4c2   :  { %v5662_v17 = vpop.f32.mrf.mxu1 }
 0x4c3   :  { %v1856_v39 = vmul.f32 %v5662_v17, %v5662_v17  ;;  %v1811_v7 = vadd.f32 %v1810_v59, %v1796_v50  ;;  %v1833_v44 = vadd.f32 %v1832_v1, %v5662_v17 }
 0x4c4   :  { %v5670_v27 = vpop.f32.mrf.mxu1 }
 0x4c5   :  { %v1797_v26 = vmul.f32 %v5670_v27, %v5670_v27  ;;  %v1774_v45 = vadd.f32 %v1773_v34, %v5670_v27  ;;  %v1871_v38 = vadd.f32 %v1870_v41, %v1856_v39 }
 0x4c6   :  { %v5678_v62 = vpop.f32.mrf.mxu1 }
 0x4c7   :  { %v1857_v47 = vmul.f32 %v5678_v62, %v5678_v62  ;;  %v1812_v19 = vadd.f32 %v1811_v7, %v1797_v26  ;;  %v1834_v23 = vadd.f32 %v1833_v44, %v5678_v62 }
 0x4c8   :  { %v5686_v3 = vpop.f32.mrf.mxu1 }
 0x4c9   :  { %v1798_v29 = vmul.f32 %v5686_v3, %v5686_v3  ;;  %v1775_v60 = vadd.f32 %v1774_v45, %v5686_v3  ;;  %v1872_v58 = vadd.f32 %v1871_v38, %v1857_v47 }
 0x4ca   :  { %v5694_v0 = vpop.f32.mrf.mxu1 }
 0x4cb   :  { %v1858_v24 = vmul.f32 %v5694_v0, %v5694_v0  ;;  %v1813_v14 = vadd.f32 %v1812_v19, %v1798_v29  ;;  %v1835_v49 = vadd.f32 %v1834_v23, %v5694_v0 }
 0x4cc   :  { %v5702_v40 = vpop.f32.mrf.mxu1 }
 0x4cd   :  { %v1799_v33 = vmul.f32 %v5702_v40, %v5702_v40  ;;  %v1776_v36 = vadd.f32 %v1775_v60, %v5702_v40  ;;  %v1873_v9 = vadd.f32 %v1872_v58, %v1858_v24 }
 0x4ce   :  { %v5710_v4 = vpop.f32.mrf.mxu1 }
 0x4cf   :  { %v1859_v28 = vmul.f32 %v5710_v4, %v5710_v4  ;;  %v1814_v8 = vadd.f32 %v1813_v14, %v1799_v33  ;;  %v1836_v22 = vadd.f32 %v1835_v49, %v5710_v4 }
 0x4d0   :  { %v5718_v11 = vpop.f32.mrf.mxu1 }
 0x4d1   :  { %v1800_v21 = vmul.f32 %v5718_v11, %v5718_v11  ;;  %v1777_v53 = vadd.f32 %v1776_v36, %v5718_v11  ;;  %v1874_v57 = vadd.f32 %v1873_v9, %v1859_v28 }
 0x4d2   :  { %v5724_v15 = vpop.f32.mrf.mxu1 }
 0x4d3   :  { %v1860_v30 = vmul.f32 %v5724_v15, %v5724_v15  ;;  %v1815_v32 = vadd.f32 %v1814_v8, %v1800_v21  ;;  %v1837_v31 = vadd.f32 %v1836_v22, %v5724_v15 }
 0x4d4   :  { %v5730_v55 = vpop.f32.mrf.mxu1 }
 0x4d5   :  { %v1778_v50 = vadd.f32 %v1777_v53, %v5730_v55  ;;  %v1801_v43 = vmul.f32 %v5730_v55, %v5730_v55  ;;  %v1875_v39 = vadd.f32 %v1874_v57, %v1860_v30 }
 0x4d6   :  { %v5736_v59 = vpop.f32.mrf.mxu1 }
 0x4d7   :  { %v1779_v1 = vrot.slane %v1778_v50, 4  ;;  %v1816_v34 = vadd.f32 %v1815_v32, %v1801_v43  ;;  %v1838_v26 = vadd.f32 %v1837_v31, %v5736_v59  ;;  %v1861_v41 = vmul.f32 %v5736_v59, %v5736_v59 }
 0x4d9   :  { %v1780_v47 = vadd.f32 %v1779_v1, %v1778_v50  ;;  %v1817_v7 = vrot.slane %v1816_v34, 4  ;;  %v1839_v44 = vrot.slane %v1838_v26, 4  ;;  %v1876_v45 = vadd.f32 %v1875_v39, %v1861_v41 }
 0x4db   :  { %v1781_v29 = vrot.slane %v1780_v47, 2  ;;  %v1818_v38 = vadd.f32 %v1817_v7, %v1816_v34  ;;  %v1840_v24 = vadd.f32 %v1839_v44, %v1838_v26  ;;  %v1877_v19 = vrot.slane %v1876_v45, 4 }
 0x4dc   :  { %v1890_v7 = vlaneseq }
 0x4dd   :  { %v1782_v23 = vadd.f32 %v1781_v29, %v1780_v47  ;;  %v1819_v60 = vrot.slane %v1818_v38, 2  ;;  %v1841_v33 = vrot.slane %v1840_v24, 2  ;;  %v1878_v58 = vadd.f32 %v1877_v19, %v1876_v45  ;;  %v2199_v29 = vld [vmem:[%s6909_s1 + $0x8] sm:$0xff] }
 0x4de   :  { %v5747_v19 = vshrl.u32 %v1890_v7, 7 }
 0x4df   :  { %v1783_v28 = vrot.slane %v1782_v23, 1  ;;  %v1820_v14 = vadd.f32 %v1819_v60, %v1818_v38  ;;  %v1842_v49 = vadd.f32 %v1841_v33, %v1840_v24  ;;  %v1879_v36 = vrot.slane %v1878_v58, 2  ;;  %v2198_v38 = vld [vmem:[%s6909_s1] sm:$0xff] }
 0x4e0   :  { %6934 = vst [vmem:[#allocation2_spill] sm:$0xff] %v5747_v19  ;;  %v2209_v60 = vunpack.c.1.s8 %v2199_v29  ;;  %v2206_v33 = vunpack.c.0.s8 %v2198_v38 }
 0x4e1   :  { %v1784_v21 = vadd.f32 %v1783_v28, %v1782_v23  ;;  %v1821_v9 = vrot.slane %v1820_v14, 1  ;;  %v1843_v8 = vrot.slane %v1842_v49, 1  ;;  %v1880_v22 = vadd.f32 %v1879_v36, %v1878_v58  ;;  %v5755_v36 = vld [vmem:[%s6909_s1 + $0x18] sm:$0xff] }
 0x4e2   :  { %v2207_v23 = vunpack.c.0.s8 %v2199_v29  ;;  %v2208_v58 = vunpack.c.1.s8 %v2198_v38  ;;  %v2211_v28 = vunpack.c.2.s8 %v2199_v29 }
 0x4e3   :  { %v1785_v53 = vmul.f32 0.0078125, %v1784_v21  ;;  %v1822_v30 = vadd.f32 %v1821_v9, %v1820_v14  ;;  %v1844_v57 = vadd.f32 %v1843_v8, %v1842_v49  ;;  %v1881_v32 = vrot.slane %v1880_v22, 1 }
 0x4e4   :  { %v2213_v14 = vunpack.c.3.s8 %v2199_v29  ;;  %v5750_v49 = vsub.s32 0, %v5747_v19  ;;  %v2239_v21 = vcvt.s32.f32 %v2207_v23  ;;  %v2241_v9 = vcvt.s32.f32 %v2209_v60 }
 0x4e5   :  { %v1823_v31 = vmul.f32 0.0078125, %v1822_v30  ;;  %v1884_v50 = vmul.f32 %v1785_v53, %v1785_v53  ;;  %v1845_v43 = vmul.f32 0.0078125, %v1844_v57  ;;  %v1882_v39 = vadd.f32 %v1881_v32, %v1880_v22 }
 0x4e6   :  { %6935 = vst [vmem:[#allocation3_spill] sm:$0xff] %v5750_v49  ;;  %v2238_v8 = vcvt.s32.f32 %v2206_v33  ;;  %v2240_v22 = vcvt.s32.f32 %v2208_v58  ;;  %v2243_v30 = vcvt.s32.f32 %v2211_v28  ;;  %v2210_v57 = vunpack.c.2.s8 %v2198_v38 }
 0x4e7   :  { %v1886_v1 = vsub.f32 %v1823_v31, %v1884_v50  ;;  %v1885_v34 = vmul.f32 %v1845_v43, %v1845_v43  ;;  %v1883_v26 = vmul.f32 0.0078125, %v1882_v39  ;;  %v2245_v32 = vcvt.s32.f32 %v2213_v14 }
 0x4e8   :  { %v2212_v31 = vunpack.c.3.s8 %v2198_v38  ;;  %v2215_v50 = vunpack.c.0.s8 %v5755_v36  ;;  %v5759_v39 = vrot.slane %v1785_v53, %v5750_v49  ;;  %v5772_v7 = vmul.f32 1.6666666, %v2243_v30  ;;  %v5779_v53 = vld [vmem:[%s6909_s1 + $0x10] sm:$0xff] }
 0x4e9   :  { %v1888_v41 = vmax.f32 %v1886_v1, 0.0  ;;  %v1887_v47 = vsub.f32 %v1883_v26, %v1885_v34  ;;  %v5761_v1 = vmul.f32 1.6666666, %v2239_v21  ;;  %v5763_v34 = vmul.f32 1.6666666, %v2241_v9 }
 0x4ea   :  { %v5765_v26 = vmul.f32 1.6666666, %v2238_v8  ;;  %v5781_v29 = vmul.f32 1.6666666, %v2245_v32  ;;  %v5783_v38 = vcvt.s32.f32 %v2212_v31  ;;  %v1928_v23 = vsub.f32 %v5730_v55, %v5759_v39 }
 0x4eb   :  { %v1930_v44 = vadd.f32 1e-05, %v1888_v41  ;;  %v1889_v45 = vmax.f32 %v1887_v47, 0.0  ;;  %v5768_v41 = vrot.slane %v1845_v43, %v5750_v49  ;;  %v5770_v47 = vmul.f32 1.6666666, %v2240_v22 }
 0x4ec   :  { %v5786_v43 = vcvt.s32.f32 %v2215_v50  ;;  %v1898_v33 = vsub.f32 %v5542_v16, %v5759_v39  ;;  %v1900_v58 = vsub.f32 %v5552_v63, %v5759_v39  ;;  %v1902_v28 = vsub.f32 %v5562_v18, %v5759_v39 }
 0x4ed   :  { %4449 = vrsqrt.f32 %v1930_v44  ;;  %v1931_v24 = vadd.f32 1e-05, %v1889_v45  ;;  %v5774_v44 = vcvt.s32.f32 %v2210_v57  ;;  %v2214_v14 = vunpack.c.0.s8 %v5779_v53 }
 0x4ee   :  { %v2216_v21 = vunpack.c.1.s8 %v5779_v53  ;;  %v2219_v9 = vunpack.c.2.s8 %v5755_v36  ;;  %v1899_v22 = vsub.f32 %v5547_v54, %v5768_v41  ;;  %v1901_v30 = vsub.f32 %v5557_v13, %v5768_v41 }
 0x4ef   :  { %4451 = vrsqrt.f32 %v1931_v24  ;;  %v2217_v24 = vunpack.c.1.s8 %v5755_v36  ;;  %v1903_v57 = vsub.f32 %v5567_v56, %v5768_v41  ;;  %v1905_v32 = vsub.f32 %v5580_v25, %v5768_v41 }
 0x4f0   :  { %v1907_v25 = vsub.f32 %v5590_v61, %v5768_v41 }
 0x4fa   :  { %v4450_v45 = vpop.eup %4449 }
 0x4fb   :  { %v5791_v60 = vrot.slane %v4450_v45, %v5750_v49  ;;  %v1904_v45 = vsub.f32 %v5578_v37, %v5759_v39  ;;  %v1909_v37 = vsub.f32 %v5600_v46, %v5768_v41 }
 0x4fc   :  { %v4452_v8 = vpop.eup %4451 }
 0x4fd   :  { %v5803_v55 = vmul.f32 %v5791_v60, %v1928_v23  ;;  %v5808_v16 = vmul.f32 %v5791_v60, %v1898_v33  ;;  %v5811_v63 = vmul.f32 %v5791_v60, %v1900_v58  ;;  %v5814_v18 = vrot.slane %v4452_v8, %v5750_v49 }
 0x4fe   :  { %v5842_v58 = vmul.f32 %v5791_v60, %v1902_v28  ;;  %v1906_v28 = vsub.f32 %v5588_v42, %v5759_v39  ;;  %v2248_v49 = vcvt.s32.f32 %v2216_v21  ;;  %v5903_v21 = vmul.f32 1.6666666, %v5786_v43 }
 0x4ff   :  { %6936 = vst [vmem:[#allocation4_spill] sm:$0xff] %v5803_v55  ;;  %v3752_v54 = vmul.f32 -1.442695, %v5803_v55  ;;  %v3722_v31 = vmul.f32 -1.442695, %v5808_v16  ;;  %v5828_v23 = vmul.f32 %v5814_v18, %v1899_v22  ;;  %v5831_v13 = vmul.f32 %v5814_v18, %v1901_v30 }
 0x500   :  { %v3724_v50 = vmul.f32 -1.442695, %v5811_v63  ;;  %v5834_v56 = vmul.f32 %v5814_v18, %v1903_v57  ;;  %v5839_v33 = vmul.f32 %v5814_v18, %v1905_v32  ;;  %v5849_v30 = vmul.f32 %v5791_v60, %v1904_v45 }
 0x501   :  { %4453 = vpow2.f32 %v3752_v54  ;;  %v3723_v8 = vmul.f32 -1.442695, %v5828_v23  ;;  %v3725_v22 = vmul.f32 -1.442695, %v5831_v13  ;;  %v5853_v57 = vmul.f32 %v5814_v18, %v1907_v25 }
 0x502   :  { %4455 = vpow2.f32 %v3722_v31  ;;  %v3727_v61 = vmul.f32 -1.442695, %v5834_v56  ;;  %v3729_v32 = vmul.f32 -1.442695, %v5839_v33  ;;  %v5859_v46 = vmul.f32 %v5814_v18, %v1909_v37 }
 0x503   :  { %4457 = vpow2.f32 %v3724_v50  ;;  %v1908_v54 = vsub.f32 %v5598_v52, %v5759_v39  ;;  %v2221_v31 = vunpack.c.3.s8 %v5755_v36  ;;  %v3726_v50 = vmul.f32 -1.442695, %v5842_v58 }
 0x504   :  { %4459 = vpow2.f32 %v3723_v8  ;;  %v5866_v45 = vmul.f32 %v5791_v60, %v1906_v28  ;;  %v1911_v25 = vsub.f32 %v5607_v2, %v5768_v41  ;;  %v3728_v42 = vmul.f32 -1.442695, %v5849_v30 }
 0x505   :  { %4461 = vpow2.f32 %v3725_v22  ;;  %v5872_v37 = vmul.f32 %v5791_v60, %v1908_v54  ;;  %v1913_v52 = vsub.f32 %v5611_v51, %v5768_v41  ;;  %v1929_v36 = vsub.f32 %v5736_v59, %v5768_v41 }
 0x506   :  { %6937 = vst [vmem:[#allocation5_spill] sm:$0xff] %v5866_v45  ;;  %4463 = vpow2.f32 %v3727_v61  ;;  %v3731_v8 = vmul.f32 -1.442695, %v5853_v57  ;;  %v5880_v28 = vmul.f32 %v5814_v18, %v1911_v25  ;;  %v3733_v2 = vmul.f32 -1.442695, %v5859_v46 }
 0x507   :  { %6938 = vst [vmem:[#allocation6_spill] sm:$0xff] %v5872_v37  ;;  %4465 = vpow2.f32 %v3729_v32  ;;  %v2249_v22 = vcvt.s32.f32 %v2217_v24  ;;  %v5884_v19 = vmul.f32 %v5814_v18, %v1913_v52  ;;  %v5887_v54 = vmul.f32 %v5814_v18, %v1929_v36 }
 0x508   :  { %4467 = vpow2.f32 %v3726_v50  ;;  %v3730_v51 = vmul.f32 -1.442695, %v5866_v45  ;;  %v2246_v59 = vcvt.s32.f32 %v2214_v14  ;;  %v3732_v61 = vmul.f32 -1.442695, %v5872_v37 }
 0x509   :  { %6939 = vst [vmem:[#allocation7_spill] sm:$0xff] %v5887_v54  ;;  %4469 = vpow2.f32 %v3728_v42  ;;  %v2251_v25 = vcvt.s32.f32 %v2219_v9  ;;  %v3735_v32 = vmul.f32 -1.442695, %v5880_v28  ;;  %v2253_v55 = vcvt.s32.f32 %v2221_v31 }
 0x50a   :  { %4471 = vpow2.f32 %v3731_v8  ;;  %v2218_v24 = vunpack.c.2.s8 %v5779_v53  ;;  %v5894_v52 = vmul.f32 1.6666666, %v5774_v44  ;;  %v3737_v50 = vmul.f32 -1.442695, %v5884_v19 }
 0x50b   :  { %4473 = vpow2.f32 %v3733_v2  ;;  %v2220_v36 = vunpack.c.3.s8 %v5779_v53  ;;  %v3753_v14 = vmul.f32 -1.442695, %v5887_v54  ;;  %v5900_v42 = vmul.f32 1.6666666, %v5783_v38 }
 0x50c   :  { %4475 = vpow2.f32 %v3730_v51  ;;  %v5905_v31 = vmul.f32 1.6666666, %v2249_v22  ;;  %v5907_v44 = vmul.f32 1.6666666, %v2246_v59  ;;  %v5909_v8 = vmul.f32 1.6666666, %v2248_v49 }
 0x50d   :  { %4477 = vpow2.f32 %v3732_v61  ;;  %v5911_v53 = vmul.f32 1.6666666, %v2251_v25  ;;  %v5913_v54 = vmul.f32 1.6666666, %v2253_v55  ;;  %v5915_v38 = vcvt.s32.f32 %v2218_v24 }
 0x50e   :  { %v4454_v9 = vpop.eup %4453  ;;  %4479 = vpow2.f32 %v3735_v32  ;;  %v5917_v51 = vcvt.s32.f32 %v2220_v36  ;;  %v1910_v49 = vsub.f32 %v5605_v12, %v5759_v39  ;;  %v1912_v59 = vsub.f32 %v5609_v6, %v5759_v39 }
 0x50f   :  { %v4456_v2 = vpop.eup %4455  ;;  %v2100_v43 = vadd.f32 1.0, %v4454_v9  ;;  %4481 = vpow2.f32 %v3737_v50  ;;  %v1915_v55 = vsub.f32 %v5629_v20, %v5768_v41  ;;  %v1917_v25 = vsub.f32 %v5646_v5, %v5768_v41 }
 0x510   :  { %v4458_v37 = vpop.eup %4457  ;;  %v2070_v45 = vadd.f32 1.0, %v4456_v2  ;;  %4483 = vpow2.f32 %v3753_v14  ;;  %v1914_v32 = vsub.f32 %v5617_v35, %v5759_v39  ;;  %v1916_v12 = vsub.f32 %v5638_v48, %v5759_v39 }
 0x511   :  { %v2072_v22 = vadd.f32 1.0, %v4458_v37  ;;  %v4460_v61 = vpop.eup %4459  ;;  %v1919_v6 = vsub.f32 %v5662_v17, %v5768_v41  ;;  %v1921_v20 = vsub.f32 %v5678_v62, %v5768_v41  ;;  %v1918_v5 = vsub.f32 %v5654_v10, %v5759_v39 }
 0x512   :  { %4485 = vrcp.f32 %v2070_v45  ;;  %v4462_v24 = vpop.eup %4461  ;;  %v2071_v50 = vadd.f32 1.0, %v4460_v61  ;;  %v1920_v14 = vsub.f32 %v5670_v27, %v5759_v39  ;;  %v1923_v48 = vsub.f32 %v5694_v0, %v5768_v41 }
 0x513   :  { %4487 = vrcp.f32 %v2072_v22  ;;  %v4464_v37 = vpop.eup %4463  ;;  %v2073_v45 = vadd.f32 1.0, %v4462_v24  ;;  %v5942_v2 = vmul.f32 %v5791_v60, %v1910_v49  ;;  %v5945_v62 = vmul.f32 %v5791_v60, %v1912_v59 }
 0x514   :  { %4489 = vrcp.f32 %v2100_v43  ;;  %v4466_v36 = vpop.eup %4465  ;;  %v2075_v35 = vadd.f32 1.0, %v4464_v37  ;;  %v1925_v22 = vsub.f32 %v5710_v4, %v5768_v41  ;;  %v1922_v27 = vsub.f32 %v5686_v3, %v5759_v39 }
 0x515   :  { %4491 = vrcp.f32 %v2071_v50  ;;  %v4468_v9 = vpop.eup %4467  ;;  %v2077_v17 = vadd.f32 1.0, %v4466_v36  ;;  %v1924_v24 = vsub.f32 %v5702_v40, %v5759_v39  ;;  %v5956_v37 = vmul.f32 %v5814_v18, %v1915_v55 }
 0x516   :  { %4493 = vrcp.f32 %v2073_v45  ;;  %v4470_v43 = vpop.eup %4469  ;;  %v2074_v10 = vadd.f32 1.0, %v4468_v9  ;;  %v3734_v36 = vmul.f32 -1.442695, %v5942_v2 }
 0x517   :  { %4495 = vrcp.f32 %v2075_v35  ;;  %v4472_v61 = vpop.eup %4471  ;;  %v2076_v0 = vadd.f32 1.0, %v4470_v43  ;;  %v3736_v35 = vmul.f32 -1.442695, %v5945_v62  ;;  %v5966_v43 = vmul.f32 %v5791_v60, %v1914_v32 }
 0x518   :  { %4497 = vrcp.f32 %v2077_v17  ;;  %v4474_v59 = vpop.eup %4473  ;;  %v2079_v50 = vadd.f32 1.0, %v4472_v61  ;;  %v5963_v17 = vmul.f32 %v5814_v18, %v1917_v25  ;;  %v5969_v61 = vmul.f32 %v5791_v60, %v1916_v12 }
 0x519   :  { %4499 = vrcp.f32 %v2074_v10  ;;  %v4476_v45 = vpop.eup %4475  ;;  %v2081_v3 = vadd.f32 1.0, %v4474_v59  ;;  %6941 = vst [vmem:[#allocation9_spill] sm:$0xff] %v5966_v43  ;;  %v5976_v25 = vmul.f32 %v5814_v18, %v1921_v20  ;;  %v5984_v12 = vmul.f32 %v5791_v60, %v1920_v14 }
 0x51a   :  { %4501 = vrcp.f32 %v2076_v0  ;;  %v4478_v40 = vpop.eup %4477  ;;  %v2078_v9 = vadd.f32 1.0, %v4476_v45  ;;  %6940 = vst [vmem:[#allocation8_spill] sm:$0xff] %v5963_v17  ;;  %v5972_v0 = vmul.f32 %v5814_v18, %v1919_v6 }
 0x51b   :  { %4503 = vrcp.f32 %v2079_v50  ;;  %v4480_v55 = vpop.eup %4479  ;;  %v2080_v10 = vadd.f32 1.0, %v4478_v40  ;;  %v3739_v50 = vmul.f32 -1.442695, %v5956_v37  ;;  %6942 = vst [vmem:[#allocation10_spill] sm:$0xff] %v5976_v25  ;;  %6944 = vst [vmem:[#allocation12_spill] sm:$0xff] %v5984_v12 }
 0x51c   :  { %4505 = vrcp.f32 %v2081_v3  ;;  %v4482_v59 = vpop.eup %4481  ;;  %v2083_v4 = vadd.f32 1.0, %v4480_v55  ;;  %v5981_v3 = vmul.f32 %v5791_v60, %v1918_v5  ;;  %v3741_v40 = vmul.f32 -1.442695, %v5963_v17 }
 0x51d   :  { %4507 = vrcp.f32 %v2078_v9  ;;  %v5978_v45 = vpop.eup %4483  ;;  %v2085_v32 = vadd.f32 1.0, %v4482_v59  ;;  %v3738_v9 = vmul.f32 -1.442695, %v5966_v43  ;;  %v5989_v55 = vmul.f32 %v5814_v18, %v1923_v48 }
 0x51e   :  { %4509 = vrcp.f32 %v2080_v10  ;;  %6943 = vst [vmem:[#allocation11_spill] sm:$0xff] %v5981_v3  ;;  %v3740_v10 = vmul.f32 -1.442695, %v5969_v61  ;;  %v3743_v5 = vmul.f32 -1.442695, %v5972_v0  ;;  %v5999_v43 = vmul.f32 %v5814_v18, %v1925_v22 }
 0x51f   :  { %v4486_v6 = vpop.eup %4485  ;;  %4511 = vrcp.f32 %v2083_v4  ;;  %v3745_v4 = vmul.f32 -1.442695, %v5976_v25  ;;  %v3742_v17 = vmul.f32 -1.442695, %v5981_v3 }
 0x520   :  { %v4488_v20 = vpop.eup %4487  ;;  %v2166_v49 = vmul.f32 %v4486_v6, %v5808_v16  ;;  %4513 = vrcp.f32 %v2085_v32  ;;  %v3744_v16 = vmul.f32 -1.442695, %v5984_v12  ;;  %v6004_v32 = vmul.f32 %v5791_v60, %v1922_v27 }
 0x521   :  { %v5994_v59 = vpop.eup %4489  ;;  %v2168_v14 = vmul.f32 %v4488_v20, %v5811_v63  ;;  %4515 = vpow2.f32 %v3734_v36  ;;  %v3747_v63 = vmul.f32 -1.442695, %v5989_v55  ;;  %v6009_v36 = vmul.f32 %v5791_v60, %v1924_v24 }
 0x522   :  { %6945 = vst [vmem:[#allocation13_spill] sm:$0xff] %v5994_v59  ;;  %v4492_v48 = vpop.eup %4491  ;;  %4517 = vpow2.f32 %v3736_v35  ;;  %v2302_v35 = vmul.f32 %v5765_v26, %v2166_v49  ;;  %v6947_v49 = vsub.f32 %v5718_v11, %v5759_v39 }
 0x523   :  { %v4494_v6 = vpop.eup %4493  ;;  %v2167_v59 = vmul.f32 %v4492_v48, %v5828_v23  ;;  %4519 = vpow2.f32 %v3739_v50  ;;  %v2304_v3 = vmul.f32 %v5770_v47, %v2168_v14  ;;  %v3749_v23 = vmul.f32 -1.442695, %v5999_v43 }
 0x524   :  { %v4496_v22 = vpop.eup %4495  ;;  %v2169_v20 = vmul.f32 %v4494_v6, %v5831_v13  ;;  %4521 = vpow2.f32 %v3741_v40  ;;  %v3746_v13 = vmul.f32 -1.442695, %v6004_v32 }
 0x525   :  { %v4498_v12 = vpop.eup %4497  ;;  %v2303_v27 = vmul.f32 %v5761_v1, %v2167_v59  ;;  %v2171_v25 = vmul.f32 %v4496_v22, %v5834_v56  ;;  %4523 = vpow2.f32 %v3738_v9  ;;  %v6946_v1 = vsub.f32 %v5724_v15, %v5768_v41 }
 0x526   :  { %v4500_v50 = vpop.eup %4499  ;;  %v2305_v24 = vmul.f32 %v5763_v34, %v2169_v20  ;;  %v2173_v48 = vmul.f32 %v4498_v12, %v5839_v33  ;;  %4525 = vpow2.f32 %v3740_v10  ;;  %v6031_v34 = vmul.f32 %v5791_v60, %v6947_v49 }
 0x527   :  { %v4502_v26 = vpop.eup %4501  ;;  %v2307_v47 = vmul.f32 %v5772_v7, %v2171_v25  ;;  %4527 = vpow2.f32 %v3743_v5  ;;  %v6025_v56 = vmul.f32 %v5814_v18, %v6946_v1  ;;  %v2334_v40 = vpack.c.bf16 %v2304_v3, %v2302_v35  ;;  %v6037_v7 = vld [vmem:[%s6909_s1 + $0x28] sm:$0xff] }
 0x528   :  { %v4504_v33 = vpop.eup %4503  ;;  %v2335_v12 = vpack.c.bf16 %v2305_v24, %v2303_v27  ;;  %v2309_v9 = vmul.f32 %v5781_v29, %v2173_v48  ;;  %4529 = vpow2.f32 %v3745_v4  ;;  %v2170_v41 = vmul.f32 %v4500_v50, %v5842_v58  ;;  %v6949_v24 = vld [vmem:[#allocation6_spill] sm:$0xff] }
 0x529   :  { %v4506_v15 = vpop.eup %4505  ;;  %v2172_v18 = vmul.f32 %v4502_v26, %v5849_v30  ;;  %v2175_v11 = vmul.f32 %v4504_v33, %v5853_v57  ;;  %4531 = vpow2.f32 %v3742_v17  ;;  %v3748_v29 = vmul.f32 -1.442695, %v6009_v36 }
 0x52a   :  { %v4508_v39 = vpop.eup %4507  ;;  %2574 = vmatprep.mubr.bf16.mxu0 %v2335_v12  ;;  %v2337_v60 = vpack.c.bf16 %v2309_v9, %v2307_v47  ;;  %v2177_v25 = vmul.f32 %v4506_v15, %v5859_v46  ;;  %4533 = vpow2.f32 %v3744_v16  ;;  %v2223_v5 = vunpack.c.0.s8 %v6037_v7 }
 0x52b   :  { %v4510_v3 = vpop.eup %4509  ;;  %2575 = vmatmul.mubr.bf16.vlgmr.msra.gmra.mxu0 %v2334_v40  ;;  %v2311_v10 = vmul.f32 %v5903_v21, %v2175_v11  ;;  %4535 = vpow2.f32 %v3747_v63  ;;  %v3751_v58 = vmul.f32 -1.442695, %v6025_v56  ;;  %v2225_v17 = vunpack.c.1.s8 %v6037_v7 }
 0x52c   :  { %v4512_v30 = vpop.eup %4511  ;;  %2584 = vmatprep.mubr.bf16.mxu0 %v2337_v60  ;;  %v2313_v57 = vmul.f32 %v5905_v31, %v2177_v25  ;;  %4537 = vpow2.f32 %v3749_v23  ;;  %v3750_v46 = vmul.f32 -1.442695, %v6031_v34  ;;  %v2306_v14 = vmul.f32 %v5894_v52, %v2170_v41 }
 0x52d   :  { %v4514_v59 = vpop.eup %4513  ;;  %v2308_v4 = vmul.f32 %v5900_v42, %v2172_v18  ;;  %v2179_v21 = vmul.f32 %v4512_v30, %v5880_v28  ;;  %4539 = vpow2.f32 %v3746_v13  ;;  %v6055_v22 = vmul.f32 1.6666666, %v5915_v38  ;;  %v6066_v28 = vld [vmem:[%s6909_s1 + $0x20] sm:$0xff] }
 0x52e   :  { %v4516_v16 = vpop.eup %4515  ;;  %v2339_v6 = vpack.c.bf16 %v2313_v57, %v2311_v10  ;;  %v2181_v63 = vmul.f32 %v4514_v59, %v5884_v19  ;;  %4541 = vpow2.f32 %v3748_v29  ;;  %v6061_v52 = vmul.f32 1.6666666, %v5917_v51  ;;  %v6948_v19 = vld [vmem:[#allocation5_spill] sm:$0xff] }
 0x52f   :  { %v4518_v31 = vpop.eup %4517  ;;  %v6058_v20 = vmul.f32 %v5911_v53, %v2179_v21  ;;  %v2082_v35 = vadd.f32 1.0, %v4516_v16  ;;  %4543 = vpow2.f32 %v3751_v58  ;;  %v2174_v27 = vmul.f32 %v4508_v39, %v6948_v19  ;;  %v6086_v21 = vld [vmem:[%s6909_s1 + $0x38] sm:$0xff]  ;;  %v6091_v19 = vld [vmem:[%s6909_s1 + $0x30] sm:$0xff] }
 0x530   :  { %v4520_v42 = vpop.eup %4519  ;;  %v6070_v38 = vmul.f32 %v5913_v54, %v2181_v63  ;;  %v2084_v23 = vadd.f32 1.0, %v4518_v31  ;;  %4545 = vpow2.f32 %v3750_v46  ;;  %v2336_v50 = vpack.c.bf16 %v2308_v4, %v2306_v14 }
 0x531   :  { %v4522_v53 = vpop.eup %4521  ;;  %v2176_v48 = vmul.f32 %v4510_v3, %v6949_v24  ;;  %4547 = vrcp.f32 %v2082_v35  ;;  %v2087_v51 = vadd.f32 1.0, %v4520_v42  ;;  %v2222_v1 = vunpack.c.0.s8 %v6066_v28 }
 0x532   :  { %v4524_v13 = vpop.eup %4523  ;;  %v2341_v26 = vpack.c.bf16 %v6070_v38, %v6058_v20  ;;  %4549 = vrcp.f32 %v2084_v23  ;;  %v2089_v47 = vadd.f32 1.0, %v4522_v53  ;;  %v2255_v54 = vcvt.s32.f32 %v2223_v5 }
 0x533   :  { %v4526_v49 = vpop.eup %4525  ;;  %2585 = vmatmul.mubr.bf16.gmra.mxu0 %v2336_v50  ;;  %4551 = vrcp.f32 %v2087_v51  ;;  %v2086_v33 = vadd.f32 1.0, %v4524_v13  ;;  %v2224_v12 = vunpack.c.1.s8 %v6066_v28  ;;  %v2227_v15 = vunpack.c.2.s8 %v6037_v7 }
 0x534   :  { %v4528_v40 = vpop.eup %4527  ;;  %2594 = vmatprep.mubr.bf16.mxu0 %v2339_v6  ;;  %4553 = vrcp.f32 %v2089_v47  ;;  %v2088_v9 = vadd.f32 1.0, %v4526_v49  ;;  %v2229_v41 = vunpack.c.3.s8 %v6037_v7  ;;  %v2310_v11 = vmul.f32 %v5907_v44, %v2174_v27 }
 0x535   :  { %v4530_v18 = vpop.eup %4529  ;;  %v2312_v39 = vmul.f32 %v5909_v8, %v2176_v48  ;;  %4555 = vrcp.f32 %v2086_v33  ;;  %v2091_v60 = vadd.f32 1.0, %v4528_v40  ;;  %v2257_v29 = vcvt.s32.f32 %v2225_v17 }
 0x536   :  { %v4532_v25 = vpop.eup %4531  ;;  %4557 = vrcp.f32 %v2088_v9  ;;  %v2254_v3 = vcvt.s32.f32 %v2222_v1  ;;  %v2093_v10 = vadd.f32 1.0, %v4530_v18  ;;  %v2226_v30 = vunpack.c.2.s8 %v6066_v28 }
 0x537   :  { %v4534_v5 = vpop.eup %4533  ;;  %4559 = vrcp.f32 %v2091_v60  ;;  %v2090_v58 = vadd.f32 1.0, %v4532_v25  ;;  %v2228_v57 = vunpack.c.3.s8 %v6066_v28  ;;  %v2256_v46 = vcvt.s32.f32 %v2224_v12 }
 0x538   :  { %v4536_v7 = vpop.eup %4535  ;;  %4561 = vrcp.f32 %v2093_v10  ;;  %v2259_v44 = vcvt.s32.f32 %v2227_v15  ;;  %v2092_v59 = vadd.f32 1.0, %v4534_v5  ;;  %v2338_v14 = vpack.c.bf16 %v2312_v39, %v2310_v11  ;;  %v6950_v10 = vld [vmem:[#allocation8_spill] sm:$0xff] }
 0x539   :  { %v4538_v8 = vpop.eup %4537  ;;  %v2261_v4 = vcvt.s32.f32 %v2229_v41  ;;  %4563 = vrcp.f32 %v2090_v58  ;;  %v2095_v17 = vadd.f32 1.0, %v4536_v7  ;;  %v2287_v6 = vmul.f32 1.6666666, %v2255_v54 }
 0x53a   :  { %v4540_v16 = vpop.eup %4539  ;;  %v2289_v63 = vmul.f32 1.6666666, %v2257_v29  ;;  %4565 = vrcp.f32 %v2092_v59  ;;  %v2097_v31 = vadd.f32 1.0, %v4538_v8  ;;  %v2258_v35 = vcvt.s32.f32 %v2226_v30 }
 0x53b   :  { %v4542_v20 = vpop.eup %4541  ;;  %2595 = vmatmul.mubr.bf16.gmra.mxu0 %v2338_v14  ;;  %v2260_v28 = vcvt.s32.f32 %v2228_v57  ;;  %4567 = vrcp.f32 %v2095_v17  ;;  %v2094_v42 = vadd.f32 1.0, %v4540_v16  ;;  %v2286_v38 = vmul.f32 1.6666666, %v2254_v3 }
 0x53c   :  { %v4544_v27 = vpop.eup %4543  ;;  %2604 = vmatprep.mubr.bf16.mxu0 %v2341_v26  ;;  %4569 = vrcp.f32 %v2097_v31  ;;  %v2231_v23 = vunpack.c.0.s8 %v6086_v21  ;;  %v2096_v53 = vadd.f32 1.0, %v4542_v20  ;;  %v2288_v24 = vmul.f32 1.6666666, %v2256_v46  ;;  %v6952_v20 = vld [vmem:[#allocation10_spill] sm:$0xff] }
 0x53d   :  { %v4546_v50 = vpop.eup %4545  ;;  %v2291_v48 = vmul.f32 1.6666666, %v2259_v44  ;;  %v2293_v51 = vmul.f32 1.6666666, %v2261_v4  ;;  %4571 = vrcp.f32 %v2094_v42  ;;  %v2233_v47 = vunpack.c.1.s8 %v6086_v21 }
 0x53e   :  { %v4548_v13 = vpop.eup %4547  ;;  %4573 = vrcp.f32 %v2096_v53  ;;  %v2230_v1 = vunpack.c.0.s8 %v6091_v19  ;;  %v2098_v49 = vadd.f32 1.0, %v4546_v50  ;;  %v2290_v33 = vmul.f32 1.6666666, %v2258_v35 }
 0x53f   :  { %v4550_v54 = vpop.eup %4549  ;;  %v2178_v26 = vmul.f32 %v4548_v13, %v5942_v2  ;;  %v2292_v12 = vmul.f32 1.6666666, %v2260_v28  ;;  %v2232_v40 = vunpack.c.1.s8 %v6091_v19  ;;  %v2101_v15 = vadd.f32 1.0, %v5978_v45 }
 0x540   :  { %v4552_v9 = vpop.eup %4551  ;;  %v2180_v41 = vmul.f32 %v4550_v54, %v5945_v62  ;;  %v2263_v18 = vcvt.s32.f32 %v2231_v23  ;;  %4575 = vrcp.f32 %v2098_v49  ;;  %v2099_v25 = vadd.f32 1.0, %v4544_v27  ;;  %v6951_v62 = vld [vmem:[#allocation9_spill] sm:$0xff]  ;;  %v6953_v27 = vld [vmem:[#allocation11_spill] sm:$0xff] }
 0x541   :  { %v4554_v11 = vpop.eup %4553  ;;  %v2314_v39 = vmul.f32 %v6055_v22, %v2178_v26  ;;  %v2183_v60 = vmul.f32 %v4552_v9, %v5956_v37  ;;  %v2236_v29 = vunpack.c.3.s8 %v6091_v19  ;;  %v2265_v58 = vcvt.s32.f32 %v2233_v47  ;;  %v6955_v9 = vld [vmem:[#allocation4_spill] sm:$0xff] }
 0x542   :  { %v4556_v2 = vpop.eup %4555  ;;  %v2316_v3 = vmul.f32 %v6061_v52, %v2180_v41  ;;  %v2185_v5 = vmul.f32 %v4554_v11, %v6950_v10  ;;  %v2262_v30 = vcvt.s32.f32 %v2230_v1  ;;  %v2264_v46 = vcvt.s32.f32 %v2232_v40 }
 0x543   :  { %v4558_v45 = vpop.eup %4557  ;;  %v2319_v57 = vmul.f32 %v2287_v6, %v2183_v60  ;;  %v2182_v7 = vmul.f32 %v4556_v2, %v6951_v62  ;;  %v2234_v44 = vunpack.c.2.s8 %v6091_v19  ;;  %4577 = vrcp.f32 %v2101_v15 }
 0x544   :  { %v4560_v22 = vpop.eup %4559  ;;  %v2340_v37 = vpack.c.bf16 %v2316_v3, %v2314_v39  ;;  %v2321_v59 = vmul.f32 %v2289_v63, %v2185_v5  ;;  %v2184_v8 = vmul.f32 %v4558_v45, %v5969_v61  ;;  %4579 = vrcp.f32 %v2099_v25 }
 0x545   :  { %v4562_v14 = vpop.eup %4561  ;;  %v2318_v4 = vmul.f32 %v2286_v38, %v2182_v7  ;;  %v2187_v52 = vmul.f32 %v4560_v22, %v5972_v0  ;;  %v2268_v17 = vcvt.s32.f32 %v2236_v29  ;;  %v2295_v28 = vmul.f32 1.6666666, %v2263_v18  ;;  %v6954_v0 = vld [vmem:[#allocation12_spill] sm:$0xff] }
 0x546   :  { %v4564_v16 = vpop.eup %4563  ;;  %2605 = vmatmul.mubr.bf16.gmra.mxu0 %v2340_v37  ;;  %v2343_v6 = vpack.c.bf16 %v2321_v59, %v2319_v57  ;;  %v2320_v31 = vmul.f32 %v2288_v24, %v2184_v8  ;;  %v2189_v35 = vmul.f32 %v4562_v14, %v6952_v20  ;;  %v2297_v63 = vmul.f32 1.6666666, %v2265_v58  ;;  %v4209_v20 = vld [vmem:[%s6910_s8 + $0x50] ss:$8 sps:$4 sm:$0xff]  }
 0x547   :  { %v4566_v42 = vpop.eup %4565  ;;  %v2323_v19 = vmul.f32 %v2291_v48, %v2187_v52  ;;  %v2186_v23 = vmul.f32 %v4564_v16, %v6953_v27  ;;  %v2294_v53 = vmul.f32 1.6666666, %v2262_v30  ;;  %v2266_v47 = vcvt.s32.f32 %v2234_v44  ;;  %v6956_v48 = vld [vmem:[#allocation13_spill] sm:$0xff]  ;;  %v6957_v44 = vld [vmem:[#allocation7_spill] sm:$0xff] }
 0x548   :  { %v4568_v61 = vpop.eup %4567  ;;  %2614 = vmatprep.mubr.bf16.mxu0 %v2343_v6  ;;  %v2342_v38 = vpack.c.bf16 %v2320_v31, %v2318_v4  ;;  %v2325_v50 = vmul.f32 %v2293_v51, %v2189_v35  ;;  %v2188_v13 = vmul.f32 %v4566_v42, %v6954_v0  ;;  %v2296_v54 = vmul.f32 1.6666666, %v2264_v46  ;;  %v4205_v4 = vld [vmem:[%s6910_s8 + $0x74] ss:$8 sps:$4 sm:$0xff]   ;;  %v4203_v52 = vld [vmem:[%s6910_s8 + $0x70] ss:$8 sps:$4 sm:$0xff]  }
 0x549   :  { %v4570_v1 = vpop.eup %4569  ;;  %v2322_v49 = vmul.f32 %v2290_v33, %v2186_v23  ;;  %v2191_v24 = vmul.f32 %v4568_v61, %v5989_v55  ;;  %v2300_v26 = vmul.f32 1.6666666, %v2268_v17  ;;  %v2196_v15 = vmul.f32 %v6956_v48, %v6955_v9  ;;  %3445 = vmatprep.subr.bf16.mxu1 %v4205_v4  ;;  %v4206_v17 = vld [vmem:[%s6910_s8 + $0x60] ss:$8 sps:$4 sm:$0xff]   ;;  %v4211_v31 = vld [vmem:[%s6910_s8 + $0x54] ss:$8 sps:$4 sm:$0xff]  }
 0x54a   :  { %v4572_v40 = vpop.eup %4571  ;;  %v2345_v41 = vpack.c.bf16 %v2325_v50, %v2323_v19  ;;  %v2324_v18 = vmul.f32 %v2292_v12, %v2188_v13  ;;  %v2193_v11 = vmul.f32 %v4570_v1, %v5999_v43  ;;  %v2298_v2 = vmul.f32 1.6666666, %v2266_v47  ;;  %3446 = vmatpush1.bf16.msra.mxu1 %v4203_v52  ;;  %v4214_v42 = vld [vmem:[%s6910_s8 + $0x44] ss:$8 sps:$4 sm:$0xff]   ;;  %v4212_v19 = vld [vmem:[%s6910_s8 + $0x40] ss:$8 sps:$4 sm:$0xff]  }
 0x54b   :  { %v4574_v39 = vpop.eup %4573  ;;  %v2327_v60 = vmul.f32 %v2295_v28, %v2191_v24  ;;  %v2190_v51 = vmul.f32 %v4572_v40, %v6004_v32  ;;  %v2235_v10 = vunpack.c.2.s8 %v6086_v21  ;;  %v2237_v5 = vunpack.c.3.s8 %v6086_v21  ;;  %v4220_v50 = vld [vmem:[%s6910_s8 + $0x24] ss:$8 sps:$4 sm:$0xff]   ;;  %v4223_v13 = vld [vmem:[%s6910_s8 + $0x14] ss:$8 sps:$4 sm:$0xff]   ;;  %v4221_v1 = vld [vmem:[%s6910_s8 + $0x10] ss:$8 sps:$4 sm:$0xff]  }
 0x54c   :  { %v2344_v25 = vpack.c.bf16 %v2324_v18, %v2322_v49  ;;  %v2329_v29 = vmul.f32 %v2297_v63, %v2193_v11  ;;  %v2192_v33 = vmul.f32 %v4574_v39, %v6009_v36  ;;  %v2332_v30 = vmul.f32 %v2300_v26, %v2196_v15  ;;  %v4217_v63 = vld [vmem:[%s6910_s8 + $0x34] ss:$8 sps:$4 sm:$0xff]   ;;  %v4226_v24 = vld [vmem:[%s6910_s8 + $0x4] ss:$8 sps:$4 sm:$0xff]   ;;  %v4224_v26 = vld [vmem:[%s6910_s8] ss:$8 sps:$4 sm:$0xff]  }
 0x54d   :  { %v4576_v55 = vpop.eup %4575  ;;  %v2326_v3 = vmul.f32 %v2294_v53, %v2190_v51  ;;  %v2267_v62 = vcvt.s32.f32 %v2235_v10  ;;  %v2269_v7 = vcvt.s32.f32 %v2237_v5  ;;  %v4215_v53 = vld [vmem:[%s6910_s8 + $0x30] ss:$8 sps:$4 sm:$0xff]   ;;  %v4229_v40 = vld [vmem:[%s6910_s8 + $0xf4] ss:$8 sps:$4 sm:$0xff]   ;;  %v4232_v15 = vld [vmem:[%s6910_s8 + $0xe4] ss:$8 sps:$4 sm:$0xff]  }
 0x54e   :  { %2615 = vmatmul.mubr.bf16.gmra.mxu0 %v2342_v38  ;;  %v2347_v58 = vpack.c.bf16 %v2329_v29, %v2327_v60  ;;  %v2328_v12 = vmul.f32 %v2296_v54, %v2192_v33  ;;  %v2194_v43 = vmul.f32 %v4576_v55, %v6031_v34  ;;  %v4218_v38 = vld [vmem:[%s6910_s8 + $0x20] ss:$8 sps:$4 sm:$0xff]   ;;  %v4227_v48 = vld [vmem:[%s6910_s8 + $0xf0] ss:$8 sps:$4 sm:$0xff]   ;;  %v4235_v39 = vld [vmem:[%s6910_s8 + $0xd4] ss:$8 sps:$4 sm:$0xff]  }
 0x54f   :  { %2624 = vmatprep.mubr.bf16.mxu0 %v2345_v41  ;;  %v2299_v59 = vmul.f32 1.6666666, %v2267_v62  ;;  %v2301_v21 = vmul.f32 1.6666666, %v2269_v7  ;;  %v4230_v11 = vld [vmem:[%s6910_s8 + $0xe0] ss:$8 sps:$4 sm:$0xff]  }
 0x550   :  { %v2346_v45 = vpack.c.bf16 %v2328_v12, %v2326_v3  ;;  %v2330_v32 = vmul.f32 %v2298_v2, %v2194_v43  ;;  %v4578_v57 = vpop.eup %4577  ;;  %v4238_v33 = vld [vmem:[%s6910_s8 + $0xc4] ss:$8 sps:$4 sm:$0xff]   ;;  %v4241_v7 = vld [vmem:[%s6910_s8 + $0xb4] ss:$8 sps:$4 sm:$0xff]   ;;  %v4239_v4 = vld [vmem:[%s6910_s8 + $0xb0] ss:$8 sps:$4 sm:$0xff]  }
 0x551   :  { %v4580_v36 = vpop.eup %4579  ;;  %v2197_v22 = vmul.f32 %v4578_v57, %v6957_v44 }
 0x552   :  { %v2348_v46 = vpack.c.bf16 %v2332_v30, %v2330_v32  ;;  %v2195_v37 = vmul.f32 %v4580_v36, %v6025_v56  ;;  %v4208_v56 = vld [vmem:[%s6910_s8 + $0x64] ss:$8 sps:$4 sm:$0xff]   ;;  %v4236_v30 = vld [vmem:[%s6910_s8 + $0xc0] ss:$8 sps:$4 sm:$0xff]  }
 0x553   :  { %v2333_v14 = vmul.f32 %v2301_v21, %v2197_v22  ;;  %3447 = vmatprep.subr.bf16.mxu1 %v4208_v56 }
 0x554   :  { %v2331_v8 = vmul.f32 %v2299_v59, %v2195_v37  ;;  %3448 = vmatpush1.bf16.msra.mxu1 %v4206_v17 }
 0x555   :  { %3449 = vmatprep.subr.bf16.mxu1 %v4211_v31 }
 0x556   :  { %2625 = vmatmul.mubr.bf16.gmra.mxu0 %v2344_v25  ;;  %v2349_v34 = vpack.c.bf16 %v2333_v14, %v2331_v8  ;;  %v4233_v25 = vld [vmem:[%s6910_s8 + $0xd0] ss:$8 sps:$4 sm:$0xff]  }
 0x557   :  { %2634 = vmatprep.mubr.bf16.mxu0 %v2347_v58 }
 0x558   :  { %3450 = vmatpush1.bf16.msra.mxu1 %v4209_v20  ;;  %v4244_v20 = vld [vmem:[%s6910_s8 + $0xa4] ss:$8 sps:$4 sm:$0xff]  }
 0x559   :  { %3451 = vmatprep.subr.bf16.mxu1 %v4214_v42 }
 0x55c   :  { %3452 = vmatpush1.bf16.msra.mxu1 %v4212_v19 }
 0x55d   :  { %3453 = vmatprep.subr.bf16.mxu1 %v4217_v63 }
 0x55e   :  { %2635 = vmatmul.mubr.bf16.gmra.mxu0 %v2346_v45 }
 0x55f   :  { %2644 = vmatprep.mubr.bf16.mxu0 %v2349_v34 }
 0x560   :  { %3454 = vmatpush1.bf16.msra.mxu1 %v4215_v53 }
 0x561   :  { %3455 = vmatprep.subr.bf16.mxu1 %v4220_v50 }
 0x564   :  { %3456 = vmatpush1.bf16.msra.mxu1 %v4218_v38 }
 0x565   :  { %3457 = vmatprep.subr.bf16.mxu1 %v4223_v13 }
 0x566   :  { %2645 = vmatmul.mubr.bf16.gmra.mxu0 %v2348_v46 }
 0x568   :  { %3458 = vmatpush1.bf16.msra.mxu1 %v4221_v1 }
 0x569   :  { %3459 = vmatprep.subr.bf16.mxu1 %v4226_v24 }
 0x56c   :  { %3460 = vmatpush1.bf16.msra.mxu1 %v4224_v26 }
 0x56d   :  { %3461 = vmatprep.subr.bf16.mxu1 %v4229_v40  ;;  %v4242_v40 = vld [vmem:[%s6910_s8 + $0xa0] ss:$8 sps:$4 sm:$0xff]  }
 0x570   :  { %3462 = vmatpush2.bf16.msra.mxu1 %v4227_v48 }
 0x571   :  { %3463 = vmatprep.subr.bf16.mxu1 %v4232_v15 }
 0x574   :  { %3464 = vmatpush2.bf16.msra.mxu1 %v4230_v11 }
 0x575   :  { %3465 = vmatprep.subr.bf16.mxu1 %v4235_v39 }
 0x578   :  { %3466 = vmatpush2.bf16.msra.mxu1 %v4233_v25  ;;  %v4247_v25 = vld [vmem:[%s6910_s8 + $0x94] ss:$8 sps:$4 sm:$0xff]  }
 0x579   :  { %3467 = vmatprep.subr.bf16.mxu1 %v4238_v33 }
 0x57c   :  { %3468 = vmatpush2.bf16.msra.mxu1 %v4236_v30 }
 0x57d   :  { %3469 = vmatprep.subr.bf16.mxu1 %v4241_v7 }
 0x580   :  { %3470 = vmatpush2.bf16.msra.mxu1 %v4239_v4 }
 0x581   :  { %3471 = vmatprep.subr.bf16.mxu1 %v4244_v20 }
 0x584   :  { %3472 = vmatpush2.bf16.msra.mxu1 %v4242_v40 }
 0x585   :  { %3473 = vmatprep.subr.bf16.mxu1 %v4247_v25 }
 0x5eb   :  { %v6135_v16 = vpop.f32.mrf.mxu0 }
 0x5ec   :  { %v2677_v3 = vmul.f32 %v6135_v16, %v6135_v16 }
 0x5ed   :  { %v6137_v6 = vpop.f32.mrf.mxu0 }
 0x5ee   :  { %v2737_v58 = vmul.f32 %v6137_v6, %v6137_v6 }
 0x5ef   :  { %v6145_v35 = vpop.f32.mrf.mxu0 }
 0x5f0   :  { %v2678_v29 = vmul.f32 %v6145_v35, %v6145_v35  ;;  %v2655_v10 = vadd.f32 %v6145_v35, %v6135_v16 }
 0x5f1   :  { %v6147_v28 = vpop.f32.mrf.mxu0 }
 0x5f2   :  { %v2738_v2 = vmul.f32 %v6147_v28, %v6147_v28  ;;  %v2693_v45 = vadd.f32 %v2678_v29, %v2677_v3  ;;  %v2715_v32 = vadd.f32 %v6147_v28, %v6137_v6 }
 0x5f3   :  { %v6155_v27 = vpop.f32.mrf.mxu0 }
 0x5f4   :  { %v2679_v5 = vmul.f32 %v6155_v27, %v6155_v27  ;;  %v2656_v57 = vadd.f32 %v2655_v10, %v6155_v27  ;;  %v2753_v36 = vadd.f32 %v2738_v2, %v2737_v58 }
 0x5f5   :  { %v6157_v23 = vpop.f32.mrf.mxu0 }
 0x5f6   :  { %v2739_v12 = vmul.f32 %v6157_v23, %v6157_v23  ;;  %v2694_v22 = vadd.f32 %v2693_v45, %v2679_v5  ;;  %v2716_v37 = vadd.f32 %v2715_v32, %v6157_v23  ;;  %v4245_v32 = vld [vmem:[%s6910_s8 + $0x90] ss:$8 sps:$4 sm:$0xff]  }
 0x5f7   :  { %v6165_v61 = vpop.f32.mrf.mxu0  ;;  %3474 = vmatpush2.bf16.msra.mxu1 %v4245_v32 }
 0x5f8   :  { %v2680_v62 = vmul.f32 %v6165_v61, %v6165_v61  ;;  %v2657_v59 = vadd.f32 %v2656_v57, %v6165_v61  ;;  %v2754_v8 = vadd.f32 %v2753_v36, %v2739_v12 }
 0x5f9   :  { %v6173_v0 = vpop.f32.mrf.mxu0 }
 0x5fa   :  { %v2740_v46 = vmul.f32 %v6173_v0, %v6173_v0  ;;  %v2695_v52 = vadd.f32 %v2694_v22, %v2680_v62  ;;  %v2717_v56 = vadd.f32 %v2716_v37, %v6173_v0 }
 0x5fb   :  { %v6178_v47 = vpop.f32.mrf.mxu0 }
 0x5fc   :  { %v2681_v21 = vmul.f32 %v6178_v47, %v6178_v47  ;;  %v2658_v17 = vadd.f32 %v2657_v59, %v6178_v47  ;;  %v2755_v42 = vadd.f32 %v2754_v8, %v2740_v46  ;;  %v4250_v46 = vld [vmem:[%s6910_s8 + $0x84] ss:$8 sps:$4 sm:$0xff]  }
 0x5fd   :  { %v6183_v49 = vpop.f32.mrf.mxu0  ;;  %3475 = vmatprep.subr.bf16.mxu1 %v4250_v46 }
 0x5fe   :  { %v2741_v14 = vmul.f32 %v6183_v49, %v6183_v49  ;;  %v2696_v53 = vadd.f32 %v2695_v52, %v2681_v21  ;;  %v2718_v38 = vadd.f32 %v2717_v56, %v6183_v49 }
 0x5ff   :  { %v6188_v54 = vpop.f32.mrf.mxu0 }
 0x600   :  { %v2682_v31 = vmul.f32 %v6188_v54, %v6188_v54  ;;  %v2659_v50 = vadd.f32 %v2658_v17, %v6188_v54  ;;  %v2756_v1 = vadd.f32 %v2755_v42, %v2741_v14 }
 0x601   :  { %v6196_v9 = vpop.f32.mrf.mxu0 }
 0x602   :  { %v2742_v19 = vmul.f32 %v6196_v9, %v6196_v9  ;;  %v2697_v48 = vadd.f32 %v2696_v53, %v2682_v31  ;;  %v2719_v15 = vadd.f32 %v2718_v38, %v6196_v9  ;;  %v4248_v31 = vld [vmem:[%s6910_s8 + $0x80] ss:$8 sps:$4 sm:$0xff]  }
 0x603   :  { %3476 = vmatpush2.bf16.msra.mxu1 %v4248_v31 }
 0x604   :  { %v2757_v29 = vadd.f32 %v2756_v1, %v2742_v19 }
 0x606   :  { %v6204_v41 = vpop.f32.mrf.mxu0 }
 0x607   :  { %v2683_v13 = vmul.f32 %v6204_v41, %v6204_v41  ;;  %v2660_v11 = vadd.f32 %v2659_v50, %v6204_v41 }
 0x608   :  { %v6206_v18 = vpop.f32.mrf.mxu0 }
 0x609   :  { %v2743_v24 = vmul.f32 %v6206_v18, %v6206_v18  ;;  %v2698_v3 = vadd.f32 %v2697_v48, %v2683_v13  ;;  %v2720_v10 = vadd.f32 %v2719_v15, %v6206_v18 }
 0x60a   :  { %v6214_v60 = vpop.f32.mrf.mxu0 }
 0x60b   :  { %v2684_v39 = vmul.f32 %v6214_v60, %v6214_v60  ;;  %v2661_v5 = vadd.f32 %v2660_v11, %v6214_v60  ;;  %v2758_v12 = vadd.f32 %v2757_v29, %v2743_v24 }
 0x60c   :  { %v6216_v51 = vpop.f32.mrf.mxu0 }
 0x60d   :  { %v2744_v33 = vmul.f32 %v6216_v51, %v6216_v51  ;;  %v2699_v57 = vadd.f32 %v2698_v3, %v2684_v39  ;;  %v2721_v62 = vadd.f32 %v2720_v10, %v6216_v51 }
 0x60e   :  { %v6228_v55 = vpop.f32.mrf.mxu0 }
 0x60f   :  { %v2685_v58 = vmul.f32 %v6228_v55, %v6228_v55  ;;  %v2662_v7 = vadd.f32 %v2661_v5, %v6228_v55  ;;  %v2759_v22 = vadd.f32 %v2758_v12, %v2744_v33 }
 0x610   :  { %v6240_v43 = vpop.f32.mrf.mxu0 }
 0x611   :  { %v2745_v30 = vmul.f32 %v6240_v43, %v6240_v43  ;;  %v2700_v21 = vadd.f32 %v2699_v57, %v2685_v58  ;;  %v2722_v8 = vadd.f32 %v2721_v62, %v6240_v43 }
 0x612   :  { %v6255_v44 = vpop.f32.mrf.mxu0 }
 0x613   :  { %v2686_v36 = vmul.f32 %v6255_v44, %v6255_v44  ;;  %v2663_v14 = vadd.f32 %v2662_v7, %v6255_v44  ;;  %v2760_v52 = vadd.f32 %v2759_v22, %v2745_v30 }
 0x614   :  { %v6263_v34 = vpop.f32.mrf.mxu0 }
 0x615   :  { %v2746_v37 = vmul.f32 %v6263_v34, %v6263_v34  ;;  %v2701_v20 = vadd.f32 %v2700_v21, %v2686_v36  ;;  %v2723_v42 = vadd.f32 %v2722_v8, %v6263_v34 }
 0x616   :  { %v6277_v63 = vpop.f32.mrf.mxu0 }
 0x617   :  { %v2687_v4 = vmul.f32 %v6277_v63, %v6277_v63  ;;  %v2664_v19 = vadd.f32 %v2663_v14, %v6277_v63  ;;  %v2761_v38 = vadd.f32 %v2760_v52, %v2746_v37 }
 0x618   :  { %v6285_v26 = vpop.f32.mrf.mxu0 }
 0x619   :  { %v2747_v56 = vmul.f32 %v6285_v26, %v6285_v26  ;;  %v2702_v1 = vadd.f32 %v2701_v20, %v2687_v4  ;;  %v2724_v24 = vadd.f32 %v2723_v42, %v6285_v26 }
 0x61a   :  { %v6299_v2 = vpop.f32.mrf.mxu0 }
 0x61b   :  { %v2688_v53 = vmul.f32 %v6299_v2, %v6299_v2  ;;  %v2665_v40 = vadd.f32 %v2664_v19, %v6299_v2  ;;  %v2762_v15 = vadd.f32 %v2761_v38, %v2747_v56 }
 0x61c   :  { %v6307_v45 = vpop.f32.mrf.mxu0 }
 0x61d   :  { %v2748_v50 = vmul.f32 %v6307_v45, %v6307_v45  ;;  %v2703_v25 = vadd.f32 %v2702_v1, %v2688_v53  ;;  %v2725_v29 = vadd.f32 %v2724_v24, %v6307_v45 }
 0x61e   :  { %v6321_v59 = vpop.f32.mrf.mxu0 }
 0x61f   :  { %v2689_v48 = vmul.f32 %v6321_v59, %v6321_v59  ;;  %v2666_v33 = vadd.f32 %v2665_v40, %v6321_v59  ;;  %v2763_v10 = vadd.f32 %v2762_v15, %v2748_v50 }
 0x620   :  { %v6329_v17 = vpop.f32.mrf.mxu0 }
 0x621   :  { %v2749_v11 = vmul.f32 %v6329_v17, %v6329_v17  ;;  %v2704_v12 = vadd.f32 %v2703_v25, %v2689_v48  ;;  %v2726_v30 = vadd.f32 %v2725_v29, %v6329_v17 }
 0x622   :  { %v6340_v13 = vpop.f32.mrf.mxu0 }
 0x623   :  { %v2690_v3 = vmul.f32 %v6340_v13, %v6340_v13  ;;  %v2667_v32 = vadd.f32 %v2666_v33, %v6340_v13  ;;  %v2764_v62 = vadd.f32 %v2763_v10, %v2749_v11 }
 0x624   :  { %v6348_v39 = vpop.f32.mrf.mxu0 }
 0x625   :  { %v2750_v5 = vmul.f32 %v6348_v39, %v6348_v39  ;;  %v2705_v36 = vadd.f32 %v2704_v12, %v2690_v3  ;;  %v2727_v46 = vadd.f32 %v2726_v30, %v6348_v39 }
 0x626   :  { %v6356_v58 = vpop.f32.mrf.mxu0 }
 0x627   :  { %v2691_v57 = vmul.f32 %v6356_v58, %v6356_v58  ;;  %v2668_v22 = vadd.f32 %v2667_v32, %v6356_v58  ;;  %v2765_v21 = vadd.f32 %v2764_v62, %v2750_v5 }
 0x628   :  { %v6362_v7 = vpop.f32.mrf.mxu0 }
 0x629   :  { %v2751_v37 = vmul.f32 %v6362_v7, %v6362_v7  ;;  %v2706_v14 = vadd.f32 %v2705_v36, %v2691_v57  ;;  %v2728_v4 = vadd.f32 %v2727_v46, %v6362_v7 }
 0x62a   :  { %v6368_v8 = vpop.f32.mrf.mxu0 }
 0x62b   :  { %v2669_v52 = vadd.f32 %v2668_v22, %v6368_v8  ;;  %v2692_v56 = vmul.f32 %v6368_v8, %v6368_v8  ;;  %v2766_v31 = vadd.f32 %v2765_v21, %v2751_v37 }
 0x62c   :  { %v6374_v20 = vpop.f32.mrf.mxu0 }
 0x62d   :  { %v2670_v42 = vrot.slane %v2669_v52, 4  ;;  %v2707_v19 = vadd.f32 %v2706_v14, %v2692_v56  ;;  %v2729_v53 = vadd.f32 %v2728_v4, %v6374_v20  ;;  %v2752_v38 = vmul.f32 %v6374_v20, %v6374_v20 }
 0x62f   :  { %v2671_v50 = vadd.f32 %v2670_v42, %v2669_v52  ;;  %v2708_v1 = vrot.slane %v2707_v19, 4  ;;  %v2730_v24 = vrot.slane %v2729_v53, 4  ;;  %v2767_v40 = vadd.f32 %v2766_v31, %v2752_v38 }
 0x631   :  { %v2672_v48 = vrot.slane %v2671_v50, 2  ;;  %v2709_v15 = vadd.f32 %v2708_v1, %v2707_v19  ;;  %v2731_v11 = vadd.f32 %v2730_v24, %v2729_v53  ;;  %v2768_v25 = vrot.slane %v2767_v40, 4  ;;  %v3090_v24 = vld [vmem:[%s6911_s2 + $0x8] sm:$0xff] }
 0x633   :  { %v2673_v29 = vadd.f32 %v2672_v48, %v2671_v50  ;;  %v2710_v33 = vrot.slane %v2709_v15, 2  ;;  %v2732_v3 = vrot.slane %v2731_v11, 2  ;;  %v2769_v10 = vadd.f32 %v2768_v25, %v2767_v40  ;;  %v3089_v48 = vld [vmem:[%s6911_s2] sm:$0xff] }
 0x634   :  { %v3100_v25 = vunpack.c.1.s8 %v3090_v24 }
 0x635   :  { %v2674_v5 = vrot.slane %v2673_v29, 1  ;;  %v2711_v12 = vadd.f32 %v2710_v33, %v2709_v15  ;;  %v2733_v30 = vadd.f32 %v2732_v3, %v2731_v11  ;;  %v2770_v32 = vrot.slane %v2769_v10, 2 }
 0x636   :  { %v3098_v11 = vunpack.c.0.s8 %v3090_v24  ;;  %v3099_v33 = vunpack.c.1.s8 %v3089_v48  ;;  %v3102_v3 = vunpack.c.2.s8 %v3090_v24 }
 0x637   :  { %v2675_v57 = vadd.f32 %v2674_v5, %v2673_v29  ;;  %v2712_v62 = vrot.slane %v2711_v12, 1  ;;  %v2734_v36 = vrot.slane %v2733_v30, 1  ;;  %v2771_v46 = vadd.f32 %v2770_v32, %v2769_v10 }
 0x638   :  { %v3097_v29 = vunpack.c.0.s8 %v3089_v48  ;;  %v3104_v10 = vunpack.c.3.s8 %v3090_v24  ;;  %v3101_v5 = vunpack.c.2.s8 %v3089_v48  ;;  %v3132_v32 = vcvt.s32.f32 %v3100_v25 }
 0x639   :  { %v2676_v22 = vmul.f32 0.0078125, %v2675_v57  ;;  %v2713_v37 = vadd.f32 %v2712_v62, %v2711_v12  ;;  %v2735_v21 = vadd.f32 %v2734_v36, %v2733_v30  ;;  %v2772_v14 = vrot.slane %v2771_v46, 1  ;;  %v6388_v30 = vld [vmem:[%s6911_s2 + $0x18] sm:$0xff] }
 0x63a   :  { %v3130_v12 = vcvt.s32.f32 %v3098_v11  ;;  %v3129_v57 = vcvt.s32.f32 %v3097_v29  ;;  %v3131_v62 = vcvt.s32.f32 %v3099_v33  ;;  %v3134_v36 = vcvt.s32.f32 %v3102_v3 }
 0x63b   :  { %v2714_v4 = vmul.f32 0.0078125, %v2713_v37  ;;  %v2775_v52 = vmul.f32 %v2676_v22, %v2676_v22  ;;  %v2736_v56 = vmul.f32 0.0078125, %v2735_v21  ;;  %v2773_v31 = vadd.f32 %v2772_v14, %v2771_v46 }
 0x63c   :  { %v3136_v46 = vcvt.s32.f32 %v3104_v10  ;;  %v3103_v37 = vunpack.c.3.s8 %v3089_v48  ;;  %v3133_v21 = vcvt.s32.f32 %v3101_v5  ;;  %v3106_v14 = vunpack.c.0.s8 %v6388_v30 }
 0x63d   :  { %v2777_v42 = vsub.f32 %v2714_v4, %v2775_v52  ;;  %v2776_v19 = vmul.f32 %v2736_v56, %v2736_v56  ;;  %v2774_v53 = vmul.f32 0.0078125, %v2773_v31  ;;  %v3108_v4 = vunpack.c.1.s8 %v6388_v30  ;;  %v6397_v31 = vld [vmem:[%s6911_s2 + $0x10] sm:$0xff] }
 0x63e   :  { %v6392_v52 = vmul.f32 1.6666666, %v3130_v12  ;;  %v6411_v24 = vmul.f32 1.6666666, %v3134_v36  ;;  %v6415_v48 = vcvt.s32.f32 %v3103_v37  ;;  %v6419_v11 = vcvt.s32.f32 %v3106_v14 }
 0x63f   :  { %v2779_v38 = vmax.f32 %v2777_v42, 0.0  ;;  %v2778_v50 = vsub.f32 %v2774_v53, %v2776_v19  ;;  %v6958_v42 = vld [vmem:[#allocation3_spill] sm:$0xff]  ;;  %v6402_v53 = vmul.f32 1.6666666, %v3132_v32  ;;  %v3105_v25 = vunpack.c.0.s8 %v6397_v31 }
 0x640   :  { %v6400_v19 = vrot.slane %v2676_v22, %v6958_v42  ;;  %v6421_v22 = vcvt.s32.f32 %v3108_v4  ;;  %v3107_v33 = vunpack.c.1.s8 %v6397_v31 }
 0x641   :  { %v2821_v1 = vadd.f32 1e-05, %v2779_v38  ;;  %v2780_v40 = vmax.f32 %v2778_v50, 0.0  ;;  %v6404_v38 = vmul.f32 1.6666666, %v3129_v57 }
 0x642   :  { %v6406_v50 = vmul.f32 1.6666666, %v3131_v62  ;;  %v2819_v5 = vsub.f32 %v6368_v8, %v6400_v19  ;;  %v2789_v32 = vsub.f32 %v6135_v16, %v6400_v19  ;;  %v2791_v57 = vsub.f32 %v6145_v35, %v6400_v19 }
 0x643   :  { %4581 = vrsqrt.f32 %v2821_v1  ;;  %v2822_v15 = vadd.f32 1e-05, %v2780_v40  ;;  %v6409_v1 = vrot.slane %v2736_v56, %v6958_v42  ;;  %v6413_v40 = vmul.f32 1.6666666, %v3136_v46 }
 0x644   :  { %v3110_v56 = vunpack.c.2.s8 %v6388_v30  ;;  %v2793_v8 = vsub.f32 %v6155_v27, %v6400_v19  ;;  %v2795_v27 = vsub.f32 %v6165_v61, %v6400_v19  ;;  %v2799_v10 = vsub.f32 %v6188_v54, %v6400_v19 }
 0x645   :  { %4583 = vrsqrt.f32 %v2822_v15  ;;  %v6417_v15 = vmul.f32 1.6666666, %v3133_v21  ;;  %v2820_v62 = vsub.f32 %v6374_v20, %v6409_v1  ;;  %v2790_v36 = vsub.f32 %v6137_v6, %v6409_v1 }
 0x646   :  { %v2792_v46 = vsub.f32 %v6147_v28, %v6409_v1  ;;  %v2794_v20 = vsub.f32 %v6157_v23, %v6409_v1  ;;  %v2796_v28 = vsub.f32 %v6173_v0, %v6409_v1  ;;  %v2798_v14 = vsub.f32 %v6183_v49, %v6409_v1 }
 0x647   :  { %6959 = vst [vmem:[#allocation5_spill] sm:$0xff] %v6417_v15  ;;  %v2800_v23 = vsub.f32 %v6196_v9, %v6409_v1  ;;  %v6534_v15 = vmul.f32 1.6666666, %v6415_v48 }
 0x650   :  { %v4582_v29 = vpop.eup %4581 }
 0x651   :  { %v6431_v12 = vrot.slane %v4582_v29, %v6958_v42 }
 0x652   :  { %v4584_v37 = vpop.eup %4583 }
 0x653   :  { %v6446_v21 = vmul.f32 %v6431_v12, %v2819_v5  ;;  %v6449_v16 = vmul.f32 %v6431_v12, %v2789_v32  ;;  %v6452_v35 = vmul.f32 %v6431_v12, %v2791_v57  ;;  %v6457_v6 = vrot.slane %v4584_v37, %v6958_v42 }
 0x654   :  { %v6486_v37 = vmul.f32 %v6431_v12, %v2793_v8  ;;  %v6489_v9 = vmul.f32 %v6431_v12, %v2795_v27  ;;  %v2797_v8 = vsub.f32 %v6178_v47, %v6400_v19  ;;  %v3139_v42 = vcvt.s32.f32 %v3107_v33 }
 0x655   :  { %6960 = vst [vmem:[#allocation6_spill] sm:$0xff] %v6446_v21  ;;  %v3816_v4 = vmul.f32 -1.442695, %v6446_v21  ;;  %v3786_v29 = vmul.f32 -1.442695, %v6449_v16  ;;  %v6471_v32 = vmul.f32 %v6457_v6, %v2820_v62  ;;  %v6474_v0 = vmul.f32 %v6457_v6, %v2790_v36 }
 0x656   :  { %v3788_v5 = vmul.f32 -1.442695, %v6452_v35  ;;  %v6477_v61 = vmul.f32 %v6457_v6, %v2792_v46  ;;  %v6480_v49 = vmul.f32 %v6457_v6, %v2794_v20  ;;  %v6483_v57 = vmul.f32 %v6457_v6, %v2796_v28 }
 0x657   :  { %6961 = vst [vmem:[#allocation8_spill] sm:$0xff] %v6471_v32  ;;  %4585 = vpow2.f32 %v3816_v4  ;;  %v3817_v62 = vmul.f32 -1.442695, %v6471_v32  ;;  %v3787_v36 = vmul.f32 -1.442695, %v6474_v0  ;;  %v6496_v4 = vmul.f32 %v6457_v6, %v2798_v14 }
 0x658   :  { %v3789_v46 = vmul.f32 -1.442695, %v6477_v61  ;;  %4587 = vpow2.f32 %v3786_v29  ;;  %v3791_v20 = vmul.f32 -1.442695, %v6480_v49  ;;  %v3793_v28 = vmul.f32 -1.442695, %v6483_v57 }
 0x659   :  { %4589 = vpow2.f32 %v3788_v5  ;;  %v6502_v27 = vmul.f32 %v6457_v6, %v2800_v23  ;;  %v3790_v29 = vmul.f32 -1.442695, %v6486_v37  ;;  %v6508_v5 = vmul.f32 %v6431_v12, %v2797_v8 }
 0x65a   :  { %4591 = vpow2.f32 %v3817_v62  ;;  %v2802_v14 = vsub.f32 %v6206_v18, %v6409_v1  ;;  %v3792_v47 = vmul.f32 -1.442695, %v6489_v9  ;;  %v6514_v62 = vmul.f32 %v6431_v12, %v2799_v10 }
 0x65b   :  { %4593 = vpow2.f32 %v3787_v36  ;;  %v2804_v23 = vsub.f32 %v6216_v51, %v6409_v1  ;;  %v3795_v54 = vmul.f32 -1.442695, %v6496_v4  ;;  %v3111_v8 = vunpack.c.3.s8 %v6397_v31 }
 0x65c   :  { %4595 = vpow2.f32 %v3789_v46  ;;  %v6520_v36 = vmul.f32 %v6457_v6, %v2802_v14  ;;  %v3797_v18 = vmul.f32 -1.442695, %v6502_v27  ;;  %v3137_v46 = vcvt.s32.f32 %v3105_v25 }
 0x65d   :  { %4597 = vpow2.f32 %v3791_v20  ;;  %v6525_v3 = vmul.f32 %v6457_v6, %v2804_v23  ;;  %v3794_v10 = vmul.f32 -1.442695, %v6508_v5  ;;  %v3142_v51 = vcvt.s32.f32 %v3110_v56 }
 0x65e   :  { %4599 = vpow2.f32 %v3793_v28  ;;  %v3796_v20 = vmul.f32 -1.442695, %v6514_v62  ;;  %v6962_v14 = vunpack.c.3.s8 %v6388_v30  ;;  %v6963_v32 = vunpack.c.2.s8 %v6397_v31  ;;  %v6544_v30 = vld [vmem:[%s6911_s2 + $0x20] sm:$0xff] }
 0x65f   :  { %4601 = vpow2.f32 %v3790_v29  ;;  %v3799_v25 = vmul.f32 -1.442695, %v6520_v36  ;;  %v3143_v29 = vcvt.s32.f32 %v3111_v8  ;;  %v6538_v33 = vmul.f32 1.6666666, %v6419_v11 }
 0x660   :  { %4603 = vpow2.f32 %v3792_v47  ;;  %v3144_v21 = vcvt.s32.f32 %v6962_v14  ;;  %v3141_v28 = vcvt.s32.f32 %v6963_v32  ;;  %v3801_v56 = vmul.f32 -1.442695, %v6525_v3 }
 0x661   :  { %4605 = vpow2.f32 %v3795_v54  ;;  %v6547_v31 = vmul.f32 1.6666666, %v6421_v22  ;;  %v6549_v48 = vmul.f32 1.6666666, %v3137_v46  ;;  %v6551_v32 = vmul.f32 1.6666666, %v3139_v42 }
 0x662   :  { %4607 = vpow2.f32 %v3797_v18  ;;  %v6553_v23 = vmul.f32 1.6666666, %v3142_v51  ;;  %v6555_v11 = vmul.f32 1.6666666, %v3144_v21  ;;  %v6557_v54 = vmul.f32 1.6666666, %v3141_v28 }
 0x663   :  { %4609 = vpow2.f32 %v3794_v10  ;;  %v6559_v14 = vmul.f32 1.6666666, %v3143_v29  ;;  %v2801_v42 = vsub.f32 %v6204_v41, %v6400_v19  ;;  %v2803_v28 = vsub.f32 %v6214_v60, %v6400_v19 }
 0x664   :  { %v4586_v47 = vpop.eup %4585  ;;  %4611 = vpow2.f32 %v3796_v20  ;;  %v2805_v41 = vsub.f32 %v6228_v55, %v6400_v19  ;;  %v2810_v60 = vsub.f32 %v6285_v26, %v6409_v1 }
 0x665   :  { %v4588_v8 = vpop.eup %4587  ;;  %v2991_v18 = vadd.f32 1.0, %v4586_v47  ;;  %4613 = vpow2.f32 %v3799_v25  ;;  %6964 = vst [vmem:[#allocation9_spill] sm:$0xff] %v6559_v14  ;;  %v2806_v25 = vsub.f32 %v6240_v43, %v6409_v1 }
 0x666   :  { %v4590_v10 = vpop.eup %4589  ;;  %v2961_v46 = vadd.f32 1.0, %v4588_v8  ;;  %4615 = vpow2.f32 %v3801_v56  ;;  %v2808_v56 = vsub.f32 %v6263_v34, %v6409_v1  ;;  %v2809_v34 = vsub.f32 %v6277_v63, %v6400_v19 }
 0x667   :  { %v4592_v20 = vpop.eup %4591  ;;  %4617 = vrcp.f32 %v2991_v18  ;;  %v2963_v21 = vadd.f32 1.0, %v4590_v10  ;;  %v2807_v18 = vsub.f32 %v6255_v44, %v6400_v19  ;;  %v2814_v44 = vsub.f32 %v6329_v17, %v6409_v1 }
 0x668   :  { %v4594_v29 = vpop.eup %4593  ;;  %v2992_v47 = vadd.f32 1.0, %v4592_v20  ;;  %4619 = vrcp.f32 %v2961_v46  ;;  %v2812_v46 = vsub.f32 %v6307_v45, %v6409_v1  ;;  %v6589_v45 = vmul.f32 %v6431_v12, %v2803_v28 }
 0x669   :  { %v4596_v8 = vpop.eup %4595  ;;  %v2962_v51 = vadd.f32 1.0, %v4594_v29  ;;  %4621 = vrcp.f32 %v2963_v21  ;;  %v2811_v21 = vsub.f32 %v6299_v2, %v6400_v19  ;;  %v2813_v2 = vsub.f32 %v6321_v59, %v6400_v19 }
 0x66a   :  { %v4598_v10 = vpop.eup %4597  ;;  %4623 = vrcp.f32 %v2992_v47  ;;  %v2964_v43 = vadd.f32 1.0, %v4596_v8  ;;  %v6586_v47 = vmul.f32 %v6431_v12, %v2801_v42  ;;  %v2815_v42 = vsub.f32 %v6340_v13, %v6400_v19 }
 0x66b   :  { %v4600_v20 = vpop.eup %4599  ;;  %4625 = vrcp.f32 %v2962_v51  ;;  %v2966_v55 = vadd.f32 1.0, %v4598_v10  ;;  %v2816_v51 = vsub.f32 %v6348_v39, %v6409_v1  ;;  %v6607_v13 = vmul.f32 %v6457_v6, %v2808_v56 }
 0x66c   :  { %v4602_v29 = vpop.eup %4601  ;;  %4627 = vrcp.f32 %v2964_v43  ;;  %v2968_v26 = vadd.f32 1.0, %v4600_v20  ;;  %v6596_v43 = vmul.f32 %v6457_v6, %v2806_v25  ;;  %v3800_v25 = vmul.f32 -1.442695, %v6589_v45 }
 0x66d   :  { %v4604_v8 = vpop.eup %4603  ;;  %4629 = vrcp.f32 %v2966_v55  ;;  %v2965_v63 = vadd.f32 1.0, %v4602_v29  ;;  %6965 = vst [vmem:[#allocation10_spill] sm:$0xff] %v6607_v13  ;;  %v6620_v56 = vmul.f32 %v6457_v6, %v2812_v46 }
 0x66e   :  { %v4606_v10 = vpop.eup %4605  ;;  %4631 = vrcp.f32 %v2968_v26  ;;  %v2967_v17 = vadd.f32 1.0, %v4604_v8  ;;  %v3798_v26 = vmul.f32 -1.442695, %v6586_v47  ;;  %v3803_v39 = vmul.f32 -1.442695, %v6596_v43 }
 0x66f   :  { %v4608_v28 = vpop.eup %4607  ;;  %4633 = vrcp.f32 %v2965_v63  ;;  %v2970_v20 = vadd.f32 1.0, %v4606_v10  ;;  %v6610_v63 = vmul.f32 %v6431_v12, %v2805_v41  ;;  %6967 = vst [vmem:[#allocation12_spill] sm:$0xff] %v6620_v56 }
 0x670   :  { %v4610_v29 = vpop.eup %4609  ;;  %4635 = vrcp.f32 %v2967_v17  ;;  %v2972_v59 = vadd.f32 1.0, %v4608_v28  ;;  %v6614_v17 = vmul.f32 %v6431_v12, %v2807_v18 }
 0x671   :  { %v4612_v8 = vpop.eup %4611  ;;  %4637 = vrcp.f32 %v2970_v20  ;;  %v2969_v22 = vadd.f32 1.0, %v4610_v29  ;;  %6966 = vst [vmem:[#allocation11_spill] sm:$0xff] %v6610_v63  ;;  %v6617_v20 = vmul.f32 %v6457_v6, %v2810_v60  ;;  %v3802_v60 = vmul.f32 -1.442695, %v6610_v63 }
 0x672   :  { %v4614_v10 = vpop.eup %4613  ;;  %4639 = vrcp.f32 %v2972_v59  ;;  %v2971_v55 = vadd.f32 1.0, %v4612_v8  ;;  %v6625_v59 = vmul.f32 %v6431_v12, %v2809_v34  ;;  %v6628_v8 = vmul.f32 %v6431_v12, %v2811_v21 }
 0x673   :  { %v4616_v28 = vpop.eup %4615  ;;  %4641 = vrcp.f32 %v2969_v22  ;;  %v2974_v14 = vadd.f32 1.0, %v4614_v10  ;;  %v3805_v22 = vmul.f32 -1.442695, %v6607_v13  ;;  %v6633_v10 = vmul.f32 %v6457_v6, %v2814_v44 }
 0x674   :  { %v6622_v29 = vpop.eup %4617  ;;  %4643 = vrcp.f32 %v2971_v55  ;;  %v2976_v41 = vadd.f32 1.0, %v4616_v28  ;;  %6969 = vst [vmem:[#allocation13_spill] sm:$0xff] %v6625_v59  ;;  %6970 = vst [vmem:[#allocation7_spill] sm:$0xff] %v6628_v8  ;;  %v3804_v55 = vmul.f32 -1.442695, %v6614_v17  ;;  %v6638_v34 = vmul.f32 %v6457_v6, %v2816_v51 }
 0x675   :  { %6968 = vst [vmem:[#allocation4_spill] sm:$0xff] %v6622_v29  ;;  %v4620_v18 = vpop.eup %4619  ;;  %4645 = vrcp.f32 %v2974_v14  ;;  %v3807_v28 = vmul.f32 -1.442695, %v6617_v20  ;;  %v3809_v63 = vmul.f32 -1.442695, %v6620_v56 }
 0x676   :  { %v4622_v46 = vpop.eup %4621  ;;  %v3057_v29 = vmul.f32 %v4620_v18, %v6449_v16  ;;  %4647 = vrcp.f32 %v2976_v41  ;;  %v3806_v13 = vmul.f32 -1.442695, %v6625_v59  ;;  %v3808_v16 = vmul.f32 -1.442695, %v6628_v8 }
 0x677   :  { %v6640_v21 = vpop.eup %4623  ;;  %v3059_v14 = vmul.f32 %v4622_v46, %v6452_v35  ;;  %4649 = vpow2.f32 %v3798_v26  ;;  %v6648_v41 = vmul.f32 %v6431_v12, %v2813_v2  ;;  %v3811_v35 = vmul.f32 -1.442695, %v6633_v10 }
 0x678   :  { %6971 = vst [vmem:[#allocation14_spill] sm:$0xff] %v6640_v21  ;;  %v4626_v44 = vpop.eup %4625  ;;  %4651 = vpow2.f32 %v3800_v25  ;;  %v6653_v26 = vmul.f32 %v6431_v12, %v2815_v42  ;;  %v3193_v25 = vmul.f32 %v6404_v38, %v3057_v29  ;;  %v3813_v8 = vmul.f32 -1.442695, %v6638_v34 }
 0x679   :  { %v4628_v51 = vpop.eup %4627  ;;  %v3058_v18 = vmul.f32 %v4626_v44, %v6474_v0  ;;  %4653 = vpow2.f32 %v3803_v39  ;;  %v3195_v56 = vmul.f32 %v6406_v50, %v3059_v14 }
 0x67a   :  { %v4630_v46 = vpop.eup %4629  ;;  %v3060_v21 = vmul.f32 %v4628_v51, %v6477_v61  ;;  %4655 = vpow2.f32 %v3805_v22  ;;  %v3810_v61 = vmul.f32 -1.442695, %v6648_v41  ;;  %v3812_v22 = vmul.f32 -1.442695, %v6653_v26 }
 0x67b   :  { %v4632_v59 = vpop.eup %4631  ;;  %v3194_v2 = vmul.f32 %v6392_v52, %v3058_v18  ;;  %v3062_v0 = vmul.f32 %v4630_v46, %v6480_v49  ;;  %4657 = vpow2.f32 %v3802_v60  ;;  %v6972_v52 = vsub.f32 %v6362_v7, %v6409_v1 }
 0x67c   :  { %v4634_v39 = vpop.eup %4633  ;;  %v3196_v42 = vmul.f32 %v6402_v53, %v3060_v21  ;;  %v3064_v44 = vmul.f32 %v4632_v59, %v6483_v57  ;;  %4659 = vpow2.f32 %v3804_v55  ;;  %v6676_v57 = vld [vmem:[%s6911_s2 + $0x28] sm:$0xff]  ;;  %v3225_v1 = vpack.c.bf16 %v3195_v56, %v3193_v25 }
 0x67d   :  { %v4636_v38 = vpop.eup %4635  ;;  %v3198_v29 = vmul.f32 %v6411_v24, %v3062_v0  ;;  %4661 = vpow2.f32 %v3807_v28  ;;  %v6670_v50 = vmul.f32 %v6457_v6, %v6972_v52  ;;  %v6973_v24 = vsub.f32 %v6356_v58, %v6400_v19 }
 0x67e   :  { %v4638_v49 = vpop.eup %4637  ;;  %v3226_v60 = vpack.c.bf16 %v3196_v42, %v3194_v2  ;;  %v3200_v53 = vmul.f32 %v6413_v40, %v3064_v44  ;;  %4663 = vpow2.f32 %v3809_v63  ;;  %v3061_v6 = vmul.f32 %v4634_v39, %v6486_v37 }
 0x67f   :  { %v6682_v59 = vmul.f32 %v6431_v12, %v6973_v24  ;;  %v4640_v7 = vpop.eup %4639  ;;  %v3063_v55 = vmul.f32 %v4636_v38, %v6489_v9  ;;  %4665 = vpow2.f32 %v3806_v13  ;;  %v3066_v14 = vmul.f32 %v4638_v49, %v6496_v4 }
 0x680   :  { %v4642_v40 = vpop.eup %4641  ;;  %3477 = vmatprep.mubr.bf16.mxu1 %v3226_v60  ;;  %v3228_v21 = vpack.c.bf16 %v3200_v53, %v3198_v29  ;;  %v3068_v63 = vmul.f32 %v4640_v7, %v6502_v27  ;;  %4667 = vpow2.f32 %v3808_v16  ;;  %v3114_v58 = vunpack.c.0.s8 %v6676_v57  ;;  %v6975_v16 = vld [vmem:[#allocation5_spill] sm:$0xff] }
 0x681   :  { %v4644_v28 = vpop.eup %4643  ;;  %3478 = vmatmul.mubr.bf16.vlgmr.msra.gmra.mxu1 %v3225_v1  ;;  %v3117_v19 = vunpack.c.2.s8 %v6544_v30  ;;  %4669 = vpow2.f32 %v3811_v35  ;;  %v3815_v12 = vmul.f32 -1.442695, %v6670_v50  ;;  %v3116_v9 = vunpack.c.1.s8 %v6676_v57 }
 0x682   :  { %v4646_v37 = vpop.eup %4645  ;;  %3487 = vmatprep.mubr.bf16.mxu1 %v3228_v21  ;;  %v6974_v13 = vunpack.c.0.s8 %v6544_v30  ;;  %4671 = vpow2.f32 %v3813_v8  ;;  %v3814_v4 = vmul.f32 -1.442695, %v6682_v59  ;;  %v3197_v51 = vmul.f32 %v6975_v16, %v3061_v6 }
 0x683   :  { %v4648_v27 = vpop.eup %4647  ;;  %v3199_v18 = vmul.f32 %v6534_v15, %v3063_v55  ;;  %v3070_v46 = vmul.f32 %v4646_v37, %v6520_v36  ;;  %4673 = vpow2.f32 %v3810_v61  ;;  %v3202_v25 = vmul.f32 %v6538_v33, %v3066_v14 }
 0x684   :  { %v3145_v56 = vcvt.s32.f32 %v6974_v13  ;;  %v4650_v35 = vpop.eup %4649  ;;  %v3204_v2 = vmul.f32 %v6547_v31, %v3068_v63  ;;  %v3072_v0 = vmul.f32 %v4648_v27, %v6525_v3  ;;  %4675 = vpow2.f32 %v3812_v22  ;;  %v6720_v63 = vld [vmem:[%s6911_s2 + $0x38] sm:$0xff] }
 0x685   :  { %v4652_v39 = vpop.eup %4651  ;;  %v6702_v8 = vmul.f32 %v6553_v23, %v3070_v46  ;;  %v2973_v42 = vadd.f32 1.0, %v4650_v35  ;;  %v6976_v44 = vunpack.c.1.s8 %v6544_v30  ;;  %4677 = vpow2.f32 %v3815_v12 }
 0x686   :  { %v4654_v15 = vpop.eup %4653  ;;  %v3065_v36 = vmul.f32 %v4642_v40, %v6508_v5  ;;  %v6708_v61 = vmul.f32 %v6555_v11, %v3072_v0  ;;  %v2975_v33 = vadd.f32 1.0, %v4652_v39  ;;  %4679 = vpow2.f32 %v3814_v4 }
 0x687   :  { %v3147_v38 = vcvt.s32.f32 %v6976_v44  ;;  %v4656_v31 = vpop.eup %4655  ;;  %v3227_v3 = vpack.c.bf16 %v3199_v18, %v3197_v51  ;;  %v3067_v29 = vmul.f32 %v4644_v28, %v6514_v62  ;;  %4681 = vrcp.f32 %v2973_v42 }
 0x688   :  { %v2978_v23 = vadd.f32 1.0, %v4654_v15  ;;  %v4658_v22 = vpop.eup %4657  ;;  %v3230_v52 = vpack.c.bf16 %v3204_v2, %v3202_v25  ;;  %v3232_v49 = vpack.c.bf16 %v6708_v61, %v6702_v8  ;;  %4683 = vrcp.f32 %v2975_v33 }
 0x689   :  { %v2980_v60 = vadd.f32 1.0, %v4656_v31  ;;  %v4660_v53 = vpop.eup %4659  ;;  %3488 = vmatmul.mubr.bf16.gmra.mxu1 %v3227_v3  ;;  %v3146_v5 = vcvt.s32.f32 %v3114_v58  ;;  %v2977_v11 = vadd.f32 1.0, %v4658_v22  ;;  %v3118_v24 = vunpack.c.2.s8 %v6676_v57 }
 0x68a   :  { %4685 = vrcp.f32 %v2978_v23  ;;  %v4662_v7 = vpop.eup %4661  ;;  %3497 = vmatprep.mubr.bf16.mxu1 %v3230_v52  ;;  %v3148_v62 = vcvt.s32.f32 %v3116_v9  ;;  %v2979_v1 = vadd.f32 1.0, %v4660_v53  ;;  %v3120_v6 = vunpack.c.3.s8 %v6676_v57 }
 0x68b   :  { %4687 = vrcp.f32 %v2980_v60  ;;  %v4664_v55 = vpop.eup %4663  ;;  %v3201_v40 = vmul.f32 %v6549_v48, %v3065_v36  ;;  %v3203_v21 = vmul.f32 %v6551_v32, %v3067_v29  ;;  %v2982_v14 = vadd.f32 1.0, %v4662_v7 }
 0x68c   :  { %4689 = vrcp.f32 %v2977_v11  ;;  %v4666_v28 = vpop.eup %4665  ;;  %v6722_v58 = vmul.f32 1.6666666, %v3145_v56  ;;  %v6724_v12 = vmul.f32 1.6666666, %v3147_v38  ;;  %v2984_v37 = vadd.f32 1.0, %v4664_v55  ;;  %v6734_v38 = vld [vmem:[%s6911_s2 + $0x30] sm:$0xff] }
 0x68d   :  { %4691 = vrcp.f32 %v2979_v1  ;;  %v4668_v57 = vpop.eup %4667  ;;  %v3150_v9 = vcvt.s32.f32 %v3118_v24  ;;  %v2981_v48 = vadd.f32 1.0, %v4666_v28  ;;  %v3119_v32 = vunpack.c.3.s8 %v6544_v30 }
 0x68e   :  { %4693 = vrcp.f32 %v2982_v14  ;;  %v4670_v13 = vpop.eup %4669  ;;  %v3152_v4 = vcvt.s32.f32 %v3120_v6  ;;  %v2983_v27 = vadd.f32 1.0, %v4668_v57  ;;  %v3122_v16 = vunpack.c.0.s8 %v6720_v63  ;;  %v6977_v14 = vld [vmem:[#allocation9_spill] sm:$0xff] }
 0x68f   :  { %4695 = vrcp.f32 %v2984_v37  ;;  %v4672_v51 = vpop.eup %4671  ;;  %v3229_v18 = vpack.c.bf16 %v3203_v21, %v3201_v40  ;;  %v3149_v56 = vcvt.s32.f32 %v3117_v19  ;;  %v2986_v46 = vadd.f32 1.0, %v4670_v13  ;;  %v6978_v37 = vld [vmem:[#allocation10_spill] sm:$0xff]  ;;  %v6979_v13 = vld [vmem:[#allocation11_spill] sm:$0xff] }
 0x690   :  { %4697 = vrcp.f32 %v2981_v48  ;;  %v4674_v35 = vpop.eup %4673  ;;  %v3178_v25 = vmul.f32 1.6666666, %v3146_v5  ;;  %v2988_v2 = vadd.f32 1.0, %v4672_v51  ;;  %v3124_v0 = vunpack.c.1.s8 %v6720_v63 }
 0x691   :  { %4699 = vrcp.f32 %v2983_v27  ;;  %v4676_v39 = vpop.eup %4675  ;;  %3498 = vmatmul.mubr.bf16.gmra.mxu1 %v3229_v18  ;;  %v3180_v8 = vmul.f32 1.6666666, %v3148_v62  ;;  %v3182_v42 = vmul.f32 1.6666666, %v3150_v9  ;;  %v2985_v44 = vadd.f32 1.0, %v4674_v35 }
 0x692   :  { %4701 = vrcp.f32 %v2986_v46  ;;  %v4678_v30 = vpop.eup %4677  ;;  %3507 = vmatprep.mubr.bf16.mxu1 %v3232_v49  ;;  %v3151_v19 = vcvt.s32.f32 %v3119_v32  ;;  %v3154_v15 = vcvt.s32.f32 %v3122_v16  ;;  %v2987_v36 = vadd.f32 1.0, %v4676_v39 }
 0x693   :  { %4703 = vrcp.f32 %v2988_v2  ;;  %v4680_v61 = vpop.eup %4679  ;;  %v3184_v33 = vmul.f32 1.6666666, %v3152_v4  ;;  %v3181_v31 = vmul.f32 1.6666666, %v3149_v56  ;;  %v2990_v3 = vadd.f32 1.0, %v4678_v30  ;;  %v6980_v30 = vld [vmem:[#allocation12_spill] sm:$0xff] }
 0x694   :  { %4705 = vrcp.f32 %v2985_v44  ;;  %v4682_v29 = vpop.eup %4681  ;;  %v3156_v23 = vcvt.s32.f32 %v3124_v0  ;;  %v3121_v22 = vunpack.c.0.s8 %v6734_v38  ;;  %v2989_v52 = vadd.f32 1.0, %v4680_v61 }
 0x695   :  { %4707 = vrcp.f32 %v2987_v36  ;;  %v4684_v60 = vpop.eup %4683  ;;  %v3069_v53 = vmul.f32 %v4682_v29, %v6586_v47  ;;  %v3123_v49 = vunpack.c.1.s8 %v6734_v38  ;;  %v3128_v5 = vunpack.c.3.s8 %v6720_v63 }
 0x696   :  { %4709 = vrcp.f32 %v2990_v3  ;;  %v3071_v24 = vmul.f32 %v4684_v60, %v6589_v45  ;;  %v3183_v7 = vmul.f32 1.6666666, %v3151_v19  ;;  %v3186_v62 = vmul.f32 1.6666666, %v3154_v15 }
 0x697   :  { %v4686_v11 = vpop.eup %4685  ;;  %4711 = vrcp.f32 %v2989_v52  ;;  %v3205_v6 = vmul.f32 %v6557_v54, %v3069_v53  ;;  %v3126_v40 = vunpack.c.2.s8 %v6720_v63  ;;  %v3127_v47 = vunpack.c.3.s8 %v6734_v38  ;;  %v6983_v53 = vld [vmem:[#allocation8_spill] sm:$0xff] }
 0x698   :  { %v4688_v1 = vpop.eup %4687  ;;  %v3074_v55 = vmul.f32 %v4686_v11, %v6596_v43  ;;  %v3207_v28 = vmul.f32 %v6977_v14, %v3071_v24  ;;  %v3188_v9 = vmul.f32 1.6666666, %v3156_v23  ;;  %v3153_v48 = vcvt.s32.f32 %v3121_v22  ;;  %v6982_v23 = vld [vmem:[#allocation7_spill] sm:$0xff] }
 0x699   :  { %v4690_v21 = vpop.eup %4689  ;;  %v3076_v57 = vmul.f32 %v4688_v1, %v6978_v37  ;;  %v3155_v27 = vcvt.s32.f32 %v3123_v49  ;;  %v3160_v16 = vcvt.s32.f32 %v3128_v5  ;;  %v3125_v18 = vunpack.c.2.s8 %v6734_v38  ;;  %v6984_v49 = vld [vmem:[#allocation14_spill] sm:$0xff] }
 0x69a   :  { %v4692_v45 = vpop.eup %4691  ;;  %v3210_v32 = vmul.f32 %v3178_v25, %v3074_v55  ;;  %v3073_v4 = vmul.f32 %v4690_v21, %v6979_v13  ;;  %v3231_v51 = vpack.c.bf16 %v3207_v28, %v3205_v6  ;;  %v3158_v2 = vcvt.s32.f32 %v3126_v40  ;;  %v6985_v1 = vld [vmem:[#allocation6_spill] sm:$0xff]  ;;  %v6986_v6 = vld [vmem:[#allocation4_spill] sm:$0xff] }
 0x69b   :  { %v4694_v54 = vpop.eup %4693  ;;  %v3212_v43 = vmul.f32 %v3180_v8, %v3076_v57  ;;  %v3075_v63 = vmul.f32 %v4692_v45, %v6614_v17  ;;  %v3159_v0 = vcvt.s32.f32 %v3127_v47  ;;  %v3185_v15 = vmul.f32 1.6666666, %v3153_v48  ;;  %v6981_v17 = vld [vmem:[#allocation13_spill] sm:$0xff] }
 0x69c   :  { %v4696_v56 = vpop.eup %4695  ;;  %v3209_v46 = vmul.f32 %v6722_v58, %v3073_v4  ;;  %v3078_v35 = vmul.f32 %v4694_v54, %v6617_v20  ;;  %3508 = vmatmul.mubr.bf16.gmra.mxu1 %v3231_v51  ;;  %v3187_v38 = vmul.f32 1.6666666, %v3155_v27  ;;  %v3192_v3 = vmul.f32 1.6666666, %v3160_v16 }
 0x69d   :  { %v4698_v39 = vpop.eup %4697  ;;  %v3234_v25 = vpack.c.bf16 %v3212_v43, %v3210_v32  ;;  %v3211_v44 = vmul.f32 %v6724_v12, %v3075_v63  ;;  %v3080_v19 = vmul.f32 %v4696_v56, %v6980_v30  ;;  %v3157_v52 = vcvt.s32.f32 %v3125_v18  ;;  %v6988_v18 = vld [vmem:[#allocation3_spill] sm:$0xff] }
 0x69e   :  { %v4700_v8 = vpop.eup %4699  ;;  %v3214_v36 = vmul.f32 %v3182_v42, %v3078_v35  ;;  %v3077_v61 = vmul.f32 %v4698_v39, %v6981_v17  ;;  %v3088_v12 = vmul.f32 %v6984_v49, %v6983_v53  ;;  %v3191_v24 = vmul.f32 1.6666666, %v3159_v0 }
 0x69f   :  { %v4702_v29 = vpop.eup %4701  ;;  %3517 = vmatprep.mubr.bf16.mxu1 %v3234_v25  ;;  %v3233_v58 = vpack.c.bf16 %v3211_v44, %v3209_v46  ;;  %v3216_v20 = vmul.f32 %v3184_v33, %v3080_v19  ;;  %v3079_v22 = vmul.f32 %v4700_v8, %v6982_v23  ;;  %v3087_v55 = vmul.f32 %v6986_v6, %v6985_v1 }
 0x6a0   :  { %v4704_v60 = vpop.eup %4703  ;;  %v3213_v5 = vmul.f32 %v3181_v31, %v3077_v61  ;;  %v3082_v11 = vmul.f32 %v4702_v29, %v6633_v10  ;;  %v3190_v37 = vmul.f32 1.6666666, %v3158_v2  ;;  %v3189_v10 = vmul.f32 1.6666666, %v3157_v52 }
 0x6a1   :  { %v4706_v42 = vpop.eup %4705  ;;  %v3236_v40 = vpack.c.bf16 %v3216_v20, %v3214_v36  ;;  %v3215_v47 = vmul.f32 %v3183_v7, %v3079_v22  ;;  %v3084_v21 = vmul.f32 %v4704_v60, %v6638_v34  ;;  %v3224_v27 = vmul.f32 %v3192_v3, %v3088_v12 }
 0x6a2   :  { %v4708_v33 = vpop.eup %4707  ;;  %v3218_v14 = vmul.f32 %v3186_v62, %v3082_v11  ;;  %v3081_v28 = vmul.f32 %v4706_v42, %v6648_v41  ;;  %v3223_v62 = vmul.f32 %v3191_v24, %v3087_v55 }
 0x6a3   :  { %v4710_v57 = vpop.eup %4709  ;;  %v3235_v48 = vpack.c.bf16 %v3215_v47, %v3213_v5  ;;  %v3220_v45 = vmul.f32 %v3188_v9, %v3084_v21  ;;  %v3083_v31 = vmul.f32 %v4708_v33, %v6653_v26  ;;  %v3273_v26 = vld [vmem:[%s6912_s9] sm:$0x3] }
 0x6a4   :  { %v4712_v32 = vpop.eup %4711  ;;  %v3217_v13 = vmul.f32 %v3185_v15, %v3081_v28  ;;  %v3086_v4 = vmul.f32 %v4710_v57, %v6670_v50  ;;  %3518 = vmatmul.mubr.bf16.gmra.mxu1 %v3233_v58  ;;  %v6987_v50 = vld [vmem:[#allocation2_spill] sm:$0xff] }
 0x6a5   :  { %v3238_v7 = vpack.c.bf16 %v3220_v45, %v3218_v14  ;;  %v3219_v16 = vmul.f32 %v3187_v38, %v3083_v31  ;;  %v3085_v34 = vmul.f32 %v4712_v32, %v6682_v59  ;;  %3527 = vmatprep.mubr.bf16.mxu1 %v3236_v40  ;;  %v3281_v63 = vsub.s32 1, %v6987_v50 }
 0x6a6   :  { %v3222_v41 = vmul.f32 %v3190_v37, %v3086_v4  ;;  %v6771_v59 = vrot.slane %v3273_v26, %v6988_v18 }
 0x6a7   :  { %v3237_v54 = vpack.c.bf16 %v3219_v16, %v3217_v13  ;;  %v3221_v51 = vmul.f32 %v3189_v10, %v3085_v34  ;;  %v6773_v56 = vrot.slane %v3273_v26, %v3281_v63 }
 0x6a8   :  { %v3240_v43 = vpack.c.bf16 %v3224_v27, %v3222_v41 }
 0x6a9   :  { %v3239_v9 = vpack.c.bf16 %v3223_v62, %v3221_v51 }
 0x6ac   :  { %3528 = vmatmul.mubr.bf16.gmra.mxu1 %v3235_v48 }
 0x6ad   :  { %3537 = vmatprep.mubr.bf16.mxu1 %v3238_v7 }
 0x6b4   :  { %3538 = vmatmul.mubr.bf16.gmra.mxu1 %v3237_v54 }
 0x6b5   :  { %3547 = vmatprep.mubr.bf16.mxu1 %v3240_v43 }
 0x6bc   :  { %3548 = vmatmul.mubr.bf16.gmra.mxu1 %v3239_v9 }
 0x741   :  { %v3479_v46 = vpop.f32.mrf.mxu1 }
 0x742   :  { %v3480_v35 = vadd.f32 %v3479_v46, %v6771_v59 }
 0x743   :  { %v3481_v2 = vpop.f32.mrf.mxu1 }
 0x744   :  { %3558 = vst [vmem:[%s6913_s10] sm:$0xff] %v3480_v35  ;;  %v3482_v0 = vadd.f32 %v3481_v2, %v6773_v56 }
 0x745   :  { %v3483_v39 = vpop.f32.mrf.mxu1 }
 0x746   :  { %3559 = vst [vmem:[%s6913_s10 + $0x8] sm:$0xff] %v3482_v0  ;;  %v3484_v25 = vadd.f32 %v3483_v39, %v6771_v59 }
 0x747   :  { %v3485_v44 = vpop.f32.mrf.mxu1 }
 0x748   :  { %3560 = vst [vmem:[%s6913_s10 + $0x10] sm:$0xff] %v3484_v25  ;;  %v3486_v30 = vadd.f32 %v3485_v44, %v6773_v56 }
 0x749   :  { %v3489_v19 = vpop.f32.mrf.mxu1 }
 0x74a   :  { %3561 = vst [vmem:[%s6913_s10 + $0x18] sm:$0xff] %v3486_v30  ;;  %v3490_v15 = vadd.f32 %v3489_v19, %v6771_v59 }
 0x74b   :  { %v3491_v8 = vpop.f32.mrf.mxu1 }
 0x74c   :  { %3562 = vst [vmem:[%s6913_s10 + $0x20] sm:$0xff] %v3490_v15  ;;  %v3492_v36 = vadd.f32 %v3491_v8, %v6773_v56 }
 0x74d   :  { %v3493_v17 = vpop.f32.mrf.mxu1 }
 0x74e   :  { %3563 = vst [vmem:[%s6913_s10 + $0x28] sm:$0xff] %v3492_v36  ;;  %v3494_v61 = vadd.f32 %v3493_v17, %v6771_v59 }
 0x74f   :  { %v3495_v38 = vpop.f32.mrf.mxu1 }
 0x750   :  { %3564 = vst [vmem:[%s6913_s10 + $0x30] sm:$0xff] %v3494_v61  ;;  %v3496_v3 = vadd.f32 %v3495_v38, %v6773_v56 }
 0x751   :  { %v3499_v29 = vpop.f32.mrf.mxu1 }
 0x752   :  { %3565 = vst [vmem:[%s6913_s10 + $0x38] sm:$0xff] %v3496_v3  ;;  %v3500_v58 = vadd.f32 %v3499_v29, %v6771_v59 }
 0x753   :  { %v3501_v20 = vpop.f32.mrf.mxu1 }
 0x754   :  { %3566 = vst [vmem:[%s6913_s10 + $0x40] sm:$0xff] %v3500_v58  ;;  %v3502_v23 = vadd.f32 %v3501_v20, %v6773_v56 }
 0x755   :  { %v3503_v22 = vpop.f32.mrf.mxu1 }
 0x756   :  { %3567 = vst [vmem:[%s6913_s10 + $0x48] sm:$0xff] %v3502_v23  ;;  %v3504_v52 = vadd.f32 %v3503_v22, %v6771_v59 }
 0x757   :  { %v3505_v60 = vpop.f32.mrf.mxu1 }
 0x758   :  { %3568 = vst [vmem:[%s6913_s10 + $0x50] sm:$0xff] %v3504_v52  ;;  %v3506_v53 = vadd.f32 %v3505_v60, %v6773_v56 }
 0x75a   :  { %3569 = vst [vmem:[%s6913_s10 + $0x58] sm:$0xff] %v3506_v53 }
 0x75c   :  { %v3509_v49 = vpop.f32.mrf.mxu1 }
 0x75d   :  { %v3510_v12 = vadd.f32 %v3509_v49, %v6771_v59 }
 0x75e   :  { %v3511_v5 = vpop.f32.mrf.mxu1 }
 0x75f   :  { %3570 = vst [vmem:[%s6913_s10 + $0x60] sm:$0xff] %v3510_v12  ;;  %v3512_v11 = vadd.f32 %v3511_v5, %v6773_v56 }
 0x760   :  { %v3513_v24 = vpop.f32.mrf.mxu1 }
 0x761   :  { %3571 = vst [vmem:[%s6913_s10 + $0x68] sm:$0xff] %v3512_v11  ;;  %v3514_v42 = vadd.f32 %v3513_v24, %v6771_v59 }
 0x762   :  { %v3515_v1 = vpop.f32.mrf.mxu1 }
 0x763   :  { %3572 = vst [vmem:[%s6913_s10 + $0x70] sm:$0xff] %v3514_v42  ;;  %v3516_v6 = vadd.f32 %v3515_v1, %v6773_v56 }
 0x764   :  { %v3519_v55 = vpop.f32.mrf.mxu1 }
 0x765   :  { %3573 = vst [vmem:[%s6913_s10 + $0x78] sm:$0xff] %v3516_v6  ;;  %v3520_v40 = vadd.f32 %v3519_v55, %v6771_v59 }
 0x766   :  { %v3521_v47 = vpop.f32.mrf.mxu1 }
 0x767   :  { %3574 = vst [vmem:[%s6913_s10 + $0x80] sm:$0xff] %v3520_v40  ;;  %v3522_v21 = vadd.f32 %v3521_v47, %v6773_v56 }
 0x768   :  { %v3523_v33 = vpop.f32.mrf.mxu1 }
 0x769   :  { %3575 = vst [vmem:[%s6913_s10 + $0x88] sm:$0xff] %v3522_v21  ;;  %v3524_v14 = vadd.f32 %v3523_v33, %v6771_v59 }
 0x76a   :  { %v3525_v28 = vpop.f32.mrf.mxu1 }
 0x76b   :  { %3576 = vst [vmem:[%s6913_s10 + $0x90] sm:$0xff] %v3524_v14  ;;  %v3526_v37 = vadd.f32 %v3525_v28, %v6773_v56 }
 0x76c   :  { %v3529_v57 = vpop.f32.mrf.mxu1 }
 0x76d   :  { %3577 = vst [vmem:[%s6913_s10 + $0x98] sm:$0xff] %v3526_v37  ;;  %v3530_v48 = vadd.f32 %v3529_v57, %v6771_v59 }
 0x76e   :  { %v3531_v45 = vpop.f32.mrf.mxu1 }
 0x76f   :  { %3578 = vst [vmem:[%s6913_s10 + $0xa0] sm:$0xff] %v3530_v48  ;;  %v3532_v31 = vadd.f32 %v3531_v45, %v6773_v56 }
 0x770   :  { %v3533_v10 = vpop.f32.mrf.mxu1 }
 0x771   :  { %3579 = vst [vmem:[%s6913_s10 + $0xa8] sm:$0xff] %v3532_v31  ;;  %v3534_v32 = vadd.f32 %v3533_v10, %v6771_v59 }
 0x772   :  { %v3535_v13 = vpop.f32.mrf.mxu1 }
 0x773   :  { %3580 = vst [vmem:[%s6913_s10 + $0xb0] sm:$0xff] %v3534_v32  ;;  %v3536_v4 = vadd.f32 %v3535_v13, %v6773_v56 }
 0x774   :  { %v3539_v27 = vpop.f32.mrf.mxu1 }
 0x775   :  { %3581 = vst [vmem:[%s6913_s10 + $0xb8] sm:$0xff] %v3536_v4  ;;  %v3540_v7 = vadd.f32 %v3539_v27, %v6771_v59 }
 0x776   :  { %v3541_v16 = vpop.f32.mrf.mxu1 }
 0x777   :  { %3582 = vst [vmem:[%s6913_s10 + $0xc0] sm:$0xff] %v3540_v7  ;;  %v3542_v34 = vadd.f32 %v3541_v16, %v6773_v56 }
 0x778   :  { %v3543_v62 = vpop.f32.mrf.mxu1 }
 0x779   :  { %3583 = vst [vmem:[%s6913_s10 + $0xc8] sm:$0xff] %v3542_v34  ;;  %v3544_v41 = vadd.f32 %v3543_v62, %v6771_v59 }
 0x77a   :  { %v3545_v54 = vpop.f32.mrf.mxu1 }
 0x77b   :  { %3584 = vst [vmem:[%s6913_s10 + $0xd0] sm:$0xff] %v3544_v41  ;;  %v3546_v51 = vadd.f32 %v3545_v54, %v6773_v56 }
 0x77c   :  { %v3549_v43 = vpop.f32.mrf.mxu1 }
 0x77d   :  { %3585 = vst [vmem:[%s6913_s10 + $0xd8] sm:$0xff] %v3546_v51  ;;  %v3550_v9 = vadd.f32 %v3549_v43, %v6771_v59 }
 0x77e   :  { %v3551_v26 = vpop.f32.mrf.mxu1 }
 0x77f   :  { %3586 = vst [vmem:[%s6913_s10 + $0xe0] sm:$0xff] %v3550_v9  ;;  %v3552_v50 = vadd.f32 %v3551_v26, %v6773_v56 }
 0x780   :  { %v3553_v63 = vpop.f32.mrf.mxu1 }
 0x781   :  { %3587 = vst [vmem:[%s6913_s10 + $0xe8] sm:$0xff] %v3552_v50  ;;  %v3554_v18 = vadd.f32 %v3553_v63, %v6771_v59 }
 0x782   :  { %v3555_v46 = vpop.f32.mrf.mxu1 }
 0x783   :  { %3588 = vst [vmem:[%s6913_s10 + $0xf0] sm:$0xff] %v3554_v18  ;;  %v3556_v35 = vadd.f32 %v3555_v46, %v6773_v56 }
 0x785   :  { %3589 = vst [vmem:[%s6913_s10 + $0xf8] sm:$0xff] %v3556_v35 }

</bundles_post_ra>
